<compile_context>
chip_gen: v7x
topology: tpu7x:2x2x1
jax: 0.10.0
libtpu: 0.0.40
codegen_flags: <defaults>
</compile_context>

<pallas_src>
import functools

import jax
import jax.numpy as jnp
from jax import lax
from jax.experimental import pallas as pl
from jax.experimental.pallas import tpu as pltpu

_EPS = 1e-5


# ----------------------------- Pallas kernels -----------------------------

def _spp_branch_kernel(x_ref, wp_ref, wd1_ref, wd2_ref, wb2_ref, wd3f_ref,
                       w1_ref, bias_ref, mask_ref,
                       proj_ref, cnn_ref,
                       pad_ref, col_ref, *, img_w, pad_off):
    """One full SPP_inception branch (grid i: 0 = value, 1 = key).

    x_ref    : (Cin, N)        input features, N = B*H*W on the lane axis
    wp_ref   : (1, C, Cin)     1x1 projection weight (key-branch BN folded in)
    wd1_ref  : (1, C, 9C)      dilate1 taps (raw)
    wd2_ref  : (1, C, 9C)      dilate2 taps (raw, feeds dilate3)
    wb2_ref  : (1, C, 9C)      conv1x1 o dilate2 taps (folded)
    wd3f_ref : (1, C, 9C)      conv1x1 o dilate3 taps (folded)
    w1_ref   : (1, C, C)       leftover 1x1 combine (for the c2 path)
    bias_ref : (1, C, 6)       packed biases [proj, d1, d2, 1x1(d2), 1x1, 1x1(d3)]
    mask_ref : (27, N)         per-tap validity masks for dilations 1/3/5
    proj_ref : (1, C, N)       projected branch features (pools / query)
    cnn_ref  : (1, C, N)       cnn_out of the branch
    pad_ref  : (C, N+2*pad_off) VMEM scratch: zero-bordered slab for shifts
    col_ref  : (9C, N)         VMEM scratch: im2col slab (tap-major rows)
    """
    n = x_ref.shape[1]
    ck = wp_ref.shape[1]
    bias = bias_ref[0]                                        # (C, 6)

    # --- 1x1 projection (+ folded BN); ReLU only on the key branch (i == 1) --
    z = jnp.dot(wp_ref[0], x_ref[...], preferred_element_type=jnp.float32)
    z = z + bias[:, 0:1]
    keep_neg = (pl.program_id(0) == 0).astype(jnp.float32)   # 1.0 -> identity
    xz = jnp.maximum(z, z * keep_neg)                         # 0.0 -> ReLU
    proj_ref[0] = xz.astype(proj_ref.dtype)

    # Zero only the (lane-aligned) borders; the centre is always rewritten.
    pad_ref[:, :pad_off] = jnp.zeros((ck, pad_off), jnp.float32)
    pad_ref[:, pad_off + n:pad_off + n + pad_off] = jnp.zeros(
        (ck, pad_off), jnp.float32)

    def dconv(inp, w_ref, bcol, d, mrow):
        """3x3 conv (dilation = padding = d) as ONE im2col matmul (K = 9*C)."""
        pad_ref[:, pad_off:pad_off + n] = inp                 # aligned store
        for t in range(9):
            kh, kw = divmod(t, 3)
            s = (kh - 1) * d * img_w + (kw - 1) * d
            slab = pad_ref[:, pad_off + s:pad_off + s + n]
            col_ref[t * ck:(t + 1) * ck, :] = (
                slab * mask_ref[mrow + t:mrow + t + 1, :])
        return (jnp.dot(w_ref[0], col_ref[...],
                        preferred_element_type=jnp.float32)
                + bias[:, bcol:bcol + 1])

    a = dconv(xz, wd1_ref, 1, 1, 0)          # dilate1(x)              (raw)
    b2c = dconv(xz, wb2_ref, 3, 3, 9)        # conv1x1(dilate2(x))     (folded)
    c2 = dconv(a, wd2_ref, 2, 3, 9)          # dilate2(dilate1(x))     (raw)
    d3c = dconv(c2, wd3f_ref, 5, 5, 18)      # conv1x1(dilate3(c2))    (folded)
    c2c = (jnp.dot(w1_ref[0], c2, preferred_element_type=jnp.float32)
           + bias[:, 4:5])                   # conv1x1(c2)

    cnn_ref[0] = (jnp.maximum(a, 0.0) + jnp.maximum(b2c, 0.0)
                  + jnp.maximum(c2c, 0.0)
                  + jnp.maximum(d3c, 0.0)).astype(cnn_ref.dtype)


def _attn_out_kernel(q_ref, k_ref, v_ref, x_ref, w1_ref, w2_ref, b_ref, o_ref,
                     *, scale, ck):
    """Non-local attention + folded (W, final 1x1, BN, ReLU), channel-major.

    q_ref : (1, Ck, HW)    key-branch projection (query), channel-major
    k_ref : (1, Ck, Lp)    pooled key, channel-major, zero-padded to Lp
    v_ref : (1, Ck+1, Lp)  pooled value + ones row (row Ck) for row-sums
    x_ref : (1, Cf, HW)    original features, channel-major
    w1/w2 : (Cf, Ck)/(Cf, Cf) folded weights, b_ref: (Cf, 1) folded bias
    o_ref : (1, Cf, HW)    lane-dense output block
    """
    q = q_ref[0]
    k = k_ref[0]
    # scores (HW, Lp): contract the small channel dim of both operands (TN).
    s = lax.dot_general(q, k, (((0,), (0,)), ((), ())),
                        preferred_element_type=jnp.float32) * scale
    m = jnp.max(s, axis=-1, keepdims=True)
    e = jnp.exp(s - m)                                        # un-normalised
    # rows 0..Ck-1: V @ e^T (channel-major context); row Ck: per-query row-sums
    ctx_aug = lax.dot_general(v_ref[0], e, (((1,), (1,)), ((), ())),
                              preferred_element_type=jnp.float32)  # (Ck+1, HW)
    inv = pl.reciprocal(ctx_aug[ck:ck + 1, :], approx=True)        # EUP slot
    ctx = ctx_aug[:ck, :] * inv                                     # (Ck, HW)
    out = (jnp.dot(w1_ref[...], ctx, preferred_element_type=jnp.float32)
           + jnp.dot(w2_ref[...], x_ref[0], preferred_element_type=jnp.float32)
           + b_ref[...])
    o_ref[0] = jnp.maximum(out, 0.0).astype(o_ref.dtype)


# ------------------------------ JAX wrapper --------------------------------

def _build_tap_masks(b, h, w):
    """Validity masks (zero padding) for each of the 9 taps, dilations 1/3/5."""
    # TODO(synk): could be shrunk to 6 rows by giving pad_ref per-image guard
    # rows; kept at 27 rows here (the multiply is fused into the im2col copy).
    yy = jnp.arange(h).reshape(h, 1)
    xx = jnp.arange(w).reshape(1, w)
    rows = []
    for d in (1, 3, 5):
        for kh in range(3):
            for kw in range(3):
                dy, dx = (kh - 1) * d, (kw - 1) * d
                ok = ((yy + dy >= 0) & (yy + dy < h) &
                      (xx + dx >= 0) & (xx + dx < w))
                rows.append(jnp.tile(ok.reshape(-1), b))
    return jnp.stack(rows).astype(jnp.float32)                # (27, b*h*w)


def hifa_forward(x, p):
    """HIFA.forward.  x: (B, C, H, W) NCHW  ->  (B, C, H, W)."""
    bsz, cf, h, w = x.shape
    ck = p["w_fkey"].shape[0]
    hw = h * w
    n = bsz * hw
    hp = "highest"

    x2d = jnp.transpose(x, (1, 0, 2, 3)).reshape(cf, n)

    # ---- host-side weight packing / folding for the SPP branch kernel -------
    def flat_taps(wt):                 # (Co, Ci, 3, 3) -> (Co, 9*Ci), kh*3+kw major
        return jnp.transpose(wt, (0, 2, 3, 1)).reshape(wt.shape[0],
                                                       9 * wt.shape[1])

    def branch_pack(spp, wproj, bproj):
        w1 = spp["w_1x1"].reshape(ck, ck)
        b1 = spp["b_1x1"]
        wd2 = flat_taps(spp["w_d2"])
        biases = jnp.stack([
            bproj, spp["b_d1"], spp["b_d2"],
            jnp.dot(w1, spp["b_d2"], precision=hp) + b1,       # 1x1(dilate2(x))
            b1,                                                # 1x1(c2)
            jnp.dot(w1, spp["b_d3"], precision=hp) + b1,       # 1x1(dilate3(c2))
        ], axis=-1)                                            # (Ck, 6)
        return (wproj, flat_taps(spp["w_d1"]), wd2,
                jnp.dot(w1, wd2, precision=hp),                # folded 1x1 o d2
                jnp.dot(w1, flat_taps(spp["w_d3"]), precision=hp),  # 1x1 o d3
                w1, biases)

    sck = p["bn_k_g"] / jnp.sqrt(p["bn_k_v"] + _EPS)           # fold key BN
    shk = p["bn_k_b"] - sck * p["bn_k_m"]
    packs = [branch_pack(p["spp_v"], p["w_fval"].reshape(ck, cf), p["b_fval"]),
             branch_pack(p["spp_k"], sck[:, None] * p["w_fkey"].reshape(ck, cf),
                         sck * p["b_fkey"] + shk)]
    wp, wd1, wd2, wb2, wd3f, w1s, biases = (jnp.stack(z) for z in zip(*packs))

    masks = _build_tap_masks(bsz, h, w)
    pad_off = ((5 * w + 5 + 127) // 128) * 128   # lane-aligned halo >= max shift

    # TODO(synk): for production sizes add an N-axis grid dimension (with a
    # pad_off halo) + explicit vmem_limit_bytes (v7x: 64 MiB VMEM), cast MXU
    # operands to bf16 on v6e/v7x, and on v5e merge both branches into one grid
    # step (block-diagonal tap weights) since its single TC runs grid=(2,)
    # serially with half-empty sublanes.
    proj, cnn = pl.pallas_call(
        functools.partial(_spp_branch_kernel, img_w=w, pad_off=pad_off),
        out_shape=(jax.ShapeDtypeStruct((2, ck, n), jnp.float32),
                   jax.ShapeDtypeStruct((2, ck, n), jnp.float32)),
        grid=(2,),
        in_specs=[
            pl.BlockSpec((cf, n), lambda i: (0, 0)),               # x (shared)
            pl.BlockSpec((1, ck, cf), lambda i: (i, 0, 0)),        # proj weight
            pl.BlockSpec((1, ck, 9 * ck), lambda i: (i, 0, 0)),    # dilate1 taps
            pl.BlockSpec((1, ck, 9 * ck), lambda i: (i, 0, 0)),    # dilate2 taps
            pl.BlockSpec((1, ck, 9 * ck), lambda i: (i, 0, 0)),    # 1x1 o dilate2
            pl.BlockSpec((1, ck, 9 * ck), lambda i: (i, 0, 0)),    # 1x1 o dilate3
            pl.BlockSpec((1, ck, ck), lambda i: (i, 0, 0)),        # 1x1 combine
            pl.BlockSpec((1, ck, 6), lambda i: (i, 0, 0)),         # packed biases
            pl.BlockSpec((27, n), lambda i: (0, 0)),               # tap masks
        ],
        out_specs=[pl.BlockSpec((1, ck, n), lambda i: (i, 0, 0)),
                   pl.BlockSpec((1, ck, n), lambda i: (i, 0, 0))],
        scratch_shapes=[pltpu.VMEM((ck, n + 2 * pad_off), jnp.float32),
                        pltpu.VMEM((9 * ck, n), jnp.float32)],
        compiler_params=pltpu.CompilerParams(
            dimension_semantics=("parallel",)),
    )(x2d, wp, wd1, wd2, wb2, wd3f, w1s, biases, masks)

    # ---- pools (XLA reduce_window) + channel-major key/value assembly -------
    xv_sp = jnp.transpose(proj[0].reshape(ck, bsz, h, w), (1, 0, 2, 3))
    xk_sp = jnp.transpose(proj[1].reshape(ck, bsz, h, w), (1, 0, 2, 3))

    # TODO(synk): the four tiny max-pools stay on XLA reduce_window (a
    # pallas_call costs more than the pooling compute at these sizes).
    def spp_channel_major(feat_sp, cnn2d):
        pools = [lax.reduce_window(feat_sp, -jnp.inf, lax.max,
                                   (1, 1, k, k), (1, 1, k, k),
                                   "VALID").reshape(bsz, ck, -1)
                 for k in (2, 3, 5, 6)]
        cnn_b = jnp.transpose(cnn2d.reshape(ck, bsz, hw), (1, 0, 2))
        return jnp.concatenate(pools + [cnn_b], axis=-1)        # (B, Ck, L)

    value_cm = spp_channel_major(xv_sp, cnn[0])
    key_cm = spp_channel_major(xk_sp, cnn[1])
    seq = value_cm.shape[-1]
    lp = ((seq + 127) // 128) * 128            # lane-pad pooled length
    padc = lp - seq

    key_p = jnp.pad(key_cm, ((0, 0), (0, 0), (0, padc)))        # zeros: exact
    v_aug = jnp.concatenate(                                    # + ones row
        [jnp.pad(value_cm, ((0, 0), (0, 0), (0, padc))),
         jnp.pad(jnp.ones((bsz, 1, seq), jnp.float32),
                 ((0, 0), (0, 0), (0, padc)))], axis=1)         # (B, Ck+1, Lp)
    x_cm = x.reshape(bsz, cf, hw)

    # ---- fold W 1x1, final 1x1(2C->C) and its BN into two matrices + bias ---
    wW = p["w_W"].reshape(cf, ck)
    wf = p["w_f"].reshape(cf, 2 * cf)
    wfa, wfx = wf[:, :cf], wf[:, cf:]
    scf = p["bn_f_g"] / jnp.sqrt(p["bn_f_v"] + _EPS)
    shf = p["bn_f_b"] - scf * p["bn_f_m"]
    w1a = scf[:, None] * jnp.dot(wfa, wW, precision=hp)          # (Cf, Ck)
    w2a = scf[:, None] * wfx                                      # (Cf, Cf)
    ba = (scf * (jnp.dot(wfa, p["b_W"], precision=hp) + p["b_f"])
          + shf).reshape(cf, 1)

    out_cm = pl.pallas_call(
        functools.partial(_attn_out_kernel, scale=float(ck) ** -0.5, ck=ck),
        out_shape=jax.ShapeDtypeStruct((bsz, cf, hw), jnp.float32),
        grid=(bsz,),
        in_specs=[
            pl.BlockSpec((1, ck, hw), lambda b: (1, 0, b)),      # query = key proj
            pl.BlockSpec((1, ck, lp), lambda b: (b, 0, 0)),      # key (C-major)
            pl.BlockSpec((1, ck + 1, lp), lambda b: (b, 0, 0)),  # value + ones
            pl.BlockSpec((1, cf, hw), lambda b: (b, 0, 0)),      # feats (C-major)
            pl.BlockSpec((cf, ck), lambda b: (0, 0)),            # folded W1
            pl.BlockSpec((cf, cf), lambda b: (0, 0)),            # folded W2
            pl.BlockSpec((cf, 1), lambda b: (0, 0)),             # folded bias
        ],
        out_specs=pl.BlockSpec((1, cf, hw), lambda b: (b, 0, 0)),
        compiler_params=pltpu.CompilerParams(
            dimension_semantics=("parallel",)),
    )(proj, key_p, v_aug, x_cm, w1a, w2a, ba)

    return out_cm.reshape(bsz, cf, h, w)


# ------------------------- Pure-JAX reference check -------------------------

def _ref_hifa(x, p):
    hp = lax.Precision.HIGHEST

    def conv1x1(v, wt, b):
        y = lax.conv_general_dilated(
            v, wt, (1, 1), "VALID",
            dimension_numbers=("NCHW", "OIHW", "NCHW"), precision=hp)
        return y + b.reshape(1, -1, 1, 1)

    def bn(v, g, bt, mean, var):
        s = g / jnp.sqrt(var + _EPS)
        return v * s.reshape(1, -1, 1, 1) + (bt - s * mean).reshape(1, -1, 1, 1)

    def dconv(v, wt, b, d):
        y = lax.conv_general_dilated(
            v, wt, (1, 1), [(d, d), (d, d)], rhs_dilation=(d, d),
            dimension_numbers=("NCHW", "OIHW", "NCHW"), precision=hp)
        return y + b.reshape(1, -1, 1, 1)

    def spp(v, pr):
        bsz, c, _, _ = v.shape
        relu = lambda t: jnp.maximum(t, 0.0)
        pools = [lax.reduce_window(v, -jnp.inf, lax.max, (1, 1, k, k),
                                   (1, 1, k, k), "VALID").reshape(bsz, c, -1)
                 for k in (2, 3, 5, 6)]
        a = dconv(v, pr["w_d1"], pr["b_d1"], 1)
        b2 = dconv(v, pr["w_d2"], pr["b_d2"], 3)
        c2 = dconv(a, pr["w_d2"], pr["b_d2"], 3)
        d3 = dconv(c2, pr["w_d3"], pr["b_d3"], 5)
        cv = lambda t: conv1x1(t, pr["w_1x1"], pr["b_1x1"])
        cnn = relu(a) + relu(cv(b2)) + relu(cv(c2)) + relu(cv(d3))
        out = jnp.concatenate(pools + [cnn.reshape(bsz, c, -1)], axis=-1)
        return jnp.transpose(out, (0, 2, 1))                    # (B, L, C)

    bsz, cf, h, w = x.shape
    ck = p["w_fkey"].shape[0]
    x_v = conv1x1(x, p["w_fval"], p["b_fval"])
    x_k = jnp.maximum(
        bn(conv1x1(x, p["w_fkey"], p["b_fkey"]),
           p["bn_k_g"], p["bn_k_b"], p["bn_k_m"], p["bn_k_v"]), 0.0)
    value = spp(x_v, p["spp_v"])
    key = spp(x_k, p["spp_k"])
    query = jnp.transpose(x_k.reshape(bsz, ck, -1), (0, 2, 1))
    sim = jnp.einsum("bqc,blc->bql", query, key, precision=hp) * (ck ** -0.5)
    sim = jax.nn.softmax(sim, axis=-1)
    context = jnp.einsum("bql,blc->bqc", sim, value, precision=hp)
    context = jnp.transpose(context, (0, 2, 1)).reshape(bsz, ck, h, w)
    att = conv1x1(context, p["w_W"], p["b_W"])
    cat = jnp.concatenate([att, x], axis=1)
    out = conv1x1(cat, p["w_f"], p["b_f"])
    out = jnp.maximum(bn(out, p["bn_f_g"], p["bn_f_b"],
                         p["bn_f_m"], p["bn_f_v"]), 0.0)
    return out


# ---------------------------------- main ------------------------------------

if __name__ == "__main__":
    bsz, cf, h, w = 2, 8, 16, 16            # in_channels=8, ratio=2 -> Ck=4
    ck = cf // 2

    keys = iter(jax.random.split(jax.random.PRNGKey(0), 40))

    def rnd(shape, scl=0.2):
        return jax.random.normal(next(keys), shape, jnp.float32) * scl

    x = jax.random.normal(next(keys), (bsz, cf, h, w), jnp.float32)

    def spp_params():
        # Dilated 3x3 convs + shared 1x1; biases zeroed like the module init.
        return {
            "w_d1": rnd((ck, ck, 3, 3)), "b_d1": jnp.zeros((ck,), jnp.float32),
            "w_d2": rnd((ck, ck, 3, 3)), "b_d2": jnp.zeros((ck,), jnp.float32),
            "w_d3": rnd((ck, ck, 3, 3)), "b_d3": jnp.zeros((ck,), jnp.float32),
            "w_1x1": rnd((ck, ck, 1, 1)), "b_1x1": jnp.zeros((ck,), jnp.float32),
        }

    params = {
        "w_fval": rnd((ck, cf, 1, 1)), "b_fval": rnd((ck,), 0.1),
        "w_fkey": rnd((ck, cf, 1, 1)), "b_fkey": rnd((ck,), 0.1),
        "bn_k_g": 1.0 + rnd((ck,), 0.1), "bn_k_b": rnd((ck,), 0.1),
        "bn_k_m": rnd((ck,), 0.1),
        "bn_k_v": 1.0 + jnp.abs(rnd((ck,), 0.1)),
        "spp_v": spp_params(),
        "spp_k": spp_params(),
        # W is zero-initialised in the module; use random values here so the
        # attention path is actually exercised by the numeric check.
        "w_W": rnd((cf, ck, 1, 1)), "b_W": rnd((cf,), 0.1),
        "w_f": rnd((cf, 2 * cf, 1, 1)), "b_f": rnd((cf,), 0.1),
        "bn_f_g": 1.0 + rnd((cf,), 0.1), "bn_f_b": rnd((cf,), 0.1),
        "bn_f_m": rnd((cf,), 0.1),
        "bn_f_v": 1.0 + jnp.abs(rnd((cf,), 0.1)),
    }

    out = jax.jit(hifa_forward)(x, params)
    out = jax.block_until_ready(out)
    assert out.shape == (bsz, cf, h, w), out.shape

    ref = _ref_hifa(x, params)
    # Tolerance loosened slightly vs the exact-division version because the
    # softmax denominator now uses pl.reciprocal(approx=True) on the EUP.
    if not bool(jnp.allclose(out, ref, atol=5e-3, rtol=5e-3)):
        raise AssertionError(
            f"mismatch: max abs err = {float(jnp.max(jnp.abs(out - ref)))}")

    print("KERNEL_OK")
</pallas_src>

<mosaic_0001>
module attributes {stable_mosaic.version = 11 : i64} {
  func.func @_spp_branch_kernel(%arg0: i32, %arg1: memref<8x512xf32, #tpu.memory_space<vmem>>, %arg2: memref<1x4x8xf32, #tpu.memory_space<vmem>>, %arg3: memref<1x4x36xf32, #tpu.memory_space<vmem>>, %arg4: memref<1x4x36xf32, #tpu.memory_space<vmem>>, %arg5: memref<1x4x36xf32, #tpu.memory_space<vmem>>, %arg6: memref<1x4x36xf32, #tpu.memory_space<vmem>>, %arg7: memref<1x4x4xf32, #tpu.memory_space<vmem>>, %arg8: memref<1x4x6xf32, #tpu.memory_space<vmem>>, %arg9: memref<27x512xf32, #tpu.memory_space<vmem>>, %arg10: memref<1x4x512xf32, #tpu.memory_space<vmem>>, %arg11: memref<1x4x512xf32, #tpu.memory_space<vmem>>, %arg12: memref<4x768xf32, #tpu.memory_space<vmem>>, %arg13: memref<36x512xf32, #tpu.memory_space<vmem>>) attributes {dimension_semantics = [#tpu.dimension_semantics<parallel>], iteration_bounds = array<i64: 2>, scalar_prefetch = 0 : i64, scratch_operands = 2 : i64, tpu.core_type = #tpu.core_type<tc>, window_params = [{pipeline_mode = #tpu.pipeline_mode<synchronous>, transform_indices = @transform_0, window_bounds = array<i64: 8, 512>}, {transform_indices = @transform_1, window_bounds = array<i64: 1, 4, 8>}, {transform_indices = @transform_2, window_bounds = array<i64: 1, 4, 36>}, {transform_indices = @transform_3, window_bounds = array<i64: 1, 4, 36>}, {transform_indices = @transform_4, window_bounds = array<i64: 1, 4, 36>}, {transform_indices = @transform_5, window_bounds = array<i64: 1, 4, 36>}, {transform_indices = @transform_6, window_bounds = array<i64: 1, 4, 4>}, {transform_indices = @transform_7, window_bounds = array<i64: 1, 4, 6>}, {pipeline_mode = #tpu.pipeline_mode<synchronous>, transform_indices = @transform_8, window_bounds = array<i64: 27, 512>}, {transform_indices = @transform_9, window_bounds = array<i64: 1, 4, 512>}, {transform_indices = @transform_10, window_bounds = array<i64: 1, 4, 512>}]} {
    %c0 = arith.constant 0 : index
    %c0_0 = arith.constant 0 : index
    %c0_1 = arith.constant 0 : index
    %0 = vector.load %arg8[%c0, %c0_0, %c0_1] : memref<1x4x6xf32, #tpu.memory_space<vmem>>, vector<1x4x6xf32>
    %1 = vector.shape_cast %0 : vector<1x4x6xf32> to vector<4x6xf32>
    %c0_2 = arith.constant 0 : index
    %c0_3 = arith.constant 0 : index
    %c0_4 = arith.constant 0 : index
    %2 = vector.load %arg2[%c0_2, %c0_3, %c0_4] : memref<1x4x8xf32, #tpu.memory_space<vmem>>, vector<1x4x8xf32>
    %3 = vector.shape_cast %2 : vector<1x4x8xf32> to vector<4x8xf32>
    %c0_5 = arith.constant 0 : index
    %c0_6 = arith.constant 0 : index
    %4 = vector.load %arg1[%c0_5, %c0_6] : memref<8x512xf32, #tpu.memory_space<vmem>>, vector<8x512xf32>
    %cst = arith.constant dense<0.000000e+00> : vector<4x512xf32>
    %5 = tpu.matmul %3, %4, %cst {dimension_numbers = #tpu.dot_dimension_numbers<[1], [0], [0], [1], [0, 0, 1, 1], [], []>} : vector<4x8xf32>, vector<8x512xf32>, vector<4x512xf32> -> vector<4x512xf32>
    %6 = vector.extract_strided_slice %1 {offsets = [0, 0], sizes = [4, 1], strides = [1, 1]} : vector<4x6xf32> to vector<4x1xf32>
    %7 = vector.broadcast %6 : vector<4x1xf32> to vector<4x512xf32>
    %8 = arith.addf %5, %7 : vector<4x512xf32>
    %c0_i32 = arith.constant 0 : i32
    %9 = arith.cmpi eq, %arg0, %c0_i32 : i32
    %10 = arith.extui %9 : i1 to i32
    %11 = arith.sitofp %10 : i32 to f32
    %12 = vector.broadcast %11 : f32 to vector<4x512xf32>
    %13 = arith.mulf %8, %12 : vector<4x512xf32>
    %14 = arith.maximumf %8, %13 : vector<4x512xf32>
    %c0_7 = arith.constant 0 : index
    %c0_8 = arith.constant 0 : index
    %c0_9 = arith.constant 0 : index
    %15 = vector.load %arg10[%c0_7, %c0_8, %c0_9] : memref<1x4x512xf32, #tpu.memory_space<vmem>>, vector<1x4x512xf32>
    %16 = vector.shape_cast %15 : vector<1x4x512xf32> to vector<4x512xf32>
    %17 = vector.shape_cast %14 : vector<4x512xf32> to vector<1x4x512xf32>
    tpu.vector_store %arg10[%c0_7, %c0_8, %c0_9], %17 {strides = array<i32>} : memref<1x4x512xf32, #tpu.memory_space<vmem>>, vector<1x4x512xf32>,
    %cst_10 = arith.constant 0.000000e+00 : f32
    %18 = vector.broadcast %cst_10 : f32 to vector<4x128xf32>
    %c0_11 = arith.constant 0 : index
    %c0_12 = arith.constant 0 : index
    %19 = vector.load %arg12[%c0_11, %c0_12] : memref<4x768xf32, #tpu.memory_space<vmem>>, vector<4x128xf32>
    tpu.vector_store %arg12[%c0_11, %c0_12], %18 {strides = array<i32>} : memref<4x768xf32, #tpu.memory_space<vmem>>, vector<4x128xf32>,
    %cst_13 = arith.constant 0.000000e+00 : f32
    %20 = vector.broadcast %cst_13 : f32 to vector<4x128xf32>
    %c0_14 = arith.constant 0 : index
    %c640 = arith.constant 640 : index
    %21 = vector.load %arg12[%c0_14, %c640] : memref<4x768xf32, #tpu.memory_space<vmem>>, vector<4x128xf32>
    tpu.vector_store %arg12[%c0_14, %c640], %20 {strides = array<i32>} : memref<4x768xf32, #tpu.memory_space<vmem>>, vector<4x128xf32>,
    %c0_15 = arith.constant 0 : index
    %c128 = arith.constant 128 : index
    %22 = vector.load %arg12[%c0_15, %c128] : memref<4x768xf32, #tpu.memory_space<vmem>>, vector<4x512xf32>
    tpu.vector_store %arg12[%c0_15, %c128], %14 {strides = array<i32>} : memref<4x768xf32, #tpu.memory_space<vmem>>, vector<4x512xf32>,
    %c0_16 = arith.constant 0 : index
    %c111 = arith.constant 111 : index
    %23 = vector.load %arg12[%c0_16, %c111] : memref<4x768xf32, #tpu.memory_space<vmem>>, vector<4x512xf32>
    %c0_17 = arith.constant 0 : index
    %c0_18 = arith.constant 0 : index
    %24 = vector.load %arg9[%c0_17, %c0_18] : memref<27x512xf32, #tpu.memory_space<vmem>>, vector<1x512xf32>
    %25 = vector.broadcast %24 : vector<1x512xf32> to vector<4x512xf32>
    %26 = arith.mulf %23, %25 : vector<4x512xf32>
    %c0_19 = arith.constant 0 : index
    %c0_20 = arith.constant 0 : index
    %27 = vector.load %arg13[%c0_19, %c0_20] : memref<36x512xf32, #tpu.memory_space<vmem>>, vector<4x512xf32>
    tpu.vector_store %arg13[%c0_19, %c0_20], %26 {strides = array<i32>} : memref<36x512xf32, #tpu.memory_space<vmem>>, vector<4x512xf32>,
    %c0_21 = arith.constant 0 : index
    %c112 = arith.constant 112 : index
    %28 = vector.load %arg12[%c0_21, %c112] : memref<4x768xf32, #tpu.memory_space<vmem>>, vector<4x512xf32>
    %c1 = arith.constant 1 : index
    %c0_22 = arith.constant 0 : index
    %29 = vector.load %arg9[%c1, %c0_22] : memref<27x512xf32, #tpu.memory_space<vmem>>, vector<1x512xf32>
    %30 = vector.broadcast %29 : vector<1x512xf32> to vector<4x512xf32>
    %31 = arith.mulf %28, %30 : vector<4x512xf32>
    %c4 = arith.constant 4 : index
    %c0_23 = arith.constant 0 : index
    %32 = vector.load %arg13[%c4, %c0_23] : memref<36x512xf32, #tpu.memory_space<vmem>>, vector<4x512xf32>
    tpu.vector_store %arg13[%c4, %c0_23], %31 {strides = array<i32>} : memref<36x512xf32, #tpu.memory_space<vmem>>, vector<4x512xf32>,
    %c0_24 = arith.constant 0 : index
    %c113 = arith.constant 113 : index
    %33 = vector.load %arg12[%c0_24, %c113] : memref<4x768xf32, #tpu.memory_space<vmem>>, vector<4x512xf32>
    %c2 = arith.constant 2 : index
    %c0_25 = arith.constant 0 : index
    %34 = vector.load %arg9[%c2, %c0_25] : memref<27x512xf32, #tpu.memory_space<vmem>>, vector<1x512xf32>
    %35 = vector.broadcast %34 : vector<1x512xf32> to vector<4x512xf32>
    %36 = arith.mulf %33, %35 : vector<4x512xf32>
    %c8 = arith.constant 8 : index
    %c0_26 = arith.constant 0 : index
    %37 = vector.load %arg13[%c8, %c0_26] : memref<36x512xf32, #tpu.memory_space<vmem>>, vector<4x512xf32>
    tpu.vector_store %arg13[%c8, %c0_26], %36 {strides = array<i32>} : memref<36x512xf32, #tpu.memory_space<vmem>>, vector<4x512xf32>,
    %c0_27 = arith.constant 0 : index
    %c127 = arith.constant 127 : index
    %38 = vector.load %arg12[%c0_27, %c127] : memref<4x768xf32, #tpu.memory_space<vmem>>, vector<4x512xf32>
    %c3 = arith.constant 3 : index
    %c0_28 = arith.constant 0 : index
    %39 = vector.load %arg9[%c3, %c0_28] : memref<27x512xf32, #tpu.memory_space<vmem>>, vector<1x512xf32>
    %40 = vector.broadcast %39 : vector<1x512xf32> to vector<4x512xf32>
    %41 = arith.mulf %38, %40 : vector<4x512xf32>
    %c12 = arith.constant 12 : index
    %c0_29 = arith.constant 0 : index
    %42 = vector.load %arg13[%c12, %c0_29] : memref<36x512xf32, #tpu.memory_space<vmem>>, vector<4x512xf32>
    tpu.vector_store %arg13[%c12, %c0_29], %41 {strides = array<i32>} : memref<36x512xf32, #tpu.memory_space<vmem>>, vector<4x512xf32>,
    %c0_30 = arith.constant 0 : index
    %c128_31 = arith.constant 128 : index
    %43 = vector.load %arg12[%c0_30, %c128_31] : memref<4x768xf32, #tpu.memory_space<vmem>>, vector<4x512xf32>
    %c4_32 = arith.constant 4 : index
    %c0_33 = arith.constant 0 : index
    %44 = vector.load %arg9[%c4_32, %c0_33] : memref<27x512xf32, #tpu.memory_space<vmem>>, vector<1x512xf32>
    %45 = vector.broadcast %44 : vector<1x512xf32> to vector<4x512xf32>
    %46 = arith.mulf %43, %45 : vector<4x512xf32>
    %c16 = arith.constant 16 : index
    %c0_34 = arith.constant 0 : index
    %47 = vector.load %arg13[%c16, %c0_34] : memref<36x512xf32, #tpu.memory_space<vmem>>, vector<4x512xf32>
    tpu.vector_store %arg13[%c16, %c0_34], %46 {strides = array<i32>} : memref<36x512xf32, #tpu.memory_space<vmem>>, vector<4x512xf32>,
    %c0_35 = arith.constant 0 : index
    %c129 = arith.constant 129 : index
    %48 = vector.load %arg12[%c0_35, %c129] : memref<4x768xf32, #tpu.memory_space<vmem>>, vector<4x512xf32>
    %c5 = arith.constant 5 : index
    %c0_36 = arith.constant 0 : index
    %49 = vector.load %arg9[%c5, %c0_36] : memref<27x512xf32, #tpu.memory_space<vmem>>, vector<1x512xf32>
    %50 = vector.broadcast %49 : vector<1x512xf32> to vector<4x512xf32>
    %51 = arith.mulf %48, %50 : vector<4x512xf32>
    %c20 = arith.constant 20 : index
    %c0_37 = arith.constant 0 : index
    %52 = vector.load %arg13[%c20, %c0_37] : memref<36x512xf32, #tpu.memory_space<vmem>>, vector<4x512xf32>
    tpu.vector_store %arg13[%c20, %c0_37], %51 {strides = array<i32>} : memref<36x512xf32, #tpu.memory_space<vmem>>, vector<4x512xf32>,
    %c0_38 = arith.constant 0 : index
    %c143 = arith.constant 143 : index
    %53 = vector.load %arg12[%c0_38, %c143] : memref<4x768xf32, #tpu.memory_space<vmem>>, vector<4x512xf32>
    %c6 = arith.constant 6 : index
    %c0_39 = arith.constant 0 : index
    %54 = vector.load %arg9[%c6, %c0_39] : memref<27x512xf32, #tpu.memory_space<vmem>>, vector<1x512xf32>
    %55 = vector.broadcast %54 : vector<1x512xf32> to vector<4x512xf32>
    %56 = arith.mulf %53, %55 : vector<4x512xf32>
    %c24 = arith.constant 24 : index
    %c0_40 = arith.constant 0 : index
    %57 = vector.load %arg13[%c24, %c0_40] : memref<36x512xf32, #tpu.memory_space<vmem>>, vector<4x512xf32>
    tpu.vector_store %arg13[%c24, %c0_40], %56 {strides = array<i32>} : memref<36x512xf32, #tpu.memory_space<vmem>>, vector<4x512xf32>,
    %c0_41 = arith.constant 0 : index
    %c144 = arith.constant 144 : index
    %58 = vector.load %arg12[%c0_41, %c144] : memref<4x768xf32, #tpu.memory_space<vmem>>, vector<4x512xf32>
    %c7 = arith.constant 7 : index
    %c0_42 = arith.constant 0 : index
    %59 = vector.load %arg9[%c7, %c0_42] : memref<27x512xf32, #tpu.memory_space<vmem>>, vector<1x512xf32>
    %60 = vector.broadcast %59 : vector<1x512xf32> to vector<4x512xf32>
    %61 = arith.mulf %58, %60 : vector<4x512xf32>
    %c28 = arith.constant 28 : index
    %c0_43 = arith.constant 0 : index
    %62 = vector.load %arg13[%c28, %c0_43] : memref<36x512xf32, #tpu.memory_space<vmem>>, vector<4x512xf32>
    tpu.vector_store %arg13[%c28, %c0_43], %61 {strides = array<i32>} : memref<36x512xf32, #tpu.memory_space<vmem>>, vector<4x512xf32>,
    %c0_44 = arith.constant 0 : index
    %c145 = arith.constant 145 : index
    %63 = vector.load %arg12[%c0_44, %c145] : memref<4x768xf32, #tpu.memory_space<vmem>>, vector<4x512xf32>
    %c8_45 = arith.constant 8 : index
    %c0_46 = arith.constant 0 : index
    %64 = vector.load %arg9[%c8_45, %c0_46] : memref<27x512xf32, #tpu.memory_space<vmem>>, vector<1x512xf32>
    %65 = vector.broadcast %64 : vector<1x512xf32> to vector<4x512xf32>
    %66 = arith.mulf %63, %65 : vector<4x512xf32>
    %c32 = arith.constant 32 : index
    %c0_47 = arith.constant 0 : index
    %67 = vector.load %arg13[%c32, %c0_47] : memref<36x512xf32, #tpu.memory_space<vmem>>, vector<4x512xf32>
    tpu.vector_store %arg13[%c32, %c0_47], %66 {strides = array<i32>} : memref<36x512xf32, #tpu.memory_space<vmem>>, vector<4x512xf32>,
    %c0_48 = arith.constant 0 : index
    %c0_49 = arith.constant 0 : index
    %c0_50 = arith.constant 0 : index
    %68 = vector.load %arg3[%c0_48, %c0_49, %c0_50] : memref<1x4x36xf32, #tpu.memory_space<vmem>>, vector<1x4x36xf32>
    %69 = vector.shape_cast %68 : vector<1x4x36xf32> to vector<4x36xf32>
    %c0_51 = arith.constant 0 : index
    %c0_52 = arith.constant 0 : index
    %70 = vector.load %arg13[%c0_51, %c0_52] : memref<36x512xf32, #tpu.memory_space<vmem>>, vector<36x512xf32>
    %cst_53 = arith.constant dense<0.000000e+00> : vector<4x512xf32>
    %71 = tpu.matmul %69, %70, %cst_53 {dimension_numbers = #tpu.dot_dimension_numbers<[1], [0], [0], [1], [0, 0, 1, 1], [], []>} : vector<4x36xf32>, vector<36x512xf32>, vector<4x512xf32> -> vector<4x512xf32>
    %72 = vector.extract_strided_slice %1 {offsets = [0, 1], sizes = [4, 1], strides = [1, 1]} : vector<4x6xf32> to vector<4x1xf32>
    %73 = vector.broadcast %72 : vector<4x1xf32> to vector<4x512xf32>
    %74 = arith.addf %71, %73 : vector<4x512xf32>
    %c0_54 = arith.constant 0 : index
    %c128_55 = arith.constant 128 : index
    %75 = vector.load %arg12[%c0_54, %c128_55] : memref<4x768xf32, #tpu.memory_space<vmem>>, vector<4x512xf32>
    tpu.vector_store %arg12[%c0_54, %c128_55], %14 {strides = array<i32>} : memref<4x768xf32, #tpu.memory_space<vmem>>, vector<4x512xf32>,
    %c0_56 = arith.constant 0 : index
    %c77 = arith.constant 77 : index
    %76 = vector.load %arg12[%c0_56, %c77] : memref<4x768xf32, #tpu.memory_space<vmem>>, vector<4x512xf32>
    %c9 = arith.constant 9 : index
    %c0_57 = arith.constant 0 : index
    %77 = vector.load %arg9[%c9, %c0_57] : memref<27x512xf32, #tpu.memory_space<vmem>>, vector<1x512xf32>
    %78 = vector.broadcast %77 : vector<1x512xf32> to vector<4x512xf32>
    %79 = arith.mulf %76, %78 : vector<4x512xf32>
    %c0_58 = arith.constant 0 : index
    %c0_59 = arith.constant 0 : index
    %80 = vector.load %arg13[%c0_58, %c0_59] : memref<36x512xf32, #tpu.memory_space<vmem>>, vector<4x512xf32>
    tpu.vector_store %arg13[%c0_58, %c0_59], %79 {strides = array<i32>} : memref<36x512xf32, #tpu.memory_space<vmem>>, vector<4x512xf32>,
    %c0_60 = arith.constant 0 : index
    %c80 = arith.constant 80 : index
    %81 = vector.load %arg12[%c0_60, %c80] : memref<4x768xf32, #tpu.memory_space<vmem>>, vector<4x512xf32>
    %c10 = arith.constant 10 : index
    %c0_61 = arith.constant 0 : index
    %82 = vector.load %arg9[%c10, %c0_61] : memref<27x512xf32, #tpu.memory_space<vmem>>, vector<1x512xf32>
    %83 = vector.broadcast %82 : vector<1x512xf32> to vector<4x512xf32>
    %84 = arith.mulf %81, %83 : vector<4x512xf32>
    %c4_62 = arith.constant 4 : index
    %c0_63 = arith.constant 0 : index
    %85 = vector.load %arg13[%c4_62, %c0_63] : memref<36x512xf32, #tpu.memory_space<vmem>>, vector<4x512xf32>
    tpu.vector_store %arg13[%c4_62, %c0_63], %84 {strides = array<i32>} : memref<36x512xf32, #tpu.memory_space<vmem>>, vector<4x512xf32>,
    %c0_64 = arith.constant 0 : index
    %c83 = arith.constant 83 : index
    %86 = vector.load %arg12[%c0_64, %c83] : memref<4x768xf32, #tpu.memory_space<vmem>>, vector<4x512xf32>
    %c11 = arith.constant 11 : index
    %c0_65 = arith.constant 0 : index
    %87 = vector.load %arg9[%c11, %c0_65] : memref<27x512xf32, #tpu.memory_space<vmem>>, vector<1x512xf32>
    %88 = vector.broadcast %87 : vector<1x512xf32> to vector<4x512xf32>
    %89 = arith.mulf %86, %88 : vector<4x512xf32>
    %c8_66 = arith.constant 8 : index
    %c0_67 = arith.constant 0 : index
    %90 = vector.load %arg13[%c8_66, %c0_67] : memref<36x512xf32, #tpu.memory_space<vmem>>, vector<4x512xf32>
    tpu.vector_store %arg13[%c8_66, %c0_67], %89 {strides = array<i32>} : memref<36x512xf32, #tpu.memory_space<vmem>>, vector<4x512xf32>,
    %c0_68 = arith.constant 0 : index
    %c125 = arith.constant 125 : index
    %91 = vector.load %arg12[%c0_68, %c125] : memref<4x768xf32, #tpu.memory_space<vmem>>, vector<4x512xf32>
    %c12_69 = arith.constant 12 : index
    %c0_70 = arith.constant 0 : index
    %92 = vector.load %arg9[%c12_69, %c0_70] : memref<27x512xf32, #tpu.memory_space<vmem>>, vector<1x512xf32>
    %93 = vector.broadcast %92 : vector<1x512xf32> to vector<4x512xf32>
    %94 = arith.mulf %91, %93 : vector<4x512xf32>
    %c12_71 = arith.constant 12 : index
    %c0_72 = arith.constant 0 : index
    %95 = vector.load %arg13[%c12_71, %c0_72] : memref<36x512xf32, #tpu.memory_space<vmem>>, vector<4x512xf32>
    tpu.vector_store %arg13[%c12_71, %c0_72], %94 {strides = array<i32>} : memref<36x512xf32, #tpu.memory_space<vmem>>, vector<4x512xf32>,
    %c0_73 = arith.constant 0 : index
    %c128_74 = arith.constant 128 : index
    %96 = vector.load %arg12[%c0_73, %c128_74] : memref<4x768xf32, #tpu.memory_space<vmem>>, vector<4x512xf32>
    %c13 = arith.constant 13 : index
    %c0_75 = arith.constant 0 : index
    %97 = vector.load %arg9[%c13, %c0_75] : memref<27x512xf32, #tpu.memory_space<vmem>>, vector<1x512xf32>
    %98 = vector.broadcast %97 : vector<1x512xf32> to vector<4x512xf32>
    %99 = arith.mulf %96, %98 : vector<4x512xf32>
    %c16_76 = arith.constant 16 : index
    %c0_77 = arith.constant 0 : index
    %100 = vector.load %arg13[%c16_76, %c0_77] : memref<36x512xf32, #tpu.memory_space<vmem>>, vector<4x512xf32>
    tpu.vector_store %arg13[%c16_76, %c0_77], %99 {strides = array<i32>} : memref<36x512xf32, #tpu.memory_space<vmem>>, vector<4x512xf32>,
    %c0_78 = arith.constant 0 : index
    %c131 = arith.constant 131 : index
    %101 = vector.load %arg12[%c0_78, %c131] : memref<4x768xf32, #tpu.memory_space<vmem>>, vector<4x512xf32>
    %c14 = arith.constant 14 : index
    %c0_79 = arith.constant 0 : index
    %102 = vector.load %arg9[%c14, %c0_79] : memref<27x512xf32, #tpu.memory_space<vmem>>, vector<1x512xf32>
    %103 = vector.broadcast %102 : vector<1x512xf32> to vector<4x512xf32>
    %104 = arith.mulf %101, %103 : vector<4x512xf32>
    %c20_80 = arith.constant 20 : index
    %c0_81 = arith.constant 0 : index
    %105 = vector.load %arg13[%c20_80, %c0_81] : memref<36x512xf32, #tpu.memory_space<vmem>>, vector<4x512xf32>
    tpu.vector_store %arg13[%c20_80, %c0_81], %104 {strides = array<i32>} : memref<36x512xf32, #tpu.memory_space<vmem>>, vector<4x512xf32>,
    %c0_82 = arith.constant 0 : index
    %c173 = arith.constant 173 : index
    %106 = vector.load %arg12[%c0_82, %c173] : memref<4x768xf32, #tpu.memory_space<vmem>>, vector<4x512xf32>
    %c15 = arith.constant 15 : index
    %c0_83 = arith.constant 0 : index
    %107 = vector.load %arg9[%c15, %c0_83] : memref<27x512xf32, #tpu.memory_space<vmem>>, vector<1x512xf32>
    %108 = vector.broadcast %107 : vector<1x512xf32> to vector<4x512xf32>
    %109 = arith.mulf %106, %108 : vector<4x512xf32>
    %c24_84 = arith.constant 24 : index
    %c0_85 = arith.constant 0 : index
    %110 = vector.load %arg13[%c24_84, %c0_85] : memref<36x512xf32, #tpu.memory_space<vmem>>, vector<4x512xf32>
    tpu.vector_store %arg13[%c24_84, %c0_85], %109 {strides = array<i32>} : memref<36x512xf32, #tpu.memory_space<vmem>>, vector<4x512xf32>,
    %c0_86 = arith.constant 0 : index
    %c176 = arith.constant 176 : index
    %111 = vector.load %arg12[%c0_86, %c176] : memref<4x768xf32, #tpu.memory_space<vmem>>, vector<4x512xf32>
    %c16_87 = arith.constant 16 : index
    %c0_88 = arith.constant 0 : index
    %112 = vector.load %arg9[%c16_87, %c0_88] : memref<27x512xf32, #tpu.memory_space<vmem>>, vector<1x512xf32>
    %113 = vector.broadcast %112 : vector<1x512xf32> to vector<4x512xf32>
    %114 = arith.mulf %111, %113 : vector<4x512xf32>
    %c28_89 = arith.constant 28 : index
    %c0_90 = arith.constant 0 : index
    %115 = vector.load %arg13[%c28_89, %c0_90] : memref<36x512xf32, #tpu.memory_space<vmem>>, vector<4x512xf32>
    tpu.vector_store %arg13[%c28_89, %c0_90], %114 {strides = array<i32>} : memref<36x512xf32, #tpu.memory_space<vmem>>, vector<4x512xf32>,
    %c0_91 = arith.constant 0 : index
    %c179 = arith.constant 179 : index
    %116 = vector.load %arg12[%c0_91, %c179] : memref<4x768xf32, #tpu.memory_space<vmem>>, vector<4x512xf32>
    %c17 = arith.constant 17 : index
    %c0_92 = arith.constant 0 : index
    %117 = vector.load %arg9[%c17, %c0_92] : memref<27x512xf32, #tpu.memory_space<vmem>>, vector<1x512xf32>
    %118 = vector.broadcast %117 : vector<1x512xf32> to vector<4x512xf32>
    %119 = arith.mulf %116, %118 : vector<4x512xf32>
    %c32_93 = arith.constant 32 : index
    %c0_94 = arith.constant 0 : index
    %120 = vector.load %arg13[%c32_93, %c0_94] : memref<36x512xf32, #tpu.memory_space<vmem>>, vector<4x512xf32>
    tpu.vector_store %arg13[%c32_93, %c0_94], %119 {strides = array<i32>} : memref<36x512xf32, #tpu.memory_space<vmem>>, vector<4x512xf32>,
    %c0_95 = arith.constant 0 : index
    %c0_96 = arith.constant 0 : index
    %c0_97 = arith.constant 0 : index
    %121 = vector.load %arg5[%c0_95, %c0_96, %c0_97] : memref<1x4x36xf32, #tpu.memory_space<vmem>>, vector<1x4x36xf32>
    %122 = vector.shape_cast %121 : vector<1x4x36xf32> to vector<4x36xf32>
    %c0_98 = arith.constant 0 : index
    %c0_99 = arith.constant 0 : index
    %123 = vector.load %arg13[%c0_98, %c0_99] : memref<36x512xf32, #tpu.memory_space<vmem>>, vector<36x512xf32>
    %cst_100 = arith.constant dense<0.000000e+00> : vector<4x512xf32>
    %124 = tpu.matmul %122, %123, %cst_100 {dimension_numbers = #tpu.dot_dimension_numbers<[1], [0], [0], [1], [0, 0, 1, 1], [], []>} : vector<4x36xf32>, vector<36x512xf32>, vector<4x512xf32> -> vector<4x512xf32>
    %125 = vector.extract_strided_slice %1 {offsets = [0, 3], sizes = [4, 1], strides = [1, 1]} : vector<4x6xf32> to vector<4x1xf32>
    %126 = vector.broadcast %125 : vector<4x1xf32> to vector<4x512xf32>
    %127 = arith.addf %124, %126 : vector<4x512xf32>
    %c0_101 = arith.constant 0 : index
    %c128_102 = arith.constant 128 : index
    %128 = vector.load %arg12[%c0_101, %c128_102] : memref<4x768xf32, #tpu.memory_space<vmem>>, vector<4x512xf32>
    tpu.vector_store %arg12[%c0_101, %c128_102], %74 {strides = array<i32>} : memref<4x768xf32, #tpu.memory_space<vmem>>, vector<4x512xf32>,
    %c0_103 = arith.constant 0 : index
    %c77_104 = arith.constant 77 : index
    %129 = vector.load %arg12[%c0_103, %c77_104] : memref<4x768xf32, #tpu.memory_space<vmem>>, vector<4x512xf32>
    %c9_105 = arith.constant 9 : index
    %c0_106 = arith.constant 0 : index
    %130 = vector.load %arg9[%c9_105, %c0_106] : memref<27x512xf32, #tpu.memory_space<vmem>>, vector<1x512xf32>
    %131 = vector.broadcast %130 : vector<1x512xf32> to vector<4x512xf32>
    %132 = arith.mulf %129, %131 : vector<4x512xf32>
    %c0_107 = arith.constant 0 : index
    %c0_108 = arith.constant 0 : index
    %133 = vector.load %arg13[%c0_107, %c0_108] : memref<36x512xf32, #tpu.memory_space<vmem>>, vector<4x512xf32>
    tpu.vector_store %arg13[%c0_107, %c0_108], %132 {strides = array<i32>} : memref<36x512xf32, #tpu.memory_space<vmem>>, vector<4x512xf32>,
    %c0_109 = arith.constant 0 : index
    %c80_110 = arith.constant 80 : index
    %134 = vector.load %arg12[%c0_109, %c80_110] : memref<4x768xf32, #tpu.memory_space<vmem>>, vector<4x512xf32>
    %c10_111 = arith.constant 10 : index
    %c0_112 = arith.constant 0 : index
    %135 = vector.load %arg9[%c10_111, %c0_112] : memref<27x512xf32, #tpu.memory_space<vmem>>, vector<1x512xf32>
    %136 = vector.broadcast %135 : vector<1x512xf32> to vector<4x512xf32>
    %137 = arith.mulf %134, %136 : vector<4x512xf32>
    %c4_113 = arith.constant 4 : index
    %c0_114 = arith.constant 0 : index
    %138 = vector.load %arg13[%c4_113, %c0_114] : memref<36x512xf32, #tpu.memory_space<vmem>>, vector<4x512xf32>
    tpu.vector_store %arg13[%c4_113, %c0_114], %137 {strides = array<i32>} : memref<36x512xf32, #tpu.memory_space<vmem>>, vector<4x512xf32>,
    %c0_115 = arith.constant 0 : index
    %c83_116 = arith.constant 83 : index
    %139 = vector.load %arg12[%c0_115, %c83_116] : memref<4x768xf32, #tpu.memory_space<vmem>>, vector<4x512xf32>
    %c11_117 = arith.constant 11 : index
    %c0_118 = arith.constant 0 : index
    %140 = vector.load %arg9[%c11_117, %c0_118] : memref<27x512xf32, #tpu.memory_space<vmem>>, vector<1x512xf32>
    %141 = vector.broadcast %140 : vector<1x512xf32> to vector<4x512xf32>
    %142 = arith.mulf %139, %141 : vector<4x512xf32>
    %c8_119 = arith.constant 8 : index
    %c0_120 = arith.constant 0 : index
    %143 = vector.load %arg13[%c8_119, %c0_120] : memref<36x512xf32, #tpu.memory_space<vmem>>, vector<4x512xf32>
    tpu.vector_store %arg13[%c8_119, %c0_120], %142 {strides = array<i32>} : memref<36x512xf32, #tpu.memory_space<vmem>>, vector<4x512xf32>,
    %c0_121 = arith.constant 0 : index
    %c125_122 = arith.constant 125 : index
    %144 = vector.load %arg12[%c0_121, %c125_122] : memref<4x768xf32, #tpu.memory_space<vmem>>, vector<4x512xf32>
    %c12_123 = arith.constant 12 : index
    %c0_124 = arith.constant 0 : index
    %145 = vector.load %arg9[%c12_123, %c0_124] : memref<27x512xf32, #tpu.memory_space<vmem>>, vector<1x512xf32>
    %146 = vector.broadcast %145 : vector<1x512xf32> to vector<4x512xf32>
    %147 = arith.mulf %144, %146 : vector<4x512xf32>
    %c12_125 = arith.constant 12 : index
    %c0_126 = arith.constant 0 : index
    %148 = vector.load %arg13[%c12_125, %c0_126] : memref<36x512xf32, #tpu.memory_space<vmem>>, vector<4x512xf32>
    tpu.vector_store %arg13[%c12_125, %c0_126], %147 {strides = array<i32>} : memref<36x512xf32, #tpu.memory_space<vmem>>, vector<4x512xf32>,
    %c0_127 = arith.constant 0 : index
    %c128_128 = arith.constant 128 : index
    %149 = vector.load %arg12[%c0_127, %c128_128] : memref<4x768xf32, #tpu.memory_space<vmem>>, vector<4x512xf32>
    %c13_129 = arith.constant 13 : index
    %c0_130 = arith.constant 0 : index
    %150 = vector.load %arg9[%c13_129, %c0_130] : memref<27x512xf32, #tpu.memory_space<vmem>>, vector<1x512xf32>
    %151 = vector.broadcast %150 : vector<1x512xf32> to vector<4x512xf32>
    %152 = arith.mulf %149, %151 : vector<4x512xf32>
    %c16_131 = arith.constant 16 : index
    %c0_132 = arith.constant 0 : index
    %153 = vector.load %arg13[%c16_131, %c0_132] : memref<36x512xf32, #tpu.memory_space<vmem>>, vector<4x512xf32>
    tpu.vector_store %arg13[%c16_131, %c0_132], %152 {strides = array<i32>} : memref<36x512xf32, #tpu.memory_space<vmem>>, vector<4x512xf32>,
    %c0_133 = arith.constant 0 : index
    %c131_134 = arith.constant 131 : index
    %154 = vector.load %arg12[%c0_133, %c131_134] : memref<4x768xf32, #tpu.memory_space<vmem>>, vector<4x512xf32>
    %c14_135 = arith.constant 14 : index
    %c0_136 = arith.constant 0 : index
    %155 = vector.load %arg9[%c14_135, %c0_136] : memref<27x512xf32, #tpu.memory_space<vmem>>, vector<1x512xf32>
    %156 = vector.broadcast %155 : vector<1x512xf32> to vector<4x512xf32>
    %157 = arith.mulf %154, %156 : vector<4x512xf32>
    %c20_137 = arith.constant 20 : index
    %c0_138 = arith.constant 0 : index
    %158 = vector.load %arg13[%c20_137, %c0_138] : memref<36x512xf32, #tpu.memory_space<vmem>>, vector<4x512xf32>
    tpu.vector_store %arg13[%c20_137, %c0_138], %157 {strides = array<i32>} : memref<36x512xf32, #tpu.memory_space<vmem>>, vector<4x512xf32>,
    %c0_139 = arith.constant 0 : index
    %c173_140 = arith.constant 173 : index
    %159 = vector.load %arg12[%c0_139, %c173_140] : memref<4x768xf32, #tpu.memory_space<vmem>>, vector<4x512xf32>
    %c15_141 = arith.constant 15 : index
    %c0_142 = arith.constant 0 : index
    %160 = vector.load %arg9[%c15_141, %c0_142] : memref<27x512xf32, #tpu.memory_space<vmem>>, vector<1x512xf32>
    %161 = vector.broadcast %160 : vector<1x512xf32> to vector<4x512xf32>
    %162 = arith.mulf %159, %161 : vector<4x512xf32>
    %c24_143 = arith.constant 24 : index
    %c0_144 = arith.constant 0 : index
    %163 = vector.load %arg13[%c24_143, %c0_144] : memref<36x512xf32, #tpu.memory_space<vmem>>, vector<4x512xf32>
    tpu.vector_store %arg13[%c24_143, %c0_144], %162 {strides = array<i32>} : memref<36x512xf32, #tpu.memory_space<vmem>>, vector<4x512xf32>,
    %c0_145 = arith.constant 0 : index
    %c176_146 = arith.constant 176 : index
    %164 = vector.load %arg12[%c0_145, %c176_146] : memref<4x768xf32, #tpu.memory_space<vmem>>, vector<4x512xf32>
    %c16_147 = arith.constant 16 : index
    %c0_148 = arith.constant 0 : index
    %165 = vector.load %arg9[%c16_147, %c0_148] : memref<27x512xf32, #tpu.memory_space<vmem>>, vector<1x512xf32>
    %166 = vector.broadcast %165 : vector<1x512xf32> to vector<4x512xf32>
    %167 = arith.mulf %164, %166 : vector<4x512xf32>
    %c28_149 = arith.constant 28 : index
    %c0_150 = arith.constant 0 : index
    %168 = vector.load %arg13[%c28_149, %c0_150] : memref<36x512xf32, #tpu.memory_space<vmem>>, vector<4x512xf32>
    tpu.vector_store %arg13[%c28_149, %c0_150], %167 {strides = array<i32>} : memref<36x512xf32, #tpu.memory_space<vmem>>, vector<4x512xf32>,
    %c0_151 = arith.constant 0 : index
    %c179_152 = arith.constant 179 : index
    %169 = vector.load %arg12[%c0_151, %c179_152] : memref<4x768xf32, #tpu.memory_space<vmem>>, vector<4x512xf32>
    %c17_153 = arith.constant 17 : index
    %c0_154 = arith.constant 0 : index
    %170 = vector.load %arg9[%c17_153, %c0_154] : memref<27x512xf32, #tpu.memory_space<vmem>>, vector<1x512xf32>
    %171 = vector.broadcast %170 : vector<1x512xf32> to vector<4x512xf32>
    %172 = arith.mulf %169, %171 : vector<4x512xf32>
    %c32_155 = arith.constant 32 : index
    %c0_156 = arith.constant 0 : index
    %173 = vector.load %arg13[%c32_155, %c0_156] : memref<36x512xf32, #tpu.memory_space<vmem>>, vector<4x512xf32>
    tpu.vector_store %arg13[%c32_155, %c0_156], %172 {strides = array<i32>} : memref<36x512xf32, #tpu.memory_space<vmem>>, vector<4x512xf32>,
    %c0_157 = arith.constant 0 : index
    %c0_158 = arith.constant 0 : index
    %c0_159 = arith.constant 0 : index
    %174 = vector.load %arg4[%c0_157, %c0_158, %c0_159] : memref<1x4x36xf32, #tpu.memory_space<vmem>>, vector<1x4x36xf32>
    %175 = vector.shape_cast %174 : vector<1x4x36xf32> to vector<4x36xf32>
    %c0_160 = arith.constant 0 : index
    %c0_161 = arith.constant 0 : index
    %176 = vector.load %arg13[%c0_160, %c0_161] : memref<36x512xf32, #tpu.memory_space<vmem>>, vector<36x512xf32>
    %cst_162 = arith.constant dense<0.000000e+00> : vector<4x512xf32>
    %177 = tpu.matmul %175, %176, %cst_162 {dimension_numbers = #tpu.dot_dimension_numbers<[1], [0], [0], [1], [0, 0, 1, 1], [], []>} : vector<4x36xf32>, vector<36x512xf32>, vector<4x512xf32> -> vector<4x512xf32>
    %178 = vector.extract_strided_slice %1 {offsets = [0, 2], sizes = [4, 1], strides = [1, 1]} : vector<4x6xf32> to vector<4x1xf32>
    %179 = vector.broadcast %178 : vector<4x1xf32> to vector<4x512xf32>
    %180 = arith.addf %177, %179 : vector<4x512xf32>
    %c0_163 = arith.constant 0 : index
    %c128_164 = arith.constant 128 : index
    %181 = vector.load %arg12[%c0_163, %c128_164] : memref<4x768xf32, #tpu.memory_space<vmem>>, vector<4x512xf32>
    tpu.vector_store %arg12[%c0_163, %c128_164], %180 {strides = array<i32>} : memref<4x768xf32, #tpu.memory_space<vmem>>, vector<4x512xf32>,
    %c0_165 = arith.constant 0 : index
    %c43 = arith.constant 43 : index
    %182 = vector.load %arg12[%c0_165, %c43] : memref<4x768xf32, #tpu.memory_space<vmem>>, vector<4x512xf32>
    %c18 = arith.constant 18 : index
    %c0_166 = arith.constant 0 : index
    %183 = vector.load %arg9[%c18, %c0_166] : memref<27x512xf32, #tpu.memory_space<vmem>>, vector<1x512xf32>
    %184 = vector.broadcast %183 : vector<1x512xf32> to vector<4x512xf32>
    %185 = arith.mulf %182, %184 : vector<4x512xf32>
    %c0_167 = arith.constant 0 : index
    %c0_168 = arith.constant 0 : index
    %186 = vector.load %arg13[%c0_167, %c0_168] : memref<36x512xf32, #tpu.memory_space<vmem>>, vector<4x512xf32>
    tpu.vector_store %arg13[%c0_167, %c0_168], %185 {strides = array<i32>} : memref<36x512xf32, #tpu.memory_space<vmem>>, vector<4x512xf32>,
    %c0_169 = arith.constant 0 : index
    %c48 = arith.constant 48 : index
    %187 = vector.load %arg12[%c0_169, %c48] : memref<4x768xf32, #tpu.memory_space<vmem>>, vector<4x512xf32>
    %c19 = arith.constant 19 : index
    %c0_170 = arith.constant 0 : index
    %188 = vector.load %arg9[%c19, %c0_170] : memref<27x512xf32, #tpu.memory_space<vmem>>, vector<1x512xf32>
    %189 = vector.broadcast %188 : vector<1x512xf32> to vector<4x512xf32>
    %190 = arith.mulf %187, %189 : vector<4x512xf32>
    %c4_171 = arith.constant 4 : index
    %c0_172 = arith.constant 0 : index
    %191 = vector.load %arg13[%c4_171, %c0_172] : memref<36x512xf32, #tpu.memory_space<vmem>>, vector<4x512xf32>
    tpu.vector_store %arg13[%c4_171, %c0_172], %190 {strides = array<i32>} : memref<36x512xf32, #tpu.memory_space<vmem>>, vector<4x512xf32>,
    %c0_173 = arith.constant 0 : index
    %c53 = arith.constant 53 : index
    %192 = vector.load %arg12[%c0_173, %c53] : memref<4x768xf32, #tpu.memory_space<vmem>>, vector<4x512xf32>
    %c20_174 = arith.constant 20 : index
    %c0_175 = arith.constant 0 : index
    %193 = vector.load %arg9[%c20_174, %c0_175] : memref<27x512xf32, #tpu.memory_space<vmem>>, vector<1x512xf32>
    %194 = vector.broadcast %193 : vector<1x512xf32> to vector<4x512xf32>
    %195 = arith.mulf %192, %194 : vector<4x512xf32>
    %c8_176 = arith.constant 8 : index
    %c0_177 = arith.constant 0 : index
    %196 = vector.load %arg13[%c8_176, %c0_177] : memref<36x512xf32, #tpu.memory_space<vmem>>, vector<4x512xf32>
    tpu.vector_store %arg13[%c8_176, %c0_177], %195 {strides = array<i32>} : memref<36x512xf32, #tpu.memory_space<vmem>>, vector<4x512xf32>,
    %c0_178 = arith.constant 0 : index
    %c123 = arith.constant 123 : index
    %197 = vector.load %arg12[%c0_178, %c123] : memref<4x768xf32, #tpu.memory_space<vmem>>, vector<4x512xf32>
    %c21 = arith.constant 21 : index
    %c0_179 = arith.constant 0 : index
    %198 = vector.load %arg9[%c21, %c0_179] : memref<27x512xf32, #tpu.memory_space<vmem>>, vector<1x512xf32>
    %199 = vector.broadcast %198 : vector<1x512xf32> to vector<4x512xf32>
    %200 = arith.mulf %197, %199 : vector<4x512xf32>
    %c12_180 = arith.constant 12 : index
    %c0_181 = arith.constant 0 : index
    %201 = vector.load %arg13[%c12_180, %c0_181] : memref<36x512xf32, #tpu.memory_space<vmem>>, vector<4x512xf32>
    tpu.vector_store %arg13[%c12_180, %c0_181], %200 {strides = array<i32>} : memref<36x512xf32, #tpu.memory_space<vmem>>, vector<4x512xf32>,
    %c0_182 = arith.constant 0 : index
    %c128_183 = arith.constant 128 : index
    %202 = vector.load %arg12[%c0_182, %c128_183] : memref<4x768xf32, #tpu.memory_space<vmem>>, vector<4x512xf32>
    %c22 = arith.constant 22 : index
    %c0_184 = arith.constant 0 : index
    %203 = vector.load %arg9[%c22, %c0_184] : memref<27x512xf32, #tpu.memory_space<vmem>>, vector<1x512xf32>
    %204 = vector.broadcast %203 : vector<1x512xf32> to vector<4x512xf32>
    %205 = arith.mulf %202, %204 : vector<4x512xf32>
    %c16_185 = arith.constant 16 : index
    %c0_186 = arith.constant 0 : index
    %206 = vector.load %arg13[%c16_185, %c0_186] : memref<36x512xf32, #tpu.memory_space<vmem>>, vector<4x512xf32>
    tpu.vector_store %arg13[%c16_185, %c0_186], %205 {strides = array<i32>} : memref<36x512xf32, #tpu.memory_space<vmem>>, vector<4x512xf32>,
    %c0_187 = arith.constant 0 : index
    %c133 = arith.constant 133 : index
    %207 = vector.load %arg12[%c0_187, %c133] : memref<4x768xf32, #tpu.memory_space<vmem>>, vector<4x512xf32>
    %c23 = arith.constant 23 : index
    %c0_188 = arith.constant 0 : index
    %208 = vector.load %arg9[%c23, %c0_188] : memref<27x512xf32, #tpu.memory_space<vmem>>, vector<1x512xf32>
    %209 = vector.broadcast %208 : vector<1x512xf32> to vector<4x512xf32>
    %210 = arith.mulf %207, %209 : vector<4x512xf32>
    %c20_189 = arith.constant 20 : index
    %c0_190 = arith.constant 0 : index
    %211 = vector.load %arg13[%c20_189, %c0_190] : memref<36x512xf32, #tpu.memory_space<vmem>>, vector<4x512xf32>
    tpu.vector_store %arg13[%c20_189, %c0_190], %210 {strides = array<i32>} : memref<36x512xf32, #tpu.memory_space<vmem>>, vector<4x512xf32>,
    %c0_191 = arith.constant 0 : index
    %c203 = arith.constant 203 : index
    %212 = vector.load %arg12[%c0_191, %c203] : memref<4x768xf32, #tpu.memory_space<vmem>>, vector<4x512xf32>
    %c24_192 = arith.constant 24 : index
    %c0_193 = arith.constant 0 : index
    %213 = vector.load %arg9[%c24_192, %c0_193] : memref<27x512xf32, #tpu.memory_space<vmem>>, vector<1x512xf32>
    %214 = vector.broadcast %213 : vector<1x512xf32> to vector<4x512xf32>
    %215 = arith.mulf %212, %214 : vector<4x512xf32>
    %c24_194 = arith.constant 24 : index
    %c0_195 = arith.constant 0 : index
    %216 = vector.load %arg13[%c24_194, %c0_195] : memref<36x512xf32, #tpu.memory_space<vmem>>, vector<4x512xf32>
    tpu.vector_store %arg13[%c24_194, %c0_195], %215 {strides = array<i32>} : memref<36x512xf32, #tpu.memory_space<vmem>>, vector<4x512xf32>,
    %c0_196 = arith.constant 0 : index
    %c208 = arith.constant 208 : index
    %217 = vector.load %arg12[%c0_196, %c208] : memref<4x768xf32, #tpu.memory_space<vmem>>, vector<4x512xf32>
    %c25 = arith.constant 25 : index
    %c0_197 = arith.constant 0 : index
    %218 = vector.load %arg9[%c25, %c0_197] : memref<27x512xf32, #tpu.memory_space<vmem>>, vector<1x512xf32>
    %219 = vector.broadcast %218 : vector<1x512xf32> to vector<4x512xf32>
    %220 = arith.mulf %217, %219 : vector<4x512xf32>
    %c28_198 = arith.constant 28 : index
    %c0_199 = arith.constant 0 : index
    %221 = vector.load %arg13[%c28_198, %c0_199] : memref<36x512xf32, #tpu.memory_space<vmem>>, vector<4x512xf32>
    tpu.vector_store %arg13[%c28_198, %c0_199], %220 {strides = array<i32>} : memref<36x512xf32, #tpu.memory_space<vmem>>, vector<4x512xf32>,
    %c0_200 = arith.constant 0 : index
    %c213 = arith.constant 213 : index
    %222 = vector.load %arg12[%c0_200, %c213] : memref<4x768xf32, #tpu.memory_space<vmem>>, vector<4x512xf32>
    %c26 = arith.constant 26 : index
    %c0_201 = arith.constant 0 : index
    %223 = vector.load %arg9[%c26, %c0_201] : memref<27x512xf32, #tpu.memory_space<vmem>>, vector<1x512xf32>
    %224 = vector.broadcast %223 : vector<1x512xf32> to vector<4x512xf32>
    %225 = arith.mulf %222, %224 : vector<4x512xf32>
    %c32_202 = arith.constant 32 : index
    %c0_203 = arith.constant 0 : index
    %226 = vector.load %arg13[%c32_202, %c0_203] : memref<36x512xf32, #tpu.memory_space<vmem>>, vector<4x512xf32>
    tpu.vector_store %arg13[%c32_202, %c0_203], %225 {strides = array<i32>} : memref<36x512xf32, #tpu.memory_space<vmem>>, vector<4x512xf32>,
    %c0_204 = arith.constant 0 : index
    %c0_205 = arith.constant 0 : index
    %c0_206 = arith.constant 0 : index
    %227 = vector.load %arg6[%c0_204, %c0_205, %c0_206] : memref<1x4x36xf32, #tpu.memory_space<vmem>>, vector<1x4x36xf32>
    %228 = vector.shape_cast %227 : vector<1x4x36xf32> to vector<4x36xf32>
    %c0_207 = arith.constant 0 : index
    %c0_208 = arith.constant 0 : index
    %229 = vector.load %arg13[%c0_207, %c0_208] : memref<36x512xf32, #tpu.memory_space<vmem>>, vector<36x512xf32>
    %cst_209 = arith.constant dense<0.000000e+00> : vector<4x512xf32>
    %230 = tpu.matmul %228, %229, %cst_209 {dimension_numbers = #tpu.dot_dimension_numbers<[1], [0], [0], [1], [0, 0, 1, 1], [], []>} : vector<4x36xf32>, vector<36x512xf32>, vector<4x512xf32> -> vector<4x512xf32>
    %231 = vector.extract_strided_slice %1 {offsets = [0, 5], sizes = [4, 1], strides = [1, 1]} : vector<4x6xf32> to vector<4x1xf32>
    %232 = vector.broadcast %231 : vector<4x1xf32> to vector<4x512xf32>
    %233 = arith.addf %230, %232 : vector<4x512xf32>
    %c0_210 = arith.constant 0 : index
    %c0_211 = arith.constant 0 : index
    %c0_212 = arith.constant 0 : index
    %234 = vector.load %arg7[%c0_210, %c0_211, %c0_212] : memref<1x4x4xf32, #tpu.memory_space<vmem>>, vector<1x4x4xf32>
    %235 = vector.shape_cast %234 : vector<1x4x4xf32> to vector<4x4xf32>
    %cst_213 = arith.constant dense<0.000000e+00> : vector<4x512xf32>
    %236 = tpu.matmul %235, %180, %cst_213 {dimension_numbers = #tpu.dot_dimension_numbers<[1], [0], [0], [1], [0, 0, 1, 1], [], []>} : vector<4x4xf32>, vector<4x512xf32>, vector<4x512xf32> -> vector<4x512xf32>
    %237 = vector.extract_strided_slice %1 {offsets = [0, 4], sizes = [4, 1], strides = [1, 1]} : vector<4x6xf32> to vector<4x1xf32>
    %238 = vector.broadcast %237 : vector<4x1xf32> to vector<4x512xf32>
    %239 = arith.addf %236, %238 : vector<4x512xf32>
    %cst_214 = arith.constant 0.000000e+00 : f32
    %240 = vector.broadcast %cst_214 : f32 to vector<4x512xf32>
    %241 = arith.maximumf %74, %240 : vector<4x512xf32>
    %cst_215 = arith.constant 0.000000e+00 : f32
    %242 = vector.broadcast %cst_215 : f32 to vector<4x512xf32>
    %243 = arith.maximumf %127, %242 : vector<4x512xf32>
    %244 = arith.addf %241, %243 : vector<4x512xf32>
    %cst_216 = arith.constant 0.000000e+00 : f32
    %245 = vector.broadcast %cst_216 : f32 to vector<4x512xf32>
    %246 = arith.maximumf %239, %245 : vector<4x512xf32>
    %247 = arith.addf %244, %246 : vector<4x512xf32>
    %cst_217 = arith.constant 0.000000e+00 : f32
    %248 = vector.broadcast %cst_217 : f32 to vector<4x512xf32>
    %249 = arith.maximumf %233, %248 : vector<4x512xf32>
    %250 = arith.addf %247, %249 : vector<4x512xf32>
    %c0_218 = arith.constant 0 : index
    %c0_219 = arith.constant 0 : index
    %c0_220 = arith.constant 0 : index
    %251 = vector.load %arg11[%c0_218, %c0_219, %c0_220] : memref<1x4x512xf32, #tpu.memory_space<vmem>>, vector<1x4x512xf32>
    %252 = vector.shape_cast %251 : vector<1x4x512xf32> to vector<4x512xf32>
    %253 = vector.shape_cast %250 : vector<4x512xf32> to vector<1x4x512xf32>
    tpu.vector_store %arg11[%c0_218, %c0_219, %c0_220], %253 {strides = array<i32>} : memref<1x4x512xf32, #tpu.memory_space<vmem>>, vector<1x4x512xf32>,
    return
  }
  func.func @transform_0(%arg0: i32) -> (i32, i32) {
    %c0_i32 = arith.constant 0 : i32
    %c0_i32_0 = arith.constant 0 : i32
    %c0_i32_1 = arith.constant 0 : i32
    return %c0_i32, %c0_i32_0 : i32, i32
  }
  func.func @transform_1(%arg0: i32) -> (i32, i32, i32) {
    %c0_i32 = arith.constant 0 : i32
    %c0_i32_0 = arith.constant 0 : i32
    %c0_i32_1 = arith.constant 0 : i32
    return %arg0, %c0_i32, %c0_i32_0 : i32, i32, i32
  }
  func.func @transform_2(%arg0: i32) -> (i32, i32, i32) {
    %c0_i32 = arith.constant 0 : i32
    %c0_i32_0 = arith.constant 0 : i32
    %c0_i32_1 = arith.constant 0 : i32
    return %arg0, %c0_i32, %c0_i32_0 : i32, i32, i32
  }
  func.func @transform_3(%arg0: i32) -> (i32, i32, i32) {
    %c0_i32 = arith.constant 0 : i32
    %c0_i32_0 = arith.constant 0 : i32
    %c0_i32_1 = arith.constant 0 : i32
    return %arg0, %c0_i32, %c0_i32_0 : i32, i32, i32
  }
  func.func @transform_4(%arg0: i32) -> (i32, i32, i32) {
    %c0_i32 = arith.constant 0 : i32
    %c0_i32_0 = arith.constant 0 : i32
    %c0_i32_1 = arith.constant 0 : i32
    return %arg0, %c0_i32, %c0_i32_0 : i32, i32, i32
  }
  func.func @transform_5(%arg0: i32) -> (i32, i32, i32) {
    %c0_i32 = arith.constant 0 : i32
    %c0_i32_0 = arith.constant 0 : i32
    %c0_i32_1 = arith.constant 0 : i32
    return %arg0, %c0_i32, %c0_i32_0 : i32, i32, i32
  }
  func.func @transform_6(%arg0: i32) -> (i32, i32, i32) {
    %c0_i32 = arith.constant 0 : i32
    %c0_i32_0 = arith.constant 0 : i32
    %c0_i32_1 = arith.constant 0 : i32
    return %arg0, %c0_i32, %c0_i32_0 : i32, i32, i32
  }
  func.func @transform_7(%arg0: i32) -> (i32, i32, i32) {
    %c0_i32 = arith.constant 0 : i32
    %c0_i32_0 = arith.constant 0 : i32
    %c0_i32_1 = arith.constant 0 : i32
    return %arg0, %c0_i32, %c0_i32_0 : i32, i32, i32
  }
  func.func @transform_8(%arg0: i32) -> (i32, i32) {
    %c0_i32 = arith.constant 0 : i32
    %c0_i32_0 = arith.constant 0 : i32
    %c0_i32_1 = arith.constant 0 : i32
    return %c0_i32, %c0_i32_0 : i32, i32
  }
  func.func @transform_9(%arg0: i32) -> (i32, i32, i32) {
    %c0_i32 = arith.constant 0 : i32
    %c0_i32_0 = arith.constant 0 : i32
    %c0_i32_1 = arith.constant 0 : i32
    return %arg0, %c0_i32, %c0_i32_0 : i32, i32, i32
  }
  func.func @transform_10(%arg0: i32) -> (i32, i32, i32) {
    %c0_i32 = arith.constant 0 : i32
    %c0_i32_0 = arith.constant 0 : i32
    %c0_i32_1 = arith.constant 0 : i32
    return %arg0, %c0_i32, %c0_i32_0 : i32, i32, i32
  }
}

module attributes {stable_mosaic.version = 11 : i64} {
  func.func @_attn_out_kernel(%arg0: i32, %arg1: memref<1x4x256xf32, #tpu.memory_space<vmem>>, %arg2: memref<1x4x384xf32, #tpu.memory_space<vmem>>, %arg3: memref<1x5x384xf32, #tpu.memory_space<vmem>>, %arg4: memref<1x8x256xf32, #tpu.memory_space<vmem>>, %arg5: memref<8x4xf32, #tpu.memory_space<vmem>>, %arg6: memref<8x8xf32, #tpu.memory_space<vmem>>, %arg7: memref<8x1xf32, #tpu.memory_space<vmem>>, %arg8: memref<1x8x256xf32, #tpu.memory_space<vmem>>) attributes {dimension_semantics = [#tpu.dimension_semantics<parallel>], iteration_bounds = array<i64: 2>, scalar_prefetch = 0 : i64, scratch_operands = 0 : i64, tpu.core_type = #tpu.core_type<tc>, window_params = [{transform_indices = @transform_0, window_bounds = array<i64: 1, 4, 256>}, {transform_indices = @transform_1, window_bounds = array<i64: 1, 4, 384>}, {transform_indices = @transform_2, window_bounds = array<i64: 1, 5, 384>}, {transform_indices = @transform_3, window_bounds = array<i64: 1, 8, 256>}, {pipeline_mode = #tpu.pipeline_mode<synchronous>, transform_indices = @transform_4, window_bounds = array<i64: 8, 4>}, {pipeline_mode = #tpu.pipeline_mode<synchronous>, transform_indices = @transform_5, window_bounds = array<i64: 8, 8>}, {pipeline_mode = #tpu.pipeline_mode<synchronous>, transform_indices = @transform_6, window_bounds = array<i64: 8, 1>}, {transform_indices = @transform_7, window_bounds = array<i64: 1, 8, 256>}]} {
    %c0 = arith.constant 0 : index
    %c0_0 = arith.constant 0 : index
    %c0_1 = arith.constant 0 : index
    %0 = vector.load %arg1[%c0, %c0_0, %c0_1] : memref<1x4x256xf32, #tpu.memory_space<vmem>>, vector<1x4x256xf32>
    %1 = vector.shape_cast %0 : vector<1x4x256xf32> to vector<4x256xf32>
    %c0_2 = arith.constant 0 : index
    %c0_3 = arith.constant 0 : index
    %c0_4 = arith.constant 0 : index
    %2 = vector.load %arg2[%c0_2, %c0_3, %c0_4] : memref<1x4x384xf32, #tpu.memory_space<vmem>>, vector<1x4x384xf32>
    %3 = vector.shape_cast %2 : vector<1x4x384xf32> to vector<4x384xf32>
    %cst = arith.constant dense<0.000000e+00> : vector<256x384xf32>
    %4 = tpu.matmul %1, %3, %cst {dimension_numbers = #tpu.dot_dimension_numbers<[0], [0], [1], [1], [0, 1, 1, 1], [], []>} : vector<4x256xf32>, vector<4x384xf32>, vector<256x384xf32> -> vector<256x384xf32>
    %cst_5 = arith.constant 5.000000e-01 : f32
    %5 = vector.broadcast %cst_5 : f32 to vector<256x384xf32>
    %6 = arith.mulf %4, %5 : vector<256x384xf32>
    %cst_6 = arith.constant dense<0xFF800000> : vector<256xf32>
    %7 = vector.multi_reduction <maximumf>, %6, %cst_6 [1] : vector<256x384xf32> to vector<256xf32>
    %8 = vector.shape_cast %7 : vector<256xf32> to vector<256x1xf32>
    %9 = vector.broadcast %8 : vector<256x1xf32> to vector<256x384xf32>
    %10 = arith.subf %6, %9 : vector<256x384xf32>
    %11 = math.exp %10 : vector<256x384xf32>
    %c0_7 = arith.constant 0 : index
    %c0_8 = arith.constant 0 : index
    %c0_9 = arith.constant 0 : index
    %12 = vector.load %arg3[%c0_7, %c0_8, %c0_9] : memref<1x5x384xf32, #tpu.memory_space<vmem>>, vector<1x5x384xf32>
    %13 = vector.shape_cast %12 : vector<1x5x384xf32> to vector<5x384xf32>
    %cst_10 = arith.constant dense<0.000000e+00> : vector<5x256xf32>
    %14 = tpu.matmul %13, %11, %cst_10 {dimension_numbers = #tpu.dot_dimension_numbers<[1], [1], [0], [0], [0, 0, 1, 0], [], []>} : vector<5x384xf32>, vector<256x384xf32>, vector<5x256xf32> -> vector<5x256xf32>
    %15 = vector.extract_strided_slice %14 {offsets = [4, 0], sizes = [1, 256], strides = [1, 1]} : vector<5x256xf32> to vector<1x256xf32>
    %16 = tpu.reciprocal %15 {approx = true} : vector<1x256xf32> -> vector<1x256xf32>
    %17 = vector.extract_strided_slice %14 {offsets = [0, 0], sizes = [4, 256], strides = [1, 1]} : vector<5x256xf32> to vector<4x256xf32>
    %18 = vector.broadcast %16 : vector<1x256xf32> to vector<4x256xf32>
    %19 = arith.mulf %17, %18 : vector<4x256xf32>
    %c0_11 = arith.constant 0 : index
    %c0_12 = arith.constant 0 : index
    %20 = vector.load %arg5[%c0_11, %c0_12] : memref<8x4xf32, #tpu.memory_space<vmem>>, vector<8x4xf32>
    %cst_13 = arith.constant dense<0.000000e+00> : vector<8x256xf32>
    %21 = tpu.matmul %20, %19, %cst_13 {dimension_numbers = #tpu.dot_dimension_numbers<[1], [0], [0], [1], [0, 0, 1, 1], [], []>} : vector<8x4xf32>, vector<4x256xf32>, vector<8x256xf32> -> vector<8x256xf32>
    %c0_14 = arith.constant 0 : index
    %c0_15 = arith.constant 0 : index
    %22 = vector.load %arg6[%c0_14, %c0_15] : memref<8x8xf32, #tpu.memory_space<vmem>>, vector<8x8xf32>
    %c0_16 = arith.constant 0 : index
    %c0_17 = arith.constant 0 : index
    %c0_18 = arith.constant 0 : index
    %23 = vector.load %arg4[%c0_16, %c0_17, %c0_18] : memref<1x8x256xf32, #tpu.memory_space<vmem>>, vector<1x8x256xf32>
    %24 = vector.shape_cast %23 : vector<1x8x256xf32> to vector<8x256xf32>
    %cst_19 = arith.constant dense<0.000000e+00> : vector<8x256xf32>
    %25 = tpu.matmul %22, %24, %cst_19 {dimension_numbers = #tpu.dot_dimension_numbers<[1], [0], [0], [1], [0, 0, 1, 1], [], []>} : vector<8x8xf32>, vector<8x256xf32>, vector<8x256xf32> -> vector<8x256xf32>
    %26 = arith.addf %21, %25 : vector<8x256xf32>
    %c0_20 = arith.constant 0 : index
    %c0_21 = arith.constant 0 : index
    %27 = vector.load %arg7[%c0_20, %c0_21] : memref<8x1xf32, #tpu.memory_space<vmem>>, vector<8x1xf32>
    %28 = vector.broadcast %27 : vector<8x1xf32> to vector<8x256xf32>
    %29 = arith.addf %26, %28 : vector<8x256xf32>
    %cst_22 = arith.constant 0.000000e+00 : f32
    %30 = vector.broadcast %cst_22 : f32 to vector<8x256xf32>
    %31 = arith.maximumf %29, %30 : vector<8x256xf32>
    %c0_23 = arith.constant 0 : index
    %c0_24 = arith.constant 0 : index
    %c0_25 = arith.constant 0 : index
    %32 = vector.load %arg8[%c0_23, %c0_24, %c0_25] : memref<1x8x256xf32, #tpu.memory_space<vmem>>, vector<1x8x256xf32>
    %33 = vector.shape_cast %32 : vector<1x8x256xf32> to vector<8x256xf32>
    %34 = vector.shape_cast %31 : vector<8x256xf32> to vector<1x8x256xf32>
    tpu.vector_store %arg8[%c0_23, %c0_24, %c0_25], %34 {strides = array<i32>} : memref<1x8x256xf32, #tpu.memory_space<vmem>>, vector<1x8x256xf32>,
    return
  }
  func.func @transform_0(%arg0: i32) -> (i32, i32, i32) {
    %c1_i32 = arith.constant 1 : i32
    %c0_i32 = arith.constant 0 : i32
    %c0_i32_0 = arith.constant 0 : i32
    return %c1_i32, %c0_i32, %arg0 : i32, i32, i32
  }
  func.func @transform_1(%arg0: i32) -> (i32, i32, i32) {
    %c0_i32 = arith.constant 0 : i32
    %c0_i32_0 = arith.constant 0 : i32
    %c0_i32_1 = arith.constant 0 : i32
    return %arg0, %c0_i32, %c0_i32_0 : i32, i32, i32
  }
  func.func @transform_2(%arg0: i32) -> (i32, i32, i32) {
    %c0_i32 = arith.constant 0 : i32
    %c0_i32_0 = arith.constant 0 : i32
    %c0_i32_1 = arith.constant 0 : i32
    return %arg0, %c0_i32, %c0_i32_0 : i32, i32, i32
  }
  func.func @transform_3(%arg0: i32) -> (i32, i32, i32) {
    %c0_i32 = arith.constant 0 : i32
    %c0_i32_0 = arith.constant 0 : i32
    %c0_i32_1 = arith.constant 0 : i32
    return %arg0, %c0_i32, %c0_i32_0 : i32, i32, i32
  }
  func.func @transform_4(%arg0: i32) -> (i32, i32) {
    %c0_i32 = arith.constant 0 : i32
    %c0_i32_0 = arith.constant 0 : i32
    %c0_i32_1 = arith.constant 0 : i32
    return %c0_i32, %c0_i32_0 : i32, i32
  }
  func.func @transform_5(%arg0: i32) -> (i32, i32) {
    %c0_i32 = arith.constant 0 : i32
    %c0_i32_0 = arith.constant 0 : i32
    %c0_i32_1 = arith.constant 0 : i32
    return %c0_i32, %c0_i32_0 : i32, i32
  }
  func.func @transform_6(%arg0: i32) -> (i32, i32) {
    %c0_i32 = arith.constant 0 : i32
    %c0_i32_0 = arith.constant 0 : i32
    %c0_i32_1 = arith.constant 0 : i32
    return %c0_i32, %c0_i32_0 : i32, i32
  }
  func.func @transform_7(%arg0: i32) -> (i32, i32, i32) {
    %c0_i32 = arith.constant 0 : i32
    %c0_i32_0 = arith.constant 0 : i32
    %c0_i32_1 = arith.constant 0 : i32
    return %arg0, %c0_i32, %c0_i32_0 : i32, i32, i32
  }
}

</mosaic_0001>

<bundles_post_ra>
// kernel: hifa_forward.3
= control target key start
LH: loop header
LB: loop body
LE: loop exit
PB: predicated region body
PF: predicated region fallthrough
CT: control target
= control target key end

     0   :  { %s2505_s24 = smov 0   ;;  %s3119_s0 = inlined_call_operand.vmem [shape: f32[2,4,512], index: 0, kind: input, shape index: {}]   ;;  %s3120_s1 = inlined_call_operand.vmem [shape: f32[2,4,384], index: 1, kind: input, shape index: {}]   ;;  %s3121_s2 = inlined_call_operand.vmem [shape: f32[2,5,384], index: 2, kind: input, shape index: {}]   ;;  %s3122_s3 = inlined_call_operand.vmem [shape: f32[2,8,256], index: 3, kind: input, shape index: {}]   ;;  %s3123_s4 = inlined_call_operand.vmem [shape: f32[8,4], index: 4, kind: input, shape index: {}]   ;;  %s3124_s5 = inlined_call_operand.vmem [shape: f32[8,8], index: 5, kind: input, shape index: {}]   ;;  %s3125_s6 = inlined_call_operand.vmem [shape: f32[8,1], index: 6, kind: input, shape index: {}]   ;;  %s3126_s7 = inlined_call_operand.vmem [shape: f32[2,8,256], index: 7, kind: output, shape index: {}]  }
   0x1 LB: > { %s1937_s25 = sadd.s32 4294967295, %s2461_s24   ;;  %p1941_p0 = scmp.ge.s32.totalorder %s2461_s24, 1  ;;  %s2461_s24 = sphi %s2505_s24, %s17_s24  }
   0x2   : > { %p269_p1 = scmp.lt.s32.totalorder %s2461_s24, 3 }
   0x4   : > { %p270_p2 = pnand %p1941_p0, %p269_p1 }
   0x6   : > { %273 = sbr.rel (%p270_p2) target bundleno = 1113 (0x459), region = 48 }
   0xd   : > { %s1942_s26 = sshll.u32 %s1937_s25, 1  ;;  %p324_p3 = scmp.lt.s32.totalorder %s1937_s25, 1  ;;  %v3127_v0 = vmov 0.0   ;;  %vm514_vm0 = vcmask 1043456   ;;  %vm417_vm1 = vcmask 31744   ;;  %vm1676_vm2 = vcmask 64512  }
   0xe   : > { %p318_p4 = scmp.lt.s32.totalorder %s1942_s26, 3  ;;  %585 = vmatprep.mubr.f32.mxu0 %v3127_v0 }
   0xf   : > { %s3269_s25 = smov (!%p324_p3, %s1937_s25), 1 }
  0x10   : > { %s3271_s26 = smov (!%p318_p4, %s1942_s26), 3  ;;  %s2243_s27 = smul.u32 12, %s3269_s25 }
  0x11   : > { %s1943_s28 = sshll.u32 %s3271_s26, 2  ;;  %s2244_s12 = smul.u32 24, %s3269_s25 }
  0x12   : > { %s1885_s8 = scalar_lea.vmem %s3119_s0, %s1943_s28  ;;  %s328_s11 = scalar_lea.vmem %s3120_s1, %s2243_s27 }
  0x13   : > { %v1950_v1 = vld [vmem:[%s1885_s8 + $0x10] sm:$0xff]  ;;  %v345_v2 = vld [vmem:[%s328_s11] sm:$0xff]  ;;  %v346_v4 = vld [vmem:[%s328_s11 + $0x8] sm:$0xf]  ;;  %s2931_s15 = scalar_lea.vmem %s3121_s2, %s2244_s12  ;;  %s2024_s16 = sshll.u32 %s3269_s25, 4 }
  0x14   : > { %350 = vxpose.xlu0.b32.start.end [1/1] (short) %v1950_v1, 128  ;;  %v416_v3 = vcombine.high %v345_v2, %v345_v2  ;;  %2093 = vmatprep.subr.msk.mxu1 %vm514_vm0, %v346_v4  ;;  %v348_v5 = vcombine.high %v1950_v1, %v1950_v1  ;;  %s338_s19 = scalar_lea.vmem %s3122_s3, %s2024_s16  ;;  %s343_s30 = scalar_lea.vmem %s3126_s7, %s2024_s16 }
  0x15   : > { %2094 = vmatpush3.msk.msra.mxu1 %vm514_vm0, %v346_v4 }
  0x16   : > { %1951 = vmatprep.subr.msk.mxu0 %vm514_vm0, %v416_v3 }
  0x17   : > { %1952 = vmatpush1.msk.msra.mxu0 %vm514_vm0, %v345_v2 }
  0x51   : > { %382 = vxpose.xlu0.b32.start.end [1/1] (short) %v348_v5, 128 }
  0x94   : > { %v366_v6 = vpop.trf.xlu0 }
  0x95   : > { %1953 = vmatmul.mubr.msk.f32.vlgmr.msra.gmra.mrb[0].mxu0 %vm417_vm1, %v366_v6  ;;  %2095 = vmatprep.mubr.msk.f32.mxu1 %vm417_vm1, %v366_v6 }
  0x96   : > { %591 = vmatprep.mubr.f32.mxu0 %v3127_v0 }
  0x98   : > { %v367_v7 = vpop.trf.xlu0 }
  0x99   : > { %1954 = vmatmul.mubr.msk.f32.gmra.mrb[2].mxu0 %vm417_vm1, %v367_v7  ;;  %2096 = vmatmul.mubr.msk.f32.vlgmr.msra.gmra.mrb[0].mxu1 %vm417_vm1, %v367_v7 }
  0x9a   : > { %597 = vmatprep.mubr.f32.mxu0 %v3127_v0 }
  0x9c   : > { %v368_v8 = vpop.trf.xlu0 }
  0x9d   : > { %1955 = vmatmul.mubr.msk.f32.gmra.mrb[4].mxu0 %vm417_vm1, %v368_v8  ;;  %2098 = vmatprep.mubr.msk.f32.mxu1 %vm417_vm1, %v368_v8 }
  0x9e   : > { %603 = vmatprep.mubr.f32.mxu0 %v3127_v0 }
  0xa0   : > { %v369_v9 = vpop.trf.xlu0 }
  0xa1   : > { %1956 = vmatmul.mubr.msk.f32.gmra.mrb[6].mxu0 %vm417_vm1, %v369_v9  ;;  %2099 = vmatmul.mubr.msk.f32.gmra.mrb[2].mxu1 %vm417_vm1, %v369_v9 }
  0xa2   : > { %609 = vmatprep.mubr.f32.mxu0 %v3127_v0 }
  0xa4   : > { %v370_v10 = vpop.trf.xlu0 }
  0xa5   : > { %1957 = vmatmul.mubr.msk.f32.gmra.mrb[8].mxu0 %vm417_vm1, %v370_v10  ;;  %2101 = vmatprep.mubr.msk.f32.mxu1 %vm417_vm1, %v370_v10 }
  0xa6   : > { %615 = vmatprep.mubr.f32.mxu0 %v3127_v0 }
  0xa8   : > { %v371_v11 = vpop.trf.xlu0 }
  0xa9   : > { %1958 = vmatmul.mubr.msk.f32.gmra.mrb[10].mxu0 %vm417_vm1, %v371_v11  ;;  %2102 = vmatmul.mubr.msk.f32.gmra.mrb[4].mxu1 %vm417_vm1, %v371_v11 }
  0xaa   : > { %621 = vmatprep.mubr.f32.mxu0 %v3127_v0 }
  0xac   : > { %v372_v12 = vpop.trf.xlu0 }
  0xad   : > { %1959 = vmatmul.mubr.msk.f32.gmra.mrb[12].mxu0 %vm417_vm1, %v372_v12  ;;  %2104 = vmatprep.mubr.msk.f32.mxu1 %vm417_vm1, %v372_v12 }
  0xae   : > { %627 = vmatprep.mubr.f32.mxu0 %v3127_v0 }
  0xb0   : > { %v373_v13 = vpop.trf.xlu0 }
  0xb1   : > { %1960 = vmatmul.mubr.msk.f32.gmra.mrb[14].mxu0 %vm417_vm1, %v373_v13  ;;  %2105 = vmatmul.mubr.msk.f32.gmra.mrb[6].mxu1 %vm417_vm1, %v373_v13 }
  0xb2   : > { %633 = vmatprep.mubr.f32.mxu0 %v3127_v0 }
  0xb4   : > { %v374_v14 = vpop.trf.xlu0 }
  0xb5   : > { %1961 = vmatmul.mubr.msk.f32.gmra.mrb[16].mxu0 %vm417_vm1, %v374_v14  ;;  %2107 = vmatprep.mubr.msk.f32.mxu1 %vm417_vm1, %v374_v14 }
  0xb6   : > { %639 = vmatprep.mubr.f32.mxu0 %v3127_v0 }
  0xb8   : > { %v375_v15 = vpop.trf.xlu0 }
  0xb9   : > { %1962 = vmatmul.mubr.msk.f32.gmra.mrb[18].mxu0 %vm417_vm1, %v375_v15  ;;  %2108 = vmatmul.mubr.msk.f32.gmra.mrb[8].mxu1 %vm417_vm1, %v375_v15 }
  0xba   : > { %645 = vmatprep.mubr.f32.mxu0 %v3127_v0 }
  0xbc   : > { %v376_v16 = vpop.trf.xlu0 }
  0xbd   : > { %1963 = vmatmul.mubr.msk.f32.gmra.mrb[20].mxu0 %vm417_vm1, %v376_v16  ;;  %2110 = vmatprep.mubr.msk.f32.mxu1 %vm417_vm1, %v376_v16 }
  0xbe   : > { %651 = vmatprep.mubr.f32.mxu0 %v3127_v0 }
  0xc0   : > { %v377_v17 = vpop.trf.xlu0 }
  0xc1   : > { %1964 = vmatmul.mubr.msk.f32.gmra.mrb[22].mxu0 %vm417_vm1, %v377_v17  ;;  %2111 = vmatmul.mubr.msk.f32.gmra.mrb[10].mxu1 %vm417_vm1, %v377_v17 }
  0xc2   : > { %657 = vmatprep.mubr.f32.mxu0 %v3127_v0 }
  0xc4   : > { %v378_v18 = vpop.trf.xlu0 }
  0xc5   : > { %1965 = vmatmul.mubr.msk.f32.gmra.mrb[24].mxu0 %vm417_vm1, %v378_v18  ;;  %2113 = vmatprep.mubr.msk.f32.mxu1 %vm417_vm1, %v378_v18 }
  0xc6   : > { %663 = vmatprep.mubr.f32.mxu0 %v3127_v0 }
  0xc8   : > { %v379_v19 = vpop.trf.xlu0 }
  0xc9   : > { %1966 = vmatmul.mubr.msk.f32.gmra.mrb[26].mxu0 %vm417_vm1, %v379_v19  ;;  %2114 = vmatmul.mubr.msk.f32.gmra.mrb[12].mxu1 %vm417_vm1, %v379_v19 }
  0xca   : > { %669 = vmatprep.mubr.f32.mxu0 %v3127_v0 }
  0xcc   : > { %v380_v20 = vpop.trf.xlu0 }
  0xcd   : > { %1967 = vmatmul.mubr.msk.f32.gmra.mrb[28].mxu0 %vm417_vm1, %v380_v20  ;;  %2116 = vmatprep.mubr.msk.f32.mxu1 %vm417_vm1, %v380_v20 }
  0xce   : > { %675 = vmatprep.mubr.f32.mxu0 %v3127_v0 }
  0xd0   : > { %v381_v21 = vpop.trf.xlu0 }
  0xd1   : > { %1968 = vmatmul.mubr.msk.f32.gmra.mrb[30].mxu0 %vm417_vm1, %v381_v21  ;;  %2117 = vmatmul.mubr.msk.f32.gmra.mrb[14].mxu1 %vm417_vm1, %v381_v21 }
  0xd2   : > { %681 = vmatprep.mubr.f32.mxu0 %v3127_v0 }
  0xd4   : > { %v398_v22 = vpop.trf.xlu0 }
  0xd5   : > { %1969 = vmatmul.mubr.msk.f32.gmra.mrb[32].mxu0 %vm417_vm1, %v398_v22  ;;  %2119 = vmatprep.mubr.msk.f32.mxu1 %vm417_vm1, %v398_v22 }
  0xd6   : > { %687 = vmatprep.mubr.f32.mxu0 %v3127_v0 }
  0xd8   : > { %v399_v23 = vpop.trf.xlu0 }
  0xd9   : > { %1970 = vmatmul.mubr.msk.f32.gmra.mrb[34].mxu0 %vm417_vm1, %v399_v23  ;;  %2120 = vmatmul.mubr.msk.f32.gmra.mrb[16].mxu1 %vm417_vm1, %v399_v23 }
  0xda   : > { %693 = vmatprep.mubr.f32.mxu0 %v3127_v0 }
  0xdc   : > { %v400_v24 = vpop.trf.xlu0 }
  0xdd   : > { %1971 = vmatmul.mubr.msk.f32.gmra.mrb[36].mxu0 %vm417_vm1, %v400_v24  ;;  %2122 = vmatprep.mubr.msk.f32.mxu1 %vm417_vm1, %v400_v24 }
  0xde   : > { %699 = vmatprep.mubr.f32.mxu0 %v3127_v0 }
  0xe0   : > { %v401_v25 = vpop.trf.xlu0 }
  0xe1   : > { %1972 = vmatmul.mubr.msk.f32.gmra.mrb[38].mxu0 %vm417_vm1, %v401_v25  ;;  %2123 = vmatmul.mubr.msk.f32.gmra.mrb[18].mxu1 %vm417_vm1, %v401_v25 }
  0xe2   : > { %705 = vmatprep.mubr.f32.mxu0 %v3127_v0 }
  0xe4   : > { %v402_v26 = vpop.trf.xlu0 }
  0xe5   : > { %1973 = vmatmul.mubr.msk.f32.gmra.mrb[40].mxu0 %vm417_vm1, %v402_v26  ;;  %2125 = vmatprep.mubr.msk.f32.mxu1 %vm417_vm1, %v402_v26 }
  0xe6   : > { %711 = vmatprep.mubr.f32.mxu0 %v3127_v0 }
  0xe8   : > { %v403_v27 = vpop.trf.xlu0 }
  0xe9   : > { %1974 = vmatmul.mubr.msk.f32.gmra.mrb[42].mxu0 %vm417_vm1, %v403_v27  ;;  %2126 = vmatmul.mubr.msk.f32.gmra.mrb[20].mxu1 %vm417_vm1, %v403_v27 }
  0xea   : > { %717 = vmatprep.mubr.f32.mxu0 %v3127_v0 }
  0xec   : > { %v404_v28 = vpop.trf.xlu0 }
  0xed   : > { %1975 = vmatmul.mubr.msk.f32.gmra.mrb[44].mxu0 %vm417_vm1, %v404_v28  ;;  %2128 = vmatprep.mubr.msk.f32.mxu1 %vm417_vm1, %v404_v28 }
  0xee   : > { %723 = vmatprep.mubr.f32.mxu0 %v3127_v0 }
  0xf0   : > { %v405_v29 = vpop.trf.xlu0 }
  0xf1   : > { %1976 = vmatmul.mubr.msk.f32.gmra.mrb[46].mxu0 %vm417_vm1, %v405_v29  ;;  %2129 = vmatmul.mubr.msk.f32.gmra.mrb[22].mxu1 %vm417_vm1, %v405_v29 }
  0xf2   : > { %729 = vmatprep.mubr.f32.mxu0 %v3127_v0 }
  0xf4   : > { %v406_v30 = vpop.trf.xlu0 }
  0xf5   : > { %1977 = vmatmul.mubr.msk.f32.gmra.mrb[48].mxu0 %vm417_vm1, %v406_v30  ;;  %2131 = vmatprep.mubr.msk.f32.mxu1 %vm417_vm1, %v406_v30 }
  0xf6   : > { %735 = vmatprep.mubr.f32.mxu0 %v3127_v0 }
  0xf8   : > { %v407_v31 = vpop.trf.xlu0 }
  0xf9   : > { %1978 = vmatmul.mubr.msk.f32.gmra.mrb[50].mxu0 %vm417_vm1, %v407_v31  ;;  %2132 = vmatmul.mubr.msk.f32.gmra.mrb[24].mxu1 %vm417_vm1, %v407_v31 }
  0xfa   : > { %741 = vmatprep.mubr.f32.mxu0 %v3127_v0 }
  0xfc   : > { %v408_v32 = vpop.trf.xlu0 }
  0xfd   : > { %1979 = vmatmul.mubr.msk.f32.gmra.mrb[52].mxu0 %vm417_vm1, %v408_v32  ;;  %2134 = vmatprep.mubr.msk.f32.mxu1 %vm417_vm1, %v408_v32 }
  0xfe   : > { %747 = vmatprep.mubr.f32.mxu0 %v3127_v0 }
 0x100   : > { %v409_v33 = vpop.trf.xlu0 }
 0x101   : > { %1980 = vmatmul.mubr.msk.f32.gmra.mrb[54].mxu0 %vm417_vm1, %v409_v33  ;;  %2135 = vmatmul.mubr.msk.f32.gmra.mrb[26].mxu1 %vm417_vm1, %v409_v33 }
 0x102   : > { %753 = vmatprep.mubr.f32.mxu0 %v3127_v0 }
 0x104   : > { %v410_v34 = vpop.trf.xlu0 }
 0x105   : > { %1981 = vmatmul.mubr.msk.f32.gmra.mrb[56].mxu0 %vm417_vm1, %v410_v34  ;;  %2137 = vmatprep.mubr.msk.f32.mxu1 %vm417_vm1, %v410_v34 }
 0x106   : > { %759 = vmatprep.mubr.f32.mxu0 %v3127_v0 }
 0x108   : > { %v411_v35 = vpop.trf.xlu0 }
 0x109   : > { %1982 = vmatmul.mubr.msk.f32.gmra.mrb[58].mxu0 %vm417_vm1, %v411_v35  ;;  %2138 = vmatmul.mubr.msk.f32.gmra.mrb[28].mxu1 %vm417_vm1, %v411_v35 }
 0x10a   : > { %765 = vmatprep.mubr.f32.mxu0 %v3127_v0 }
 0x10c   : > { %v412_v36 = vpop.trf.xlu0 }
 0x10d   : > { %1983 = vmatmul.mubr.msk.f32.gmra.mrb[60].mxu0 %vm417_vm1, %v412_v36  ;;  %2140 = vmatprep.mubr.msk.f32.mxu1 %vm417_vm1, %v412_v36 }
 0x10e   : > { %771 = vmatprep.mubr.f32.mxu0 %v3127_v0 }
 0x110   : > { %v413_v37 = vpop.trf.xlu0 }
 0x111   : > { %1984 = vmatmul.mubr.msk.f32.gmra.mrb[62].mxu0 %vm417_vm1, %v413_v37  ;;  %2141 = vmatmul.mubr.msk.f32.gmra.mrb[30].mxu1 %vm417_vm1, %v413_v37 }
 0x168   : > { %v587_v38 = vpop.f32.mrb[0].mxu0 }
 0x169   : > { %v589_v39 = vpop.f32.mrb[1].mxu0  ;;  %v2622_v40 = vmul.f32 0.5, %v587_v38 }
 0x16a   : > { %v2624_v41 = vmul.f32 0.5, %v589_v39 }
 0x16c   : > { %v593_v42 = vpop.f32.mrb[2].mxu0  ;;  %v2097_v43 = vpop.f32.mrb[0].mxu1  ;;  %v1099_v49 = vmax.f32 %v2622_v40, %v2624_v41 }
 0x16d   : > { %v2626_v44 = vmul.f32 0.5, %v593_v42  ;;  %v595_v45 = vpop.f32.mrb[3].mxu0  ;;  %v844_v46 = vpop.f32.mrb[1].mxu1  ;;  %v2637_v54 = vmul.f32 0.5, %v2097_v43 }
 0x16e   : > { %v2628_v47 = vmul.f32 0.5, %v595_v45  ;;  %v2630_v48 = vmul.f32 0.5, %v844_v46 }
 0x170   : > { %v1103_v50 = vmax.f32 %v2626_v44, %v2628_v47  ;;  %v599_v51 = vpop.f32.mrb[4].mxu0  ;;  %v1100_v52 = vmax.f32 %v1099_v49, %v2630_v48 }
 0x171   : > { %v601_v53 = vpop.f32.mrb[5].mxu0  ;;  %v2639_v55 = vmul.f32 0.5, %v599_v51 }
 0x172   : > { %v2641_v56 = vmul.f32 0.5, %v601_v53  ;;  %1101 = vmax.xlane.f32.xlu1 %v1100_v52  ;;  %v1104_v59 = vmax.f32 %v1103_v50, %v2637_v54 }
 0x174   : > { %v605_v57 = vpop.f32.mrb[6].mxu0  ;;  %v2100_v58 = vpop.f32.mrb[2].mxu1  ;;  %v1107_v63 = vmax.f32 %v2639_v55, %v2641_v56 }
 0x175   : > { %v2644_v60 = vmul.f32 0.5, %v605_v57  ;;  %v607_v61 = vpop.f32.mrb[7].mxu0  ;;  %v854_v62 = vpop.f32.mrb[3].mxu1  ;;  %v2655_v7 = vmul.f32 0.5, %v2100_v58 }
 0x176   : > { %v2648_v1 = vmul.f32 0.5, %v607_v61  ;;  %v2650_v2 = vmul.f32 0.5, %v854_v62  ;;  %1105 = vmax.xlane.f32.xlu1 %v1104_v59 }
 0x178   : > { %v1111_v3 = vmax.f32 %v2644_v60, %v2648_v1  ;;  %v611_v4 = vpop.f32.mrb[8].mxu0  ;;  %v1108_v5 = vmax.f32 %v1107_v63, %v2650_v2 }
 0x179   : > { %v613_v6 = vpop.f32.mrb[9].mxu0  ;;  %v2657_v8 = vmul.f32 0.5, %v611_v4 }
 0x17a   : > { %v2659_v9 = vmul.f32 0.5, %v613_v6  ;;  %1109 = vmax.xlane.f32.xlu1 %v1108_v5  ;;  %v1112_v12 = vmax.f32 %v1111_v3, %v2655_v7 }
 0x17c   : > { %v617_v10 = vpop.f32.mrb[10].mxu0  ;;  %v2103_v11 = vpop.f32.mrb[4].mxu1  ;;  %v1115_v16 = vmax.f32 %v2657_v8, %v2659_v9 }
 0x17d   : > { %v2662_v13 = vmul.f32 0.5, %v617_v10  ;;  %v619_v14 = vpop.f32.mrb[11].mxu0  ;;  %v864_v15 = vpop.f32.mrb[5].mxu1  ;;  %v2673_v23 = vmul.f32 0.5, %v2103_v11 }
 0x17e   : > { %v2666_v17 = vmul.f32 0.5, %v619_v14  ;;  %v2668_v18 = vmul.f32 0.5, %v864_v15  ;;  %1113 = vmax.xlane.f32.xlu1 %v1112_v12 }
 0x180   : > { %v1119_v19 = vmax.f32 %v2662_v13, %v2666_v17  ;;  %v623_v20 = vpop.f32.mrb[12].mxu0  ;;  %v1116_v21 = vmax.f32 %v1115_v16, %v2668_v18 }
 0x181   : > { %v625_v22 = vpop.f32.mrb[13].mxu0  ;;  %v2675_v24 = vmul.f32 0.5, %v623_v20 }
 0x182   : > { %v2677_v25 = vmul.f32 0.5, %v625_v22  ;;  %1117 = vmax.xlane.f32.xlu1 %v1116_v21  ;;  %v1120_v28 = vmax.f32 %v1119_v19, %v2673_v23 }
 0x184   : > { %v629_v26 = vpop.f32.mrb[14].mxu0  ;;  %v2106_v27 = vpop.f32.mrb[6].mxu1  ;;  %v1123_v32 = vmax.f32 %v2675_v24, %v2677_v25 }
 0x185   : > { %v2680_v29 = vmul.f32 0.5, %v629_v26  ;;  %v631_v30 = vpop.f32.mrb[15].mxu0  ;;  %v874_v31 = vpop.f32.mrb[7].mxu1  ;;  %v2691_v39 = vmul.f32 0.5, %v2106_v27 }
 0x186   : > { %v2684_v33 = vmul.f32 0.5, %v631_v30  ;;  %v2686_v34 = vmul.f32 0.5, %v874_v31  ;;  %1121 = vmax.xlane.f32.xlu1 %v1120_v28 }
 0x188   : > { %v1127_v35 = vmax.f32 %v2680_v29, %v2684_v33  ;;  %v635_v36 = vpop.f32.mrb[16].mxu0  ;;  %v1124_v37 = vmax.f32 %v1123_v32, %v2686_v34 }
 0x189   : > { %v637_v38 = vpop.f32.mrb[17].mxu0  ;;  %v2693_v42 = vmul.f32 0.5, %v635_v36 }
 0x18a   : > { %v2695_v43 = vmul.f32 0.5, %v637_v38  ;;  %1125 = vmax.xlane.f32.xlu1 %v1124_v37  ;;  %v1128_v49 = vmax.f32 %v1127_v35, %v2691_v39 }
 0x18c   : > { %v641_v45 = vpop.f32.mrb[18].mxu0  ;;  %v2109_v46 = vpop.f32.mrb[8].mxu1  ;;  %v1131_v53 = vmax.f32 %v2693_v42, %v2695_v43 }
 0x18d   : > { %v2698_v50 = vmul.f32 0.5, %v641_v45  ;;  %v643_v51 = vpop.f32.mrb[19].mxu0  ;;  %v884_v52 = vpop.f32.mrb[9].mxu1  ;;  %v2709_v3 = vmul.f32 0.5, %v2109_v46 }
 0x18e   : > { %v2702_v57 = vmul.f32 0.5, %v643_v51  ;;  %v2704_v58 = vmul.f32 0.5, %v884_v52  ;;  %1129 = vmax.xlane.f32.xlu1 %v1128_v49 }
 0x190   : > { %v1135_v59 = vmax.f32 %v2698_v50, %v2702_v57  ;;  %v647_v61 = vpop.f32.mrb[20].mxu0  ;;  %v1132_v62 = vmax.f32 %v1131_v53, %v2704_v58 }
 0x191   : > { %v649_v63 = vpop.f32.mrb[21].mxu0  ;;  %v2711_v4 = vmul.f32 0.5, %v647_v61 }
 0x192   : > { %v2713_v5 = vmul.f32 0.5, %v649_v63  ;;  %1133 = vmax.xlane.f32.xlu1 %v1132_v62  ;;  %v1136_v11 = vmax.f32 %v1135_v59, %v2709_v3 }
 0x194   : > { %v653_v6 = vpop.f32.mrb[22].mxu0  ;;  %v2112_v10 = vpop.f32.mrb[10].mxu1  ;;  %v1139_v16 = vmax.f32 %v2711_v4, %v2713_v5 }
 0x195   : > { %v2716_v12 = vmul.f32 0.5, %v653_v6  ;;  %v655_v14 = vpop.f32.mrb[23].mxu0  ;;  %v894_v15 = vpop.f32.mrb[11].mxu1  ;;  %v2727_v28 = vmul.f32 0.5, %v2112_v10 }
 0x196   : > { %v2720_v19 = vmul.f32 0.5, %v655_v14  ;;  %v2722_v20 = vmul.f32 0.5, %v894_v15  ;;  %1137 = vmax.xlane.f32.xlu1 %v1136_v11 }
 0x198   : > { %v1143_v21 = vmax.f32 %v2716_v12, %v2720_v19  ;;  %v659_v22 = vpop.f32.mrb[24].mxu0  ;;  %v1140_v26 = vmax.f32 %v1139_v16, %v2722_v20 }
 0x199   : > { %v661_v27 = vpop.f32.mrb[25].mxu0  ;;  %v2729_v30 = vmul.f32 0.5, %v659_v22 }
 0x19a   : > { %v2731_v31 = vmul.f32 0.5, %v661_v27  ;;  %1141 = vmax.xlane.f32.xlu1 %v1140_v26  ;;  %v1144_v36 = vmax.f32 %v1143_v21, %v2727_v28 }
 0x19c   : > { %v665_v32 = vpop.f32.mrb[26].mxu0  ;;  %v2115_v35 = vpop.f32.mrb[12].mxu1  ;;  %v1147_v46 = vmax.f32 %v2729_v30, %v2731_v31 }
 0x19d   : > { %v2734_v37 = vmul.f32 0.5, %v665_v32  ;;  %v667_v38 = vpop.f32.mrb[27].mxu0  ;;  %v904_v45 = vpop.f32.mrb[13].mxu1  ;;  %v2745_v62 = vmul.f32 0.5, %v2115_v35 }
 0x19e   : > { %v2738_v49 = vmul.f32 0.5, %v667_v38  ;;  %v2740_v51 = vmul.f32 0.5, %v904_v45  ;;  %1145 = vmax.xlane.f32.xlu1 %v1144_v36 }
 0x1a0   : > { %v1151_v52 = vmax.f32 %v2734_v37, %v2738_v49  ;;  %v671_v53 = vpop.f32.mrb[28].mxu0  ;;  %v1148_v59 = vmax.f32 %v1147_v46, %v2740_v51 }
 0x1a1   : > { %v673_v61 = vpop.f32.mrb[29].mxu0  ;;  %v2747_v63 = vmul.f32 0.5, %v671_v53 }
 0x1a2   : > { %v2749_v6 = vmul.f32 0.5, %v673_v61  ;;  %1149 = vmax.xlane.f32.xlu1 %v1148_v59  ;;  %v1152_v14 = vmax.f32 %v1151_v52, %v2745_v62 }
 0x1a4   : > { %v677_v10 = vpop.f32.mrb[30].mxu0  ;;  %v2118_v11 = vpop.f32.mrb[14].mxu1  ;;  %v1155_v22 = vmax.f32 %v2747_v63, %v2749_v6 }
 0x1a5   : > { %v2752_v15 = vmul.f32 0.5, %v677_v10  ;;  %v679_v16 = vpop.f32.mrb[31].mxu0  ;;  %v914_v21 = vpop.f32.mrb[15].mxu1  ;;  %v2763_v45 = vmul.f32 0.5, %v2118_v11 }
 0x1a6   : > { %v2756_v26 = vmul.f32 0.5, %v679_v16  ;;  %v2758_v27 = vmul.f32 0.5, %v914_v21  ;;  %1153 = vmax.xlane.f32.xlu1 %v1152_v14 }
 0x1a7   : > { %3176 = vst [vmem:[#allocation3_spill] sm:$0xff] %v2763_v45 }
 0x1a8   : > { %3175 = vst [vmem:[#allocation2_spill] sm:$0xff] %v2756_v26  ;;  %v1159_v32 = vmax.f32 %v2752_v15, %v2756_v26  ;;  %v683_v35 = vpop.f32.mrb[32].mxu0  ;;  %v1156_v36 = vmax.f32 %v1155_v22, %v2758_v27 }
 0x1a9   : > { %v685_v38 = vpop.f32.mrb[33].mxu0  ;;  %v2765_v46 = vmul.f32 0.5, %v683_v35 }
 0x1aa   : > { %v2767_v52 = vmul.f32 0.5, %v685_v38  ;;  %1157 = vmax.xlane.f32.xlu1 %v1156_v36  ;;  %v1160_v61 = vmax.f32 %v1159_v32, %v2763_v45 }
 0x1ab   : > { %3177 = vst [vmem:[#allocation4_spill] sm:$0xff] %v2765_v46 }
 0x1ac   : > { %3178 = vst [vmem:[#allocation5_spill] sm:$0xff] %v2767_v52  ;;  %v689_v53 = vpop.f32.mrb[34].mxu0  ;;  %v2121_v59 = vpop.f32.mrb[16].mxu1  ;;  %v1163_v21 = vmax.f32 %v2765_v46, %v2767_v52 }
 0x1ad   : > { %v2770_v10 = vmul.f32 0.5, %v689_v53  ;;  %v691_v14 = vpop.f32.mrb[35].mxu0  ;;  %v924_v16 = vpop.f32.mrb[17].mxu1  ;;  %v2778_v35 = vmul.f32 0.5, %v2121_v59 }
 0x1ae   : > { %v2774_v22 = vmul.f32 0.5, %v691_v14  ;;  %v2776_v11 = vmul.f32 0.5, %v924_v16  ;;  %1161 = vmax.xlane.f32.xlu1 %v1160_v61 }
 0x1af   : > { %3179 = vst [vmem:[#allocation6_spill] sm:$0xff] %v2770_v10  ;;  %3182 = vst [vmem:[#allocation9_spill] sm:$0xff] %v2778_v35 }
 0x1b0   : > { %3180 = vst [vmem:[#allocation7_spill] sm:$0xff] %v2774_v22  ;;  %3181 = vst [vmem:[#allocation8_spill] sm:$0xff] %v2776_v11  ;;  %v1167_v36 = vmax.f32 %v2770_v10, %v2774_v22  ;;  %v695_v38 = vpop.f32.mrb[36].mxu0  ;;  %v1164_v32 = vmax.f32 %v1163_v21, %v2776_v11 }
 0x1b1   : > { %v697_v53 = vpop.f32.mrb[37].mxu0  ;;  %v2783_v0 = vmul.f32 0.5, %v695_v38 }
 0x1b2   : > { %v2785_v45 = vmul.f32 0.5, %v697_v53  ;;  %1165 = vmax.xlane.f32.xlu1 %v1164_v32  ;;  %v1168_v14 = vmax.f32 %v1167_v36, %v2778_v35 }
 0x1b3   : > { %3183 = vst [vmem:[#allocation10_spill] sm:$0xff] %v2783_v0 }
 0x1b4   : > { %3184 = vst [vmem:[#allocation11_spill] sm:$0xff] %v2785_v45  ;;  %1169 = vmax.xlane.f32.xlu0 %v1168_v14  ;;  %v701_v16 = vpop.f32.mrb[38].mxu0  ;;  %v2124_v52 = vpop.f32.mrb[18].mxu1  ;;  %v1171_v22 = vmax.f32 %v2783_v0, %v2785_v45 }
 0x1b5   : > { %v2788_v61 = vmul.f32 0.5, %v701_v16  ;;  %v703_v59 = vpop.f32.mrb[39].mxu0  ;;  %v934_v46 = vpop.f32.mrb[19].mxu1  ;;  %v2799_v14 = vmul.f32 0.5, %v2124_v52 }
 0x1b6   : > { %v2792_v10 = vmul.f32 0.5, %v703_v59  ;;  %v2794_v21 = vmul.f32 0.5, %v934_v46 }
 0x1b7   : > { %3185 = vst [vmem:[#allocation12_spill] sm:$0xff] %v2788_v61  ;;  %3188 = vst [vmem:[#allocation15_spill] sm:$0xff] %v2799_v14 }
 0x1b8   : > { %3186 = vst [vmem:[#allocation13_spill] sm:$0xff] %v2792_v10  ;;  %3187 = vst [vmem:[#allocation14_spill] sm:$0xff] %v2794_v21  ;;  %v1175_v38 = vmax.f32 %v2788_v61, %v2792_v10  ;;  %v707_v32 = vpop.f32.mrb[40].mxu0  ;;  %v1172_v36 = vmax.f32 %v1171_v22, %v2794_v21 }
 0x1b9   : > { %v709_v53 = vpop.f32.mrb[41].mxu0  ;;  %v2801_v16 = vmul.f32 0.5, %v707_v32 }
 0x1ba   : > { %v2803_v35 = vmul.f32 0.5, %v709_v53  ;;  %1173 = vmax.xlane.f32.xlu1 %v1172_v36  ;;  %v1176_v59 = vmax.f32 %v1175_v38, %v2799_v14 }
 0x1bb   : > { %3189 = vst [vmem:[#allocation16_spill] sm:$0xff] %v2801_v16 }
 0x1bc   : > { %3190 = vst [vmem:[#allocation17_spill] sm:$0xff] %v2803_v35  ;;  %v713_v11 = vpop.f32.mrb[42].mxu0  ;;  %v2127_v45 = vpop.f32.mrb[20].mxu1  ;;  %v1179_v10 = vmax.f32 %v2801_v16, %v2803_v35 }
 0x1bd   : > { %v2806_v46 = vmul.f32 0.5, %v713_v11  ;;  %v715_v0 = vpop.f32.mrb[43].mxu0  ;;  %v944_v26 = vpop.f32.mrb[21].mxu1  ;;  %v2817_v38 = vmul.f32 0.5, %v2127_v45 }
 0x1be   : > { %v2810_v22 = vmul.f32 0.5, %v715_v0  ;;  %v2812_v52 = vmul.f32 0.5, %v944_v26  ;;  %1177 = vmax.xlane.f32.xlu1 %v1176_v59 }
 0x1bf   : > { %3191 = vst [vmem:[#allocation18_spill] sm:$0xff] %v2806_v46  ;;  %3194 = vst [vmem:[#allocation21_spill] sm:$0xff] %v2817_v38 }
 0x1c0   : > { %3192 = vst [vmem:[#allocation19_spill] sm:$0xff] %v2810_v22  ;;  %3193 = vst [vmem:[#allocation20_spill] sm:$0xff] %v2812_v52  ;;  %v1183_v32 = vmax.f32 %v2806_v46, %v2810_v22  ;;  %v719_v36 = vpop.f32.mrb[44].mxu0  ;;  %v1180_v53 = vmax.f32 %v1179_v10, %v2812_v52 }
 0x1c1   : > { %v721_v61 = vpop.f32.mrb[45].mxu0  ;;  %v2819_v11 = vmul.f32 0.5, %v719_v36 }
 0x1c2   : > { %v2821_v14 = vmul.f32 0.5, %v721_v61  ;;  %1181 = vmax.xlane.f32.xlu1 %v1180_v53  ;;  %v1184_v26 = vmax.f32 %v1183_v32, %v2817_v38 }
 0x1c3   : > { %3195 = vst [vmem:[#allocation22_spill] sm:$0xff] %v2819_v11 }
 0x1c4   : > { %3196 = vst [vmem:[#allocation23_spill] sm:$0xff] %v2821_v14  ;;  %v725_v35 = vpop.f32.mrb[46].mxu0  ;;  %v2130_v0 = vpop.f32.mrb[22].mxu1  ;;  %v1187_v22 = vmax.f32 %v2819_v11, %v2821_v14 }
 0x1c5   : > { %v2824_v16 = vmul.f32 0.5, %v725_v35  ;;  %v727_v59 = vpop.f32.mrb[47].mxu0  ;;  %v954_v21 = vpop.f32.mrb[23].mxu1  ;;  %v2835_v32 = vmul.f32 0.5, %v2130_v0 }
 0x1c6   : > { %v2828_v10 = vmul.f32 0.5, %v727_v59  ;;  %v2830_v45 = vmul.f32 0.5, %v954_v21  ;;  %1185 = vmax.xlane.f32.xlu1 %v1184_v26 }
 0x1c7   : > { %3197 = vst [vmem:[#allocation24_spill] sm:$0xff] %v2824_v16  ;;  %3200 = vst [vmem:[#allocation27_spill] sm:$0xff] %v2835_v32 }
 0x1c8   : > { %3198 = vst [vmem:[#allocation25_spill] sm:$0xff] %v2828_v10  ;;  %3199 = vst [vmem:[#allocation26_spill] sm:$0xff] %v2830_v45  ;;  %v1191_v61 = vmax.f32 %v2824_v16, %v2828_v10  ;;  %v731_v36 = vpop.f32.mrb[48].mxu0  ;;  %v1188_v53 = vmax.f32 %v1187_v22, %v2830_v45 }
 0x1c9   : > { %v733_v46 = vpop.f32.mrb[49].mxu0  ;;  %v2837_v35 = vmul.f32 0.5, %v731_v36 }
 0x1ca   : > { %v2839_v38 = vmul.f32 0.5, %v733_v46  ;;  %1189 = vmax.xlane.f32.xlu1 %v1188_v53  ;;  %v1192_v21 = vmax.f32 %v1191_v61, %v2835_v32 }
 0x1cb   : > { %3201 = vst [vmem:[#allocation28_spill] sm:$0xff] %v2837_v35 }
 0x1cc   : > { %3202 = vst [vmem:[#allocation29_spill] sm:$0xff] %v2839_v38  ;;  %v737_v14 = vpop.f32.mrb[50].mxu0  ;;  %v2133_v59 = vpop.f32.mrb[24].mxu1  ;;  %v1195_v10 = vmax.f32 %v2837_v35, %v2839_v38 }
 0x1cd   : > { %v2842_v11 = vmul.f32 0.5, %v737_v14  ;;  %v739_v26 = vpop.f32.mrb[51].mxu0  ;;  %v964_v52 = vpop.f32.mrb[25].mxu1  ;;  %v2853_v61 = vmul.f32 0.5, %v2133_v59 }
 0x1ce   : > { %v2846_v22 = vmul.f32 0.5, %v739_v26  ;;  %v2848_v0 = vmul.f32 0.5, %v964_v52  ;;  %1193 = vmax.xlane.f32.xlu1 %v1192_v21 }
 0x1cf   : > { %3203 = vst [vmem:[#allocation30_spill] sm:$0xff] %v2842_v11  ;;  %3206 = vst [vmem:[#allocation33_spill] sm:$0xff] %v2853_v61 }
 0x1d0   : > { %3204 = vst [vmem:[#allocation31_spill] sm:$0xff] %v2846_v22  ;;  %3205 = vst [vmem:[#allocation32_spill] sm:$0xff] %v2848_v0  ;;  %v1199_v46 = vmax.f32 %v2842_v11, %v2846_v22  ;;  %v743_v36 = vpop.f32.mrb[52].mxu0  ;;  %v1196_v53 = vmax.f32 %v1195_v10, %v2848_v0 }
 0x1d1   : > { %v745_v16 = vpop.f32.mrb[53].mxu0  ;;  %v2855_v14 = vmul.f32 0.5, %v743_v36 }
 0x1d2   : > { %v2857_v32 = vmul.f32 0.5, %v745_v16  ;;  %1197 = vmax.xlane.f32.xlu1 %v1196_v53  ;;  %v1200_v52 = vmax.f32 %v1199_v46, %v2853_v61 }
 0x1d3   : > { %3207 = vst [vmem:[#allocation34_spill] sm:$0xff] %v2855_v14 }
 0x1d4   : > { %3208 = vst [vmem:[#allocation35_spill] sm:$0xff] %v2857_v32  ;;  %v749_v38 = vpop.f32.mrb[54].mxu0  ;;  %v2136_v26 = vpop.f32.mrb[26].mxu1  ;;  %v1203_v22 = vmax.f32 %v2855_v14, %v2857_v32 }
 0x1d5   : > { %v2860_v35 = vmul.f32 0.5, %v749_v38  ;;  %v751_v21 = vpop.f32.mrb[55].mxu0  ;;  %v974_v45 = vpop.f32.mrb[27].mxu1  ;;  %v2871_v46 = vmul.f32 0.5, %v2136_v26 }
 0x1d6   : > { %v2864_v10 = vmul.f32 0.5, %v751_v21  ;;  %v2866_v59 = vmul.f32 0.5, %v974_v45  ;;  %1201 = vmax.xlane.f32.xlu1 %v1200_v52 }
 0x1d7   : > { %3209 = vst [vmem:[#allocation36_spill] sm:$0xff] %v2860_v35  ;;  %3212 = vst [vmem:[#allocation39_spill] sm:$0xff] %v2871_v46 }
 0x1d8   : > { %3210 = vst [vmem:[#allocation37_spill] sm:$0xff] %v2864_v10  ;;  %3211 = vst [vmem:[#allocation38_spill] sm:$0xff] %v2866_v59  ;;  %v1207_v16 = vmax.f32 %v2860_v35, %v2864_v10  ;;  %v755_v36 = vpop.f32.mrb[56].mxu0  ;;  %v1204_v53 = vmax.f32 %v1203_v22, %v2866_v59 }
 0x1d9   : > { %v757_v11 = vpop.f32.mrb[57].mxu0  ;;  %v2873_v38 = vmul.f32 0.5, %v755_v36 }
 0x1da   : > { %v2875_v61 = vmul.f32 0.5, %v757_v11  ;;  %1205 = vmax.xlane.f32.xlu1 %v1204_v53  ;;  %v1208_v45 = vmax.f32 %v1207_v16, %v2871_v46 }
 0x1db   : > { %3213 = vst [vmem:[#allocation40_spill] sm:$0xff] %v2873_v38 }
 0x1dc   : > { %3214 = vst [vmem:[#allocation41_spill] sm:$0xff] %v2875_v61  ;;  %v761_v32 = vpop.f32.mrb[58].mxu0  ;;  %v2139_v21 = vpop.f32.mrb[28].mxu1  ;;  %v1211_v10 = vmax.f32 %v2873_v38, %v2875_v61 }
 0x1dd   : > { %v2878_v14 = vmul.f32 0.5, %v761_v32  ;;  %v763_v52 = vpop.f32.mrb[59].mxu0  ;;  %v984_v0 = vpop.f32.mrb[29].mxu1  ;;  %v2889_v16 = vmul.f32 0.5, %v2139_v21 }
 0x1de   : > { %v2882_v22 = vmul.f32 0.5, %v763_v52  ;;  %v2884_v26 = vmul.f32 0.5, %v984_v0  ;;  %1209 = vmax.xlane.f32.xlu1 %v1208_v45 }
 0x1df   : > { %3215 = vst [vmem:[#allocation42_spill] sm:$0xff] %v2878_v14  ;;  %3217 = vst [vmem:[#allocation44_spill] sm:$0xff] %v2889_v16 }
 0x1e0   : > { %3216 = vst [vmem:[#allocation43_spill] sm:$0xff] %v2882_v22  ;;  %v1215_v11 = vmax.f32 %v2878_v14, %v2882_v22  ;;  %v767_v36 = vpop.f32.mrb[60].mxu0  ;;  %v1212_v53 = vmax.f32 %v1211_v10, %v2884_v26 }
 0x1e1   : > { %v769_v35 = vpop.f32.mrb[61].mxu0  ;;  %v2891_v32 = vmul.f32 0.5, %v767_v36 }
 0x1e2   : > { %v2893_v46 = vmul.f32 0.5, %v769_v35  ;;  %1213 = vmax.xlane.f32.xlu1 %v1212_v53  ;;  %v1216_v0 = vmax.f32 %v1215_v11, %v2889_v16 }
 0x1e3   : > { %3218 = vst [vmem:[#allocation45_spill] sm:$0xff] %v2891_v32 }
 0x1e4   : > { %3219 = vst [vmem:[#allocation46_spill] sm:$0xff] %v2893_v46  ;;  %v773_v61 = vpop.f32.mrb[62].mxu0  ;;  %v2142_v52 = vpop.f32.mrb[30].mxu1  ;;  %v1219_v22 = vmax.f32 %v2891_v32, %v2893_v46 }
 0x1e5   : > { %v2896_v38 = vmul.f32 0.5, %v773_v61  ;;  %v775_v45 = vpop.f32.mrb[63].mxu0  ;;  %v994_v59 = vpop.f32.mrb[31].mxu1  ;;  %v2907_v53 = vmul.f32 0.5, %v2142_v52 }
 0x1e6   : > { %v2900_v10 = vmul.f32 0.5, %v775_v45  ;;  %v2902_v21 = vmul.f32 0.5, %v994_v59  ;;  %1217 = vmax.xlane.f32.xlu1 %v1216_v0 }
 0x1e8   : > { %3220 = vst [vmem:[#allocation47_spill] sm:$0xff] %v2900_v10  ;;  %v1223_v35 = vmax.f32 %v2896_v38, %v2900_v10  ;;  %v1220_v36 = vmax.f32 %v1219_v22, %v2902_v21 }
 0x1ea   : > { %1221 = vmax.xlane.f32.xlu1 %v1220_v36  ;;  %v1224_v61 = vmax.f32 %v1223_v35, %v2907_v53 }
 0x1ee   : > { %1225 = vmax.xlane.f32.xlu1 %v1224_v61 }
 0x1ff   : > { %v1102_v11 = vpop.xlane.xlu1 %1101 }
 0x200   : > { %v1227_v16 = vsub.f32 %v2622_v40, %v1102_v11  ;;  %v1228_v45 = vsub.f32 %v2624_v41, %v1102_v11  ;;  %v1229_v59 = vsub.f32 %v2630_v48, %v1102_v11 }
 0x202   : > { %v1323_v46 = vmul.f32 1.442695, %v1227_v16  ;;  %v1325_v0 = vmul.f32 1.442695, %v1228_v45  ;;  %v1327_v32 = vmul.f32 1.442695, %v1229_v59 }
 0x203   : > { %v1106_v14 = vpop.xlane.xlu1 %1105 }
 0x204   : > { %v1230_v10 = vsub.f32 %v2626_v44, %v1106_v14  ;;  %v1231_v22 = vsub.f32 %v2628_v47, %v1106_v14  ;;  %v1232_v52 = vsub.f32 %v2637_v54, %v1106_v14  ;;  %2259 = vpow2.f32 %v1323_v46 }
 0x205   : > { %2261 = vpow2.f32 %v1325_v0 }
 0x206   : > { %v1329_v35 = vmul.f32 1.442695, %v1230_v10  ;;  %v1331_v36 = vmul.f32 1.442695, %v1231_v22  ;;  %v1333_v61 = vmul.f32 1.442695, %v1232_v52  ;;  %2263 = vpow2.f32 %v1327_v32 }
 0x207   : > { %v1110_v40 = vpop.xlane.xlu1 %1109 }
 0x208   : > { %2265 = vpow2.f32 %v1329_v35  ;;  %v1233_v41 = vsub.f32 %v2639_v55, %v1110_v40  ;;  %v1234_v48 = vsub.f32 %v2641_v56, %v1110_v40  ;;  %v1235_v16 = vsub.f32 %v2650_v2, %v1110_v40  ;;  %v2935_v40 = vld [vmem:[%s2931_s15 + $0x10] sm:$0x1f] }
 0x209   : > { %2267 = vpow2.f32 %v1331_v36  ;;  %2091 = vmatprep.mubr.f32.mxu1 %v2935_v40 }
 0x20a   : > { %2269 = vpow2.f32 %v1333_v61  ;;  %v1335_v44 = vmul.f32 1.442695, %v1233_v41  ;;  %v1337_v47 = vmul.f32 1.442695, %v1234_v48  ;;  %v1339_v11 = vmul.f32 1.442695, %v1235_v16 }
 0x20b   : > { %v1114_v54 = vpop.xlane.xlu1 %1113 }
 0x20c   : > { %v1236_v14 = vsub.f32 %v2644_v60, %v1114_v54  ;;  %v1237_v46 = vsub.f32 %v2648_v1, %v1114_v54  ;;  %v1238_v32 = vsub.f32 %v2655_v7, %v1114_v54  ;;  %2271 = vpow2.f32 %v1335_v44 }
 0x20d   : > { %2273 = vpow2.f32 %v1337_v47 }
 0x20e   : > { %v1341_v55 = vmul.f32 1.442695, %v1236_v14  ;;  %v1343_v10 = vmul.f32 1.442695, %v1237_v46  ;;  %v1345_v56 = vmul.f32 1.442695, %v1238_v32  ;;  %v2260_v45 = vpop.eup %2259  ;;  %2275 = vpow2.f32 %v1339_v11 }
 0x20f   : > { %v1118_v2 = vpop.xlane.xlu1 %1117  ;;  %v2262_v59 = vpop.eup %2261 }
 0x210   : > { %2277 = vpow2.f32 %v1341_v55  ;;  %v1239_v0 = vsub.f32 %v2657_v8, %v1118_v2  ;;  %v1240_v22 = vsub.f32 %v2659_v9, %v1118_v2  ;;  %v1241_v60 = vsub.f32 %v2668_v18, %v1118_v2  ;;  %v2926_v1 = vpop.eup %2263  ;;  %v1516_v18 = vld [vmem:[%s2931_s15 + $0x8] sm:$0x1f] }
 0x211   : > { %2279 = vpow2.f32 %v1343_v10  ;;  %1582 = vmatprep.mubr.f32.mxu0 %v1516_v18 }
 0x212   : > { %v2266_v7 = vpop.eup %2265  ;;  %2281 = vpow2.f32 %v1345_v56  ;;  %v1347_v52 = vmul.f32 1.442695, %v1239_v0  ;;  %v1349_v35 = vmul.f32 1.442695, %v1240_v22  ;;  %v1351_v36 = vmul.f32 1.442695, %v1241_v60 }
 0x213   : > { %v2268_v8 = vpop.eup %2267  ;;  %v1122_v9 = vpop.xlane.xlu1 %1121  ;;  %v2145_v61 = vpack.c.bf16 %v2266_v7, %v2260_v45 }
 0x214   : > { %v2937_v41 = vpop.eup %2269  ;;  %v1242_v48 = vsub.f32 %v2662_v13, %v1122_v9  ;;  %v1243_v16 = vsub.f32 %v2666_v17, %v1122_v9  ;;  %v1244_v44 = vsub.f32 %v2673_v23, %v1122_v9  ;;  %2283 = vpow2.f32 %v1347_v52 }
 0x215   : > { %v2143_v47 = vpack.c.bf16 %v2268_v8, %v2262_v59  ;;  %v2209_v11 = vpack.c.bf16 %v2937_v41, %v2926_v1  ;;  %2285 = vpow2.f32 %v1349_v35  ;;  %v3245_v41 = vld [vmem:[#allocation25_spill] sm:$0xff] }
 0x216   : > { %v1353_v54 = vmul.f32 1.442695, %v1242_v48  ;;  %v1355_v14 = vmul.f32 1.442695, %v1243_v16  ;;  %v1357_v46 = vmul.f32 1.442695, %v1244_v44  ;;  %v2272_v32 = vpop.eup %2271  ;;  %2287 = vpow2.f32 %v1351_v36 }
 0x217   : > { %2144 = vmatprep.subr.bf16.mxu0 %v2143_v47  ;;  %v1126_v13 = vpop.xlane.xlu1 %1125  ;;  %v2274_v55 = vpop.eup %2273 }
 0x218   : > { %2289 = vpow2.f32 %v1353_v54  ;;  %2146 = vmatpush1.bf16.xpose.msra.mxu0 %v2145_v61  ;;  %v1245_v17 = vsub.f32 %v2675_v24, %v1126_v13  ;;  %v1246_v23 = vsub.f32 %v2677_v25, %v1126_v13  ;;  %v1247_v10 = vsub.f32 %v2686_v34, %v1126_v13  ;;  %v2948_v56 = vpop.eup %2275 }
 0x219   : > { %2291 = vpow2.f32 %v1355_v14 }
 0x21a   : > { %v2278_v45 = vpop.eup %2277  ;;  %2293 = vpow2.f32 %v1357_v46  ;;  %v1359_v2 = vmul.f32 1.442695, %v1245_v17  ;;  %v1361_v59 = vmul.f32 1.442695, %v1246_v23  ;;  %v1363_v22 = vmul.f32 1.442695, %v1247_v10 }
 0x21b   : > { %v2280_v0 = vpop.eup %2279  ;;  %v1130_v60 = vpop.xlane.xlu1 %1129  ;;  %v2149_v35 = vpack.c.bf16 %v2278_v45, %v2272_v32 }
 0x21c   : > { %v2950_v7 = vpop.eup %2281  ;;  %v1248_v52 = vsub.f32 %v2680_v29, %v1130_v60  ;;  %v1249_v24 = vsub.f32 %v2684_v33, %v1130_v60  ;;  %v1250_v25 = vsub.f32 %v2691_v39, %v1130_v60  ;;  %2295 = vpow2.f32 %v1359_v2 }
 0x21d   : > { %v2147_v34 = vpack.c.bf16 %v2280_v0, %v2274_v55  ;;  %v2213_v8 = vpack.c.bf16 %v2950_v7, %v2948_v56  ;;  %2297 = vpow2.f32 %v1361_v59  ;;  %v3251_v56 = vld [vmem:[#allocation31_spill] sm:$0xff] }
 0x21e   : > { %v1365_v36 = vmul.f32 1.442695, %v1248_v52  ;;  %v1367_v9 = vmul.f32 1.442695, %v1249_v24  ;;  %v1369_v61 = vmul.f32 1.442695, %v1250_v25  ;;  %v2284_v18 = vpop.eup %2283  ;;  %2299 = vpow2.f32 %v1363_v22 }
 0x21f   : > { %2148 = vmatprep.subr.bf16.mxu0 %v2147_v34  ;;  %v1134_v48 = vpop.xlane.xlu1 %1133  ;;  %v2286_v16 = vpop.eup %2285 }
 0x220   : > { %2301 = vpow2.f32 %v1365_v36  ;;  %2150 = vmatpush1.bf16.xpose.msra.mxu0 %v2149_v35  ;;  %v1251_v29 = vsub.f32 %v2693_v42, %v1134_v48  ;;  %v1252_v33 = vsub.f32 %v2695_v43, %v1134_v48  ;;  %v1253_v39 = vsub.f32 %v2704_v58, %v1134_v48  ;;  %v2960_v44 = vpop.eup %2287 }
 0x221   : > { %2303 = vpow2.f32 %v1367_v9 }
 0x222   : > { %v2290_v47 = vpop.eup %2289  ;;  %2305 = vpow2.f32 %v1369_v61  ;;  %v1371_v54 = vmul.f32 1.442695, %v1251_v29  ;;  %v1373_v14 = vmul.f32 1.442695, %v1252_v33  ;;  %v1375_v32 = vmul.f32 1.442695, %v1253_v39 }
 0x223   : > { %v2292_v46 = vpop.eup %2291  ;;  %v1138_v13 = vpop.xlane.xlu1 %1137  ;;  %v2153_v23 = vpack.c.bf16 %v2290_v47, %v2284_v18 }
 0x224   : > { %v2962_v55 = vpop.eup %2293  ;;  %v1254_v17 = vsub.f32 %v2698_v50, %v1138_v13  ;;  %v1255_v42 = vsub.f32 %v2702_v57, %v1138_v13  ;;  %v1256_v43 = vsub.f32 %v2709_v3, %v1138_v13  ;;  %2307 = vpow2.f32 %v1371_v54 }
 0x225   : > { %v2151_v58 = vpack.c.bf16 %v2292_v46, %v2286_v16  ;;  %v2217_v10 = vpack.c.bf16 %v2962_v55, %v2960_v44  ;;  %2309 = vpow2.f32 %v1373_v14  ;;  %v3257_v44 = vld [vmem:[#allocation37_spill] sm:$0xff] }
 0x226   : > { %v1377_v45 = vmul.f32 1.442695, %v1254_v17  ;;  %v1379_v2 = vmul.f32 1.442695, %v1255_v42  ;;  %v1381_v59 = vmul.f32 1.442695, %v1256_v43  ;;  %v2296_v0 = vpop.eup %2295  ;;  %2311 = vpow2.f32 %v1375_v32 }
 0x227   : > { %2152 = vmatprep.subr.bf16.mxu0 %v2151_v58  ;;  %v1142_v22 = vpop.xlane.xlu1 %1141  ;;  %v2298_v60 = vpop.eup %2297 }
 0x228   : > { %2313 = vpow2.f32 %v1377_v45  ;;  %2154 = vmatpush1.bf16.xpose.msra.mxu0 %v2153_v23  ;;  %v1257_v50 = vsub.f32 %v2711_v4, %v1142_v22  ;;  %v1258_v57 = vsub.f32 %v2713_v5, %v1142_v22  ;;  %v1259_v3 = vsub.f32 %v2722_v20, %v1142_v22  ;;  %v2972_v52 = vpop.eup %2299 }
 0x229   : > { %2315 = vpow2.f32 %v1379_v2 }
 0x22a   : > { %v2302_v24 = vpop.eup %2301  ;;  %2317 = vpow2.f32 %v1381_v59  ;;  %v1383_v25 = vmul.f32 1.442695, %v1257_v50  ;;  %v1385_v35 = vmul.f32 1.442695, %v1258_v57  ;;  %v1387_v36 = vmul.f32 1.442695, %v1259_v3 }
 0x22b   : > { %v2304_v34 = vpop.eup %2303  ;;  %v1146_v9 = vpop.xlane.xlu1 %1145  ;;  %v2157_v48 = vpack.c.bf16 %v2302_v24, %v2296_v0 }
 0x22c   : > { %v2974_v61 = vpop.eup %2305  ;;  %v1260_v18 = vsub.f32 %v2716_v12, %v1146_v9  ;;  %v1261_v4 = vsub.f32 %v2720_v19, %v1146_v9  ;;  %v1262_v5 = vsub.f32 %v2727_v28, %v1146_v9  ;;  %2319 = vpow2.f32 %v1383_v25 }
 0x22d   : > { %v2155_v20 = vpack.c.bf16 %v2304_v34, %v2298_v60  ;;  %v2221_v16 = vpack.c.bf16 %v2974_v61, %v2972_v52  ;;  %2321 = vpow2.f32 %v1385_v35  ;;  %v3262_v52 = vld [vmem:[#allocation43_spill] sm:$0xff] }
 0x22e   : > { %v1389_v29 = vmul.f32 1.442695, %v1260_v18  ;;  %v1391_v33 = vmul.f32 1.442695, %v1261_v4  ;;  %v1393_v39 = vmul.f32 1.442695, %v1262_v5  ;;  %v2308_v47 = vpop.eup %2307  ;;  %2323 = vpow2.f32 %v1387_v36 }
 0x22f   : > { %2156 = vmatprep.subr.bf16.mxu0 %v2155_v20  ;;  %v1150_v54 = vpop.xlane.xlu1 %1149  ;;  %v2310_v14 = vpop.eup %2309 }
 0x230   : > { %2325 = vpow2.f32 %v1389_v29  ;;  %2158 = vmatpush1.bf16.xpose.msra.mxu0 %v2157_v48  ;;  %v1263_v12 = vsub.f32 %v2729_v30, %v1150_v54  ;;  %v1264_v19 = vsub.f32 %v2731_v31, %v1150_v54  ;;  %v2983_v28 = vpop.eup %2311  ;;  %v1265_v17 = vsub.f32 %v2740_v51, %v1150_v54 }
 0x231   : > { %2327 = vpow2.f32 %v1391_v33 }
 0x232   : > { %v2314_v46 = vpop.eup %2313  ;;  %2329 = vpow2.f32 %v1393_v39  ;;  %v1395_v32 = vmul.f32 1.442695, %v1263_v12  ;;  %v1397_v42 = vmul.f32 1.442695, %v1264_v19  ;;  %v1399_v50 = vmul.f32 1.442695, %v1265_v17 }
 0x233   : > { %v2316_v13 = vpop.eup %2315  ;;  %v1154_v43 = vpop.xlane.xlu1 %1153  ;;  %v2161_v31 = vpack.c.bf16 %v2314_v46, %v2308_v47  ;;  %v3224_v46 = vld [vmem:[#allocation5_spill] sm:$0xff] }
 0x234   : > { %v2986_v23 = vpop.eup %2317  ;;  %v1266_v58 = vsub.f32 %v2734_v37, %v1154_v43  ;;  %v1267_v45 = vsub.f32 %v2738_v49, %v1154_v43  ;;  %v1268_v30 = vsub.f32 %v2745_v62, %v1154_v43  ;;  %v2159_v2 = vpack.c.bf16 %v2316_v13, %v2310_v14  ;;  %v3225_v43 = vld [vmem:[#allocation8_spill] sm:$0xff] }
 0x235   : > { %v2225_v59 = vpack.c.bf16 %v2986_v23, %v2983_v28  ;;  %2331 = vpow2.f32 %v1395_v32  ;;  %v3266_v28 = vld [vmem:[#allocation47_spill] sm:$0xff] }
 0x236   : > { %v1401_v0 = vmul.f32 1.442695, %v1266_v58  ;;  %v1403_v22 = vmul.f32 1.442695, %v1267_v45  ;;  %v1405_v60 = vmul.f32 1.442695, %v1268_v30  ;;  %v2320_v51 = vpop.eup %2319  ;;  %2333 = vpow2.f32 %v1397_v42  ;;  %2160 = vmatprep.subr.bf16.mxu0 %v2159_v2 }
 0x237   : > { %v1158_v57 = vpop.xlane.xlu1 %1157  ;;  %v2322_v3 = vpop.eup %2321  ;;  %v3226_v2 = vld [vmem:[#allocation6_spill] sm:$0xff] }
 0x238   : > { %2335 = vpow2.f32 %v1401_v0  ;;  %2162 = vmatpush1.bf16.xpose.msra.mxu0 %v2161_v31  ;;  %v1269_v37 = vsub.f32 %v2747_v63, %v1158_v57  ;;  %v1270_v49 = vsub.f32 %v2749_v6, %v1158_v57  ;;  %v1271_v62 = vsub.f32 %v2758_v27, %v1158_v57  ;;  %v2996_v24 = vpop.eup %2323  ;;  %v3221_v63 = vld [vmem:[#allocation2_spill] sm:$0xff]  ;;  %v3222_v6 = vld [vmem:[#allocation3_spill] sm:$0xff] }
 0x239   : > { %2337 = vpow2.f32 %v1403_v22  ;;  %v3227_v22 = vld [vmem:[#allocation7_spill] sm:$0xff] }
 0x23a   : > { %v2326_v25 = vpop.eup %2325  ;;  %2339 = vpow2.f32 %v1405_v60  ;;  %v1407_v35 = vmul.f32 1.442695, %v1269_v37  ;;  %v1409_v34 = vmul.f32 1.442695, %v1270_v49  ;;  %v1411_v9 = vmul.f32 1.442695, %v1271_v62 }
 0x23b   : > { %v2328_v36 = vpop.eup %2327  ;;  %2341 = vpow2.f32 %v1399_v50  ;;  %v1162_v18 = vpop.xlane.xlu1 %1161  ;;  %v2165_v27 = vpack.c.bf16 %v2326_v25, %v2320_v51  ;;  %v3228_v51 = vld [vmem:[#allocation9_spill] sm:$0xff] }
 0x23c   : > { %v2998_v4 = vpop.eup %2329  ;;  %v1272_v5 = vsub.f32 %v2752_v15, %v1162_v18  ;;  %v1273_v48 = vsub.f32 %v3221_v63, %v1162_v18  ;;  %v1274_v20 = vsub.f32 %v3222_v6, %v1162_v18  ;;  %2343 = vpow2.f32 %v1407_v35  ;;  %v3223_v15 = vld [vmem:[#allocation4_spill] sm:$0xff]  ;;  %v3229_v63 = vld [vmem:[#allocation10_spill] sm:$0xff]  ;;  %v3230_v6 = vld [vmem:[#allocation11_spill] sm:$0xff] }
 0x23d   : > { %v2163_v29 = vpack.c.bf16 %v2328_v36, %v2322_v3  ;;  %v2229_v33 = vpack.c.bf16 %v2998_v4, %v2996_v24  ;;  %2345 = vpow2.f32 %v1409_v34 }
 0x23e   : > { %v1413_v39 = vmul.f32 1.442695, %v1272_v5  ;;  %v1415_v47 = vmul.f32 1.442695, %v1273_v48  ;;  %v1417_v54 = vmul.f32 1.442695, %v1274_v20  ;;  %2347 = vpow2.f32 %v1411_v9 }
 0x23f   : > { %2164 = vmatprep.subr.bf16.mxu0 %v2163_v29  ;;  %v1166_v14 = vpop.xlane.xlu1 %1165  ;;  %v2332_v12 = vpop.eup %2331 }
 0x240   : > { %2349 = vpow2.f32 %v1413_v39  ;;  %2166 = vmatpush1.bf16.xpose.msra.mxu0 %v2165_v27  ;;  %v1275_v19 = vsub.f32 %v3223_v15, %v1166_v14  ;;  %v1276_v32 = vsub.f32 %v3224_v46, %v1166_v14  ;;  %v2334_v13 = vpop.eup %2333  ;;  %v1277_v58 = vsub.f32 %v3225_v43, %v1166_v14  ;;  %v3231_v27 = vld [vmem:[#allocation14_spill] sm:$0xff]  ;;  %v3234_v43 = vld [vmem:[#allocation15_spill] sm:$0xff] }
 0x241   : > { %2351 = vpow2.f32 %v1415_v47  ;;  %v1170_v17 = vpop.xlane.xlu0 %1169 }
 0x242   : > { %v2336_v42 = vpop.eup %2335  ;;  %2353 = vpow2.f32 %v1417_v54  ;;  %v1419_v45 = vmul.f32 1.442695, %v1275_v19  ;;  %v1421_v30 = vmul.f32 1.442695, %v1276_v32  ;;  %v1278_v0 = vsub.f32 %v3226_v2, %v1170_v17  ;;  %v3232_v32 = vld [vmem:[#allocation12_spill] sm:$0xff] }
 0x243   : > { %v2338_v31 = vpop.eup %2337  ;;  %v1279_v60 = vsub.f32 %v3227_v22, %v1170_v17  ;;  %v1280_v50 = vsub.f32 %v3228_v51, %v1170_v17  ;;  %v2169_v37 = vpack.c.bf16 %v2336_v42, %v2332_v12  ;;  %v1423_v34 = vmul.f32 1.442695, %v1277_v58  ;;  %v3233_v17 = vld [vmem:[#allocation13_spill] sm:$0xff] }
 0x244   : > { %v3011_v57 = vpop.eup %2339  ;;  %v2167_v3 = vpack.c.bf16 %v2338_v31, %v2334_v13  ;;  %2355 = vpow2.f32 %v1419_v45  ;;  %v1425_v62 = vmul.f32 1.442695, %v1278_v0 }
 0x245   : > { %v3013_v49 = vpop.eup %2341  ;;  %v1427_v25 = vmul.f32 1.442695, %v1279_v60  ;;  %v1429_v35 = vmul.f32 1.442695, %v1280_v50  ;;  %2357 = vpow2.f32 %v1421_v30 }
 0x246   : > { %2168 = vmatprep.subr.bf16.mxu0 %v2167_v3  ;;  %v2233_v36 = vpack.c.bf16 %v3011_v57, %v3013_v49  ;;  %v2344_v9 = vpop.eup %2343  ;;  %2359 = vpow2.f32 %v1425_v62  ;;  %v3235_v3 = vld [vmem:[#allocation16_spill] sm:$0xff]  ;;  %v3236_v62 = vld [vmem:[#allocation17_spill] sm:$0xff]  ;;  %v3267_v57 = vmov 0.0   ;;  %v1675_v49 = vld [vmem:[%s338_s19 + $0x8] sm:$0xff] }
 0x247   : > { %v1174_v18 = vpop.xlane.xlu1 %1173  ;;  %v2346_v5 = vpop.eup %2345  ;;  %2361 = vpow2.f32 %v1427_v25 }
 0x248   : > { %2170 = vmatpush1.bf16.xpose.msra.mxu0 %v2169_v37  ;;  %v1281_v48 = vsub.f32 %v3229_v63, %v1174_v18  ;;  %v1282_v20 = vsub.f32 %v3230_v6, %v1174_v18  ;;  %v1283_v29 = vsub.f32 %v3231_v27, %v1174_v18  ;;  %v3020_v39 = vpop.eup %2347  ;;  %2363 = vpow2.f32 %v1429_v35  ;;  %v3237_v35 = vld [vmem:[#allocation20_spill] sm:$0xff] }
 0x249   : > { %2365 = vpow2.f32 %v1423_v34 }
 0x24a   : > { %v2350_v47 = vpop.eup %2349  ;;  %v1431_v54 = vmul.f32 1.442695, %v1281_v48  ;;  %v1433_v14 = vmul.f32 1.442695, %v1282_v20  ;;  %v1435_v15 = vmul.f32 1.442695, %v1283_v29 }
 0x24b   : > { %v2352_v12 = vpop.eup %2351  ;;  %v1178_v19 = vpop.xlane.xlu1 %1177  ;;  %v2173_v45 = vpack.c.bf16 %v2350_v47, %v2344_v9  ;;  %v3238_v47 = vld [vmem:[#allocation18_spill] sm:$0xff] }
 0x24c   : > { %v3022_v46 = vpop.eup %2353  ;;  %v1284_v13 = vsub.f32 %v3232_v32, %v1178_v19  ;;  %v1285_v42 = vsub.f32 %v3233_v17, %v1178_v19  ;;  %v1286_v58 = vsub.f32 %v3234_v43, %v1178_v19  ;;  %2367 = vpow2.f32 %v1431_v54 }
 0x24d   : > { %v2171_v30 = vpack.c.bf16 %v2352_v12, %v2346_v5  ;;  %v2237_v31 = vpack.c.bf16 %v3022_v46, %v3020_v39  ;;  %2369 = vpow2.f32 %v1433_v14  ;;  %v3239_v14 = vld [vmem:[#allocation19_spill] sm:$0xff]  ;;  %v1673_v39 = vld [vmem:[%s3124_s5] sm:$0xff]  ;;  %v2464_v46 = vmov 0  }
 0x24e   : > { %v1437_v2 = vmul.f32 1.442695, %v1284_v13  ;;  %v1439_v0 = vmul.f32 1.442695, %v1285_v42  ;;  %v1441_v22 = vmul.f32 1.442695, %v1286_v58  ;;  %v2356_v60 = vpop.eup %2355  ;;  %2371 = vpow2.f32 %v1435_v15  ;;  %2255 = vset.pattern.permute.xlu1 %v2464_v46  ;;  %2256 = vset.pattern.permute.xlu0 %v2464_v46 }
 0x24f   : > { %2172 = vmatprep.subr.bf16.mxu0 %v2171_v30  ;;  %v1182_v51 = vpop.xlane.xlu1 %1181  ;;  %v2358_v50 = vpop.eup %2357  ;;  %v3240_v15 = vld [vmem:[#allocation21_spill] sm:$0xff] }
 0x250   : > { %2373 = vpow2.f32 %v1437_v2  ;;  %2174 = vmatpush1.bf16.xpose.msra.mxu0 %v2173_v45  ;;  %v1287_v37 = vsub.f32 %v3235_v3, %v1182_v51  ;;  %v1288_v25 = vsub.f32 %v3236_v62, %v1182_v51  ;;  %v1289_v34 = vsub.f32 %v3237_v35, %v1182_v51  ;;  %v2360_v9 = vpop.eup %2359  ;;  %v3241_v2 = vld [vmem:[#allocation22_spill] sm:$0xff] }
 0x251   : > { %2375 = vpow2.f32 %v1439_v0  ;;  %v2362_v18 = vpop.eup %2361  ;;  %v2177_v13 = vpack.c.bf16 %v2360_v9, %v2356_v60  ;;  %v3243_v60 = vld [vmem:[#allocation26_spill] sm:$0xff] }
 0x252   : > { %2377 = vpow2.f32 %v1441_v22  ;;  %v1443_v5 = vmul.f32 1.442695, %v1287_v37  ;;  %v1445_v63 = vmul.f32 1.442695, %v1288_v25  ;;  %v2364_v48 = vpop.eup %2363  ;;  %v1447_v6 = vmul.f32 1.442695, %v1289_v34 }
 0x253   : > { %v1186_v20 = vpop.xlane.xlu1 %1185  ;;  %v2175_v27 = vpack.c.bf16 %v2362_v18, %v2358_v50  ;;  %v2366_v29 = vpop.eup %2365  ;;  %v3242_v22 = vld [vmem:[#allocation23_spill] sm:$0xff] }
 0x254   : > { %v1290_v54 = vsub.f32 %v3238_v47, %v1186_v20  ;;  %v1291_v12 = vsub.f32 %v3239_v14, %v1186_v20  ;;  %v1292_v19 = vsub.f32 %v3240_v15, %v1186_v20  ;;  %2379 = vpow2.f32 %v1443_v5  ;;  %v3244_v5 = vld [vmem:[#allocation24_spill] sm:$0xff] }
 0x255   : > { %2176 = vmatprep.subr.bf16.mxu0 %v2175_v27  ;;  %v2207_v32 = vpack.c.bf16 %v2364_v48, %v2366_v29  ;;  %2381 = vpow2.f32 %v1445_v63  ;;  %v3246_v63 = vld [vmem:[#allocation27_spill] sm:$0xff] }
 0x256   : > { %v1449_v17 = vmul.f32 1.442695, %v1290_v54  ;;  %v1451_v42 = vmul.f32 1.442695, %v1291_v12  ;;  %v1453_v43 = vmul.f32 1.442695, %v1292_v19  ;;  %v2368_v58 = vpop.eup %2367  ;;  %2383 = vpow2.f32 %v1447_v6 }
 0x257   : > { %2208 = vmatprep.subr.bf16.mxu1 %v2207_v32  ;;  %v1190_v45 = vpop.xlane.xlu1 %1189  ;;  %v2370_v30 = vpop.eup %2369  ;;  %v3247_v19 = vld [vmem:[#allocation28_spill] sm:$0xff] }
 0x258   : > { %2385 = vpow2.f32 %v1449_v17  ;;  %2210 = vmatpush3.bf16.xpose.msra.mxu1 %v2209_v11  ;;  %2178 = vmatpush1.bf16.xpose.msra.mxu0 %v2177_v13  ;;  %v1293_v0 = vsub.f32 %v3241_v2, %v1190_v45  ;;  %v1294_v51 = vsub.f32 %v3242_v22, %v1190_v45  ;;  %v1295_v50 = vsub.f32 %v3243_v60, %v1190_v45  ;;  %v2372_v3 = vpop.eup %2371  ;;  %v3248_v13 = vld [vmem:[#allocation29_spill] sm:$0xff] }
 0x259   : > { %2387 = vpow2.f32 %v1451_v42  ;;  %v3249_v42 = vld [vmem:[#allocation32_spill] sm:$0xff] }
 0x25a   : > { %v2374_v37 = vpop.eup %2373  ;;  %2389 = vpow2.f32 %v1453_v43  ;;  %v1455_v62 = vmul.f32 1.442695, %v1293_v0  ;;  %v1457_v25 = vmul.f32 1.442695, %v1294_v51  ;;  %v1459_v34 = vmul.f32 1.442695, %v1295_v50 }
 0x25b   : > { %v2376_v35 = vpop.eup %2375  ;;  %v1194_v9 = vpop.xlane.xlu1 %1193  ;;  %v2181_v6 = vpack.c.bf16 %v2374_v37, %v2368_v58  ;;  %v3250_v50 = vld [vmem:[#allocation30_spill] sm:$0xff] }
 0x25c   : > { %v2378_v18 = vpop.eup %2377  ;;  %v1296_v1 = vsub.f32 %v3244_v5, %v1194_v9  ;;  %v1297_v11 = vsub.f32 %v3245_v41, %v1194_v9  ;;  %v1298_v48 = vsub.f32 %v3246_v63, %v1194_v9  ;;  %2391 = vpow2.f32 %v1455_v62 }
 0x25d   : > { %v2179_v20 = vpack.c.bf16 %v2376_v35, %v2370_v30  ;;  %v2211_v27 = vpack.c.bf16 %v2378_v18, %v2372_v3  ;;  %2393 = vpow2.f32 %v1457_v25 }
 0x25e   : > { %v1461_v29 = vmul.f32 1.442695, %v1296_v1  ;;  %v1463_v47 = vmul.f32 1.442695, %v1297_v11  ;;  %v1465_v54 = vmul.f32 1.442695, %v1298_v48  ;;  %v2380_v14 = vpop.eup %2379  ;;  %2395 = vpow2.f32 %v1459_v34 }
 0x25f   : > { %2180 = vmatprep.subr.bf16.mxu0 %v2179_v20  ;;  %2212 = vmatprep.subr.bf16.mxu1 %v2211_v27  ;;  %v1198_v12 = vpop.xlane.xlu1 %1197  ;;  %v2382_v15 = vpop.eup %2381  ;;  %v3253_v11 = vld [vmem:[#allocation34_spill] sm:$0xff]  ;;  %v3254_v48 = vld [vmem:[#allocation35_spill] sm:$0xff] }
 0x260   : > { %2397 = vpow2.f32 %v1461_v29  ;;  %2182 = vmatpush1.bf16.xpose.msra.mxu0 %v2181_v6  ;;  %2214 = vmatpush3.bf16.xpose.msra.mxu1 %v2213_v8  ;;  %v1299_v32 = vsub.f32 %v3247_v19, %v1198_v12  ;;  %v1300_v17 = vsub.f32 %v3248_v13, %v1198_v12  ;;  %v1301_v43 = vsub.f32 %v3249_v42, %v1198_v12  ;;  %v2384_v58 = vpop.eup %2383  ;;  %v3252_v8 = vld [vmem:[#allocation33_spill] sm:$0xff]  ;;  %v3255_v20 = vld [vmem:[#allocation38_spill] sm:$0xff]  ;;  %v3256_v13 = vld [vmem:[#allocation36_spill] sm:$0xff] }
 0x261   : > { %2399 = vpow2.f32 %v1463_v47 }
 0x262   : > { %v2386_v45 = vpop.eup %2385  ;;  %2401 = vpow2.f32 %v1465_v54  ;;  %v1467_v30 = vmul.f32 1.442695, %v1299_v32  ;;  %v1469_v2 = vmul.f32 1.442695, %v1300_v17  ;;  %v1471_v22 = vmul.f32 1.442695, %v1301_v43 }
 0x263   : > { %v2388_v0 = vpop.eup %2387  ;;  %v1202_v51 = vpop.xlane.xlu1 %1201  ;;  %v2185_v62 = vpack.c.bf16 %v2386_v45, %v2380_v14 }
 0x264   : > { %v2390_v60 = vpop.eup %2389  ;;  %v1302_v3 = vsub.f32 %v3250_v50, %v1202_v51  ;;  %v1303_v7 = vsub.f32 %v3251_v56, %v1202_v51  ;;  %v1304_v37 = vsub.f32 %v3252_v8, %v1202_v51  ;;  %2403 = vpow2.f32 %v1467_v30  ;;  %v3259_v50 = vld [vmem:[#allocation40_spill] sm:$0xff]  ;;  %v3260_v56 = vld [vmem:[#allocation41_spill] sm:$0xff] }
 0x265   : > { %v2183_v25 = vpack.c.bf16 %v2388_v0, %v2382_v15  ;;  %v2215_v35 = vpack.c.bf16 %v2390_v60, %v2384_v58  ;;  %2405 = vpow2.f32 %v1469_v2 }
 0x266   : > { %v1473_v34 = vmul.f32 1.442695, %v1302_v3  ;;  %v1475_v9 = vmul.f32 1.442695, %v1303_v7  ;;  %v1477_v18 = vmul.f32 1.442695, %v1304_v37  ;;  %v2392_v5 = vpop.eup %2391  ;;  %2407 = vpow2.f32 %v1471_v22 }
 0x267   : > { %2184 = vmatprep.subr.bf16.mxu0 %v2183_v25  ;;  %2216 = vmatprep.subr.bf16.mxu1 %v2215_v35  ;;  %v1206_v1 = vpop.xlane.xlu1 %1205  ;;  %v2394_v41 = vpop.eup %2393 }
 0x268   : > { %2409 = vpow2.f32 %v1473_v34  ;;  %2186 = vmatpush1.bf16.xpose.msra.mxu0 %v2185_v62  ;;  %2218 = vmatpush3.bf16.xpose.msra.mxu1 %v2217_v10  ;;  %v1305_v63 = vsub.f32 %v3253_v11, %v1206_v1  ;;  %v1306_v6 = vsub.f32 %v3254_v48, %v1206_v1  ;;  %v1307_v27 = vsub.f32 %v3255_v20, %v1206_v1  ;;  %v2396_v29 = vpop.eup %2395  ;;  %v3258_v10 = vld [vmem:[#allocation39_spill] sm:$0xff]  ;;  %v3261_v1 = vld [vmem:[#allocation42_spill] sm:$0xff] }
 0x269   : > { %2411 = vpow2.f32 %v1475_v9 }
 0x26a   : > { %v2398_v47 = vpop.eup %2397  ;;  %2413 = vpow2.f32 %v1477_v18  ;;  %v1479_v54 = vmul.f32 1.442695, %v1305_v63  ;;  %v1481_v14 = vmul.f32 1.442695, %v1306_v6  ;;  %v1483_v15 = vmul.f32 1.442695, %v1307_v27 }
 0x26b   : > { %v2400_v12 = vpop.eup %2399  ;;  %v1210_v19 = vpop.xlane.xlu1 %1209  ;;  %v2189_v43 = vpack.c.bf16 %v2398_v47, %v2392_v5 }
 0x26c   : > { %v2402_v32 = vpop.eup %2401  ;;  %v1308_v17 = vsub.f32 %v3256_v13, %v1210_v19  ;;  %v1309_v55 = vsub.f32 %v3257_v44, %v1210_v19  ;;  %v1310_v42 = vsub.f32 %v3258_v10, %v1210_v19  ;;  %2415 = vpow2.f32 %v1479_v54 }
 0x26d   : > { %v2187_v58 = vpack.c.bf16 %v2400_v12, %v2394_v41  ;;  %v2219_v45 = vpack.c.bf16 %v2402_v32, %v2396_v29  ;;  %2417 = vpow2.f32 %v1481_v14  ;;  %v3264_v14 = vld [vmem:[#allocation45_spill] sm:$0xff] }
 0x26e   : > { %v1485_v30 = vmul.f32 1.442695, %v1308_v17  ;;  %v1487_v2 = vmul.f32 1.442695, %v1309_v55  ;;  %v1489_v0 = vmul.f32 1.442695, %v1310_v42  ;;  %v2404_v22 = vpop.eup %2403  ;;  %2419 = vpow2.f32 %v1483_v15 }
 0x26f   : > { %2188 = vmatprep.subr.bf16.mxu0 %v2187_v58  ;;  %2220 = vmatprep.subr.bf16.mxu1 %v2219_v45  ;;  %v1214_v51 = vpop.xlane.xlu1 %1213  ;;  %v2406_v60 = vpop.eup %2405  ;;  %v3265_v15 = vld [vmem:[#allocation46_spill] sm:$0xff] }
 0x270   : > { %2421 = vpow2.f32 %v1485_v30  ;;  %2190 = vmatpush1.bf16.xpose.msra.mxu0 %v2189_v43  ;;  %2222 = vmatpush3.bf16.xpose.msra.mxu1 %v2221_v16  ;;  %v1311_v3 = vsub.f32 %v3259_v50, %v1214_v51  ;;  %v1312_v7 = vsub.f32 %v3260_v56, %v1214_v51  ;;  %v1313_v8 = vsub.f32 %v2884_v26, %v1214_v51  ;;  %v2408_v37 = vpop.eup %2407  ;;  %v3263_v16 = vld [vmem:[#allocation44_spill] sm:$0xff] }
 0x271   : > { %2423 = vpow2.f32 %v1487_v2 }
 0x272   : > { %v2410_v62 = vpop.eup %2409  ;;  %2425 = vpow2.f32 %v1489_v0  ;;  %v1491_v25 = vmul.f32 1.442695, %v1311_v3  ;;  %v1493_v35 = vmul.f32 1.442695, %v1312_v7  ;;  %v1495_v9 = vmul.f32 1.442695, %v1313_v8 }
 0x273   : > { %v2412_v34 = vpop.eup %2411  ;;  %v1218_v18 = vpop.xlane.xlu1 %1217  ;;  %v2193_v63 = vpack.c.bf16 %v2410_v62, %v2404_v22 }
 0x274   : > { %v2414_v5 = vpop.eup %2413  ;;  %v1314_v41 = vsub.f32 %v3261_v1, %v1218_v18  ;;  %v1315_v61 = vsub.f32 %v3262_v52, %v1218_v18  ;;  %v1316_v11 = vsub.f32 %v3263_v16, %v1218_v18  ;;  %2427 = vpow2.f32 %v1491_v25 }
 0x275   : > { %v2191_v48 = vpack.c.bf16 %v2412_v34, %v2406_v60  ;;  %v2223_v26 = vpack.c.bf16 %v2414_v5, %v2408_v37  ;;  %2429 = vpow2.f32 %v1493_v35  ;;  %v1515_v5 = vld [vmem:[%s2931_s15] sm:$0x1f]  ;;  %v1662_v16 = vlaneseq }
 0x276   : > { %v1497_v6 = vmul.f32 1.442695, %v1314_v41  ;;  %v1499_v20 = vmul.f32 1.442695, %v1315_v61  ;;  %v1501_v27 = vmul.f32 1.442695, %v1316_v11  ;;  %v2416_v29 = vpop.eup %2415  ;;  %2431 = vpow2.f32 %v1495_v9 }
 0x277   : > { %2192 = vmatprep.subr.bf16.mxu0 %v2191_v48  ;;  %2224 = vmatprep.subr.bf16.mxu1 %v2223_v26  ;;  %v1222_v47 = vpop.xlane.xlu1 %1221  ;;  %v2418_v54 = vpop.eup %2417 }
 0x278   : > { %2433 = vpow2.f32 %v1497_v6  ;;  %2194 = vmatpush1.bf16.xpose.msra.mxu0 %v2193_v63  ;;  %2226 = vmatpush3.bf16.xpose.msra.mxu1 %v2225_v59  ;;  %v1317_v12 = vsub.f32 %v3264_v14, %v1222_v47  ;;  %v1318_v19 = vsub.f32 %v3265_v15, %v1222_v47  ;;  %v1319_v32 = vsub.f32 %v2902_v21, %v1222_v47  ;;  %v2420_v13 = vpop.eup %2419 }
 0x279   : > { %2435 = vpow2.f32 %v1499_v20  ;;  %v1663_v63 = vshrl.u32 %v1662_v16, 7 }
 0x27a   : > { %v2422_v17 = vpop.eup %2421  ;;  %2437 = vpow2.f32 %v1501_v27  ;;  %v1503_v44 = vmul.f32 1.442695, %v1317_v12  ;;  %v1505_v55 = vmul.f32 1.442695, %v1318_v19  ;;  %v1507_v42 = vmul.f32 1.442695, %v1319_v32 }
 0x27b   : > { %v2424_v10 = vpop.eup %2423  ;;  %v1226_v43 = vpop.xlane.xlu1 %1225  ;;  %v2197_v30 = vpack.c.bf16 %v2422_v17, %v2416_v29  ;;  %v1664_v48 = vsub.s32 4, %v1663_v63 }
 0x27c   : > { %v2426_v58 = vpop.eup %2425  ;;  %v1320_v45 = vsub.f32 %v2896_v38, %v1226_v43  ;;  %v1321_v23 = vsub.f32 %v3266_v28, %v1226_v43  ;;  %v1322_v59 = vsub.f32 %v2907_v53, %v1226_v43  ;;  %2439 = vpow2.f32 %v1503_v44 }
 0x27d   : > { %v2195_v2 = vpack.c.bf16 %v2424_v10, %v2418_v54  ;;  %v2227_v21 = vpack.c.bf16 %v2426_v58, %v2420_v13  ;;  %2441 = vpow2.f32 %v1505_v55  ;;  %v1672_v54 = vld [vmem:[%s3123_s4] sm:$0xff] }
 0x27e   : > { %v1509_v0 = vmul.f32 1.442695, %v1320_v45  ;;  %v1511_v22 = vmul.f32 1.442695, %v1321_v23  ;;  %v1513_v51 = vmul.f32 1.442695, %v1322_v59  ;;  %v2428_v60 = vpop.eup %2427  ;;  %2443 = vpow2.f32 %v1507_v42 }
 0x27f   : > { %2196 = vmatprep.subr.bf16.mxu0 %v2195_v2  ;;  %2228 = vmatprep.subr.bf16.mxu1 %v2227_v21  ;;  %v2430_v50 = vpop.eup %2429 }
 0x280   : > { %2445 = vpow2.f32 %v1509_v0  ;;  %2198 = vmatpush1.bf16.xpose.msra.mxu0 %v2197_v30  ;;  %2230 = vmatpush3.bf16.xpose.msra.mxu1 %v2229_v33  ;;  %v2432_v38 = vpop.eup %2431 }
 0x281   : > { %2447 = vpow2.f32 %v1511_v22 }
 0x282   : > { %v2434_v53 = vpop.eup %2433  ;;  %2449 = vpow2.f32 %v1513_v51 }
 0x283   : > { %v2436_v3 = vpop.eup %2435  ;;  %v2201_v8 = vpack.c.bf16 %v2434_v53, %v2428_v60 }
 0x284   : > { %v2438_v56 = vpop.eup %2437  ;;  %v2199_v7 = vpack.c.bf16 %v2436_v3, %v2430_v50 }
 0x285   : > { %v2231_v37 = vpack.c.bf16 %v2438_v56, %v2432_v38 }
 0x286   : > { %2200 = vmatprep.subr.bf16.mxu0 %v2199_v7  ;;  %v2440_v62 = vpop.eup %2439 }
 0x287   : > { %2232 = vmatprep.subr.bf16.mxu1 %v2231_v37  ;;  %v2442_v25 = vpop.eup %2441 }
 0x288   : > { %2202 = vmatpush1.bf16.xpose.msra.mxu0 %v2201_v8  ;;  %2234 = vmatpush3.bf16.xpose.msra.mxu1 %v2233_v36  ;;  %v2444_v24 = vpop.eup %2443  ;;  %v1674_v36 = vld [vmem:[%s338_s19] sm:$0xff] }
 0x28a   : > { %v2446_v4 = vpop.eup %2445 }
 0x28b   : > { %v2448_v33 = vpop.eup %2447  ;;  %v2205_v9 = vpack.c.bf16 %v2446_v4, %v2440_v62 }
 0x28c   : > { %v2450_v35 = vpop.eup %2449  ;;  %v2203_v34 = vpack.c.bf16 %v2448_v33, %v2442_v25 }
 0x28d   : > { %v2235_v18 = vpack.c.bf16 %v2450_v35, %v2444_v24 }
 0x28e   : > { %2204 = vmatprep.subr.bf16.mxu0 %v2203_v34 }
 0x28f   : > { %2236 = vmatprep.subr.bf16.mxu1 %v2235_v18 }
 0x290   : > { %2206 = vmatpush1.bf16.xpose.msra.mxu0 %v2205_v9  ;;  %2238 = vmatpush3.bf16.xpose.msra.mxu1 %v2237_v31 }
 0x291   : > { %1680 = vmatprep.subr.mxu1 %v1675_v49 }
 0x297   : > { %1583 = vmatmul.mubr.f32.vlgmr.msra.gmra.mrb[64].mxu0 %v1515_v5  ;;  %2092 = vmatmul.mubr.f32.vlgmr.msra.gmra.mrb[32].mxu1 %v2935_v40  ;;  %v1831_v40 = vld [vmem:[%s3125_s6] sm:$0xff] }
 0x298   : > { %1744 = vmatprep.mubr.f32.mxu1 %v3267_v57  ;;  %1681 = vmatpush1.msra.mxu1 %v1674_v36 }
 0x299   : > { %1834 = vperm.xlu1 %2255, %v1831_v40  }
 0x29b   : > { %2018 = vmatmul.mubr.msk.f32.vlgmr.msra.gmra.mrb[34].mxu1 %vm1676_vm2, %v1673_v39 }
 0x29c   : > { %1824 = vmatprep.mubr.f32.mxu1 %v3267_v57 }
 0x318   : > { %v1835_v14 = vpop.permute.xlu1 %1834 }
 0x36a   : > { %v1584_v31 = vpop.f32.mrb[64].mxu0  ;;  %v1655_v1 = vpop.f32.mrb[32].mxu1 }
 0x36b   : > { %v1656_v41 = vadd.f32 %v1655_v1, %v1584_v31  ;;  %v1586_v52 = vpop.f32.mrb[65].mxu0  ;;  %v1657_v61 = vpop.f32.mrb[33].mxu1 }
 0x36c   : > { %v1658_v11 = vadd.f32 %v1657_v61, %v1586_v52 }
 0x36d   : > { %2451 = vrcp.f32 %v1656_v41 }
 0x36e   : > { %2453 = vrcp.f32 %v1658_v11 }
 0x377   : > { %v2452_v26 = vpop.eup %2451 }
 0x378   : > { %v2454_v6 = vpop.eup %2453  ;;  %v1665_v20 = vrot.slane %v2452_v26, %v1664_v48 }
 0x379   : > { %v1669_v27 = vrot.slane %v2454_v6, %v1664_v48 }
 0x37a   : > { %v1670_v47 = vmul.f32 %v1665_v20, %v1656_v41 }
 0x37b   : > { %v1671_v29 = vmul.f32 %v1669_v27, %v1658_v11 }
 0x37d   : > { %2019 = vmatprep.subr.msk.mxu1 %vm514_vm0, %v1671_v29 }
 0x37e   : > { %2020 = vmatpush1.msk.msra.mxu1 %vm514_vm0, %v1670_v47 }
 0x37f   : > { %2021 = vmatmul.mubr.msk.f32.vlgmr.msra.gmra.mrb[34].mxu1 %vm417_vm1, %v1672_v54 }
 0x452   : > { %v1826_v12 = vpop.f32.mrb[34].mxu1 }
 0x453   : > { %v1837_v15 = vadd.f32 %v1835_v14, %v1826_v12  ;;  %v1828_v19 = vpop.f32.mrb[35].mxu1 }
 0x454   : > { %v1838_v32 = vadd.f32 %v1835_v14, %v1828_v19 }
 0x455   : > { %v1839_v13 = vmax.f32 %v1837_v15, 0.0 }
 0x456   : > { %v1840_v17 = vmax.f32 %v1838_v32, 0.0 }
 0x457   : > { %1841 = vst [vmem:[%s343_s30] sm:$0xff] %v1839_v13 }
 0x458   : > { %1842 = vst [vmem:[%s343_s30 + $0x8] sm:$0xff] %v1840_v17 }
 0x459 PF: > { %s17_s24 = sadd.s32 1, %s2461_s24  }
 0x45a   : > { %p14_p5 = scmp.ge.s32.totalorder %s17_s24, 4  }
 0x45c   :  { %16 = sbr.rel (!%p14_p5) target bundleno = 1 (0x1), region = 87 }

// kernel: hifa_forward.2
= control target key start
LH: loop header
LB: loop body
LE: loop exit
PB: predicated region body
PF: predicated region fallthrough
CT: control target
= control target key end

     0   :  { %s4342_s13 = smov 0   ;;  %s5801_s0 = inlined_call_operand.vmem [shape: f32[8,512], index: 0, kind: input, shape index: {}]   ;;  %s5802_s1 = inlined_call_operand.vmem [shape: f32[2,4,8], index: 1, kind: input, shape index: {}]   ;;  %s5803_s2 = inlined_call_operand.vmem [shape: f32[2,4,36], index: 2, kind: input, shape index: {}]   ;;  %s5804_s3 = inlined_call_operand.vmem [shape: f32[2,4,36], index: 3, kind: input, shape index: {}]   ;;  %s5805_s4 = inlined_call_operand.vmem [shape: f32[2,4,36], index: 4, kind: input, shape index: {}]   ;;  %s5806_s5 = inlined_call_operand.vmem [shape: f32[2,4,36], index: 5, kind: input, shape index: {}]   ;;  %s5807_s6 = inlined_call_operand.vmem [shape: f32[2,4,4], index: 6, kind: input, shape index: {}]   ;;  %s5808_s7 = inlined_call_operand.vmem [shape: f32[2,4,6], index: 7, kind: input, shape index: {}]   ;;  %s5809_s8 = inlined_call_operand.vmem [shape: f32[27,512], index: 8, kind: input, shape index: {}]   ;;  %s5810_s9 = inlined_call_operand.vmem [shape: f32[2,4,512], index: 9, kind: output, shape index: {0}]   ;;  %s5811_s10 = inlined_call_operand.vmem [shape: f32[2,4,512], index: 10, kind: output, shape index: {1}]  }
   0x1 LB: > { %s4348_s14 = sadd.s32 4294967295, %s4256_s13   ;;  %p4056_p0 = scmp.ge.s32.totalorder %s4256_s13, 1  ;;  %s4256_s13 = sphi %s4342_s13, %s21_s13  }
   0x2   : > { %p368_p1 = scmp.lt.s32.totalorder %s4256_s13, 3 }
   0x4   : > { %p369_p2 = pnand %p4056_p0, %p368_p1 }
   0x5   : > { %v475_v0 = vld [vmem:[%s5801_s0 + $0x8] sm:$0xff] (!%p369_p2)  ;;  %v477_v1 = vld [vmem:[%s5801_s0 + $0x18] sm:$0xff] (!%p369_p2)  ;;  %v474_v2 = vld [vmem:[%s5801_s0] sm:$0xff] (!%p369_p2)  ;;  %p434_p3 = scmp.lt.s32.totalorder (!%p369_p2), %s4348_s14, 1  ;;  %v660_v3 = vlaneseq (!%p369_p2)  ;;  %v4258_v4 = vmov (!%p369_p2), 0.0   ;;  %vm483_vm0 = vcmask (!%p369_p2), 64512  }
   0x6   : > { %372 = sbr.rel (%p369_p2) target bundleno = 1534 (0x5fe), region = 56  ;;  %487 = vmatprep.subr.mxu0 (!%p369_p2), %v475_v0  ;;  %558 = vmatprep.subr.mxu1 (!%p369_p2), %v477_v1  ;;  %651 = vst [vmem:[#allocation2] sm:$0xf] (!%p369_p2), %v4258_v4  ;;  %652 = vst [vmem:[#allocation2 + $0x14] sm:$0xf] (!%p369_p2), %v4258_v4  ;;  %v476_v5 = vld [vmem:[%s5801_s0 + $0x10] sm:$0xff] (!%p369_p2) }
   0x7   : > { %488 = vmatpush1.msra.mxu0 (!%p369_p2), %v474_v2  ;;  %551 = vmatprep.mubr.f32.mxu0 (!%p369_p2), %v4258_v4  ;;  %v661_v6 = vshrl.u32 (!%p369_p2), %v660_v3, 7  ;;  %v658_v7 = vld [vmem:[%s5809_s8] ss:$8 sm:$0xf] (!%p369_p2)  ;;  %v4259_v9 = vmov (!%p369_p2), 0   ;;  %s4260_s19 = smov (!%p369_p2), 111  }
   0x8   : > { %559 = vmatpush1.msra.mxu1 (!%p369_p2), %v476_v5  ;;  %622 = vmatprep.mubr.f32.mxu1 (!%p369_p2), %v4258_v4  ;;  %v4070_v8 = vld [vmem:[%s5809_s8 + $0x1] ss:$8 sm:$0xf] (!%p369_p2)  ;;  %v4071_v22 = vld [vmem:[%s5809_s8 + $0x2] ss:$8 sm:$0xf] (!%p369_p2) }
   0x9   : > { %4240 = vset.pattern.permute.xlu0 (!%p369_p2), %v4259_v9  ;;  %v4381_v10 = vsub.s32 (!%p369_p2), 0, %v661_v6  ;;  %v4383_v11 = vsub.s32 (!%p369_p2), 1, %v661_v6  ;;  %v4385_v12 = vsub.s32 (!%p369_p2), 2, %v661_v6  ;;  %v4387_v13 = vsub.s32 (!%p369_p2), 3, %v661_v6  ;;  %s4261_s22 = smov (!%p369_p2), 112   ;;  %s4262_s26 = smov (!%p369_p2), 113  }
   0xa   : > { %v4072_v30 = vld [vmem:[%s5809_s8 + $0x3] ss:$8 sm:$0xf] (!%p369_p2)  ;;  %v4074_v37 = vld [vmem:[%s5809_s8 + $0x5] ss:$8 sm:$0xf] (!%p369_p2) }
   0xb   : > { %v663_v16 = vrot.slane (!%p369_p2), %v658_v7, %v4381_v10  ;;  %v667_v17 = vrot.slane (!%p369_p2), %v658_v7, %v4383_v11  ;;  %v671_v18 = vrot.slane (!%p369_p2), %v658_v7, %v4385_v12  ;;  %v675_v19 = vrot.slane (!%p369_p2), %v658_v7, %v4387_v13  ;;  %v4075_v44 = vld [vmem:[%s5809_s8 + $0x6] ss:$8 sm:$0xf] (!%p369_p2)  ;;  %s4263_s30 = smov (!%p369_p2), 127   ;;  %s4264_s15 = smov (!%p369_p2), 1  }
   0xc   : > { %v740_v20 = vrot.slane (!%p369_p2), %v4070_v8, %v4385_v12  ;;  %v732_v21 = vrot.slane (!%p369_p2), %v4070_v8, %v4381_v10  ;;  %v744_v25 = vrot.slane (!%p369_p2), %v4070_v8, %v4387_v13  ;;  %v736_v26 = vrot.slane (!%p369_p2), %v4070_v8, %v4383_v11  ;;  %v4076_v51 = vld [vmem:[%s5809_s8 + $0x7] ss:$8 sm:$0xf] (!%p369_p2)  ;;  %v4077_v58 = vld [vmem:[%s5809_s8 + $0x20] ss:$8 sm:$0xf] (!%p369_p2) }
   0xd   : > { %s4369_s23 = scalar_select %p434_p3, %s4348_s14, 1  ;;  %v676_v23 = vcombine.low %v663_v16, %v667_v17  ;;  %v677_v24 = vcombine.low %v671_v18, %v675_v19  ;;  %v801_v28 = vrot.slane %v4071_v22, %v4381_v10  ;;  %v805_v29 = vrot.slane %v4071_v22, %v4383_v11  ;;  %v968_v19 = vld [vmem:[#allocation2 + $0x14] sm:$0xf] }
   0xe   : > { %v745_v27 = vcombine.low %v732_v21, %v736_v26  ;;  %v746_v31 = vcombine.low %v740_v20, %v744_v25  ;;  %v809_v32 = vrot.slane %v4071_v22, %v4385_v12  ;;  %v813_v33 = vrot.slane %v4071_v22, %v4387_v13  ;;  %s4265_s20 = smov 15   ;;  %s4266_s21 = smov 16   ;;  %v1035_v21 = vld [vmem:[#allocation2 + $0x14] sm:$0xf] }
   0xf   : > { %s4379_s28 = sshll.u32 %s4369_s23, 2  ;;  %680 = vrot.lane.b32.xlu1 %v677_v24, %s4260_s19  ;;  %v814_v34 = vcombine.low %v801_v28, %v805_v29  ;;  %v869_v35 = vrot.slane %v4072_v30, %v4381_v10  ;;  %v873_v36 = vrot.slane %v4072_v30, %v4383_v11  ;;  %v877_v39 = vrot.slane %v4072_v30, %v4385_v12  ;;  %s4267_s24 = smov 17   ;;  %v1101_v26 = vld [vmem:[#allocation2 + $0x14] sm:$0xf] }
  0x10   : > { %s437_s11 = scalar_lea.vmem %s5802_s1, %s4379_s28  ;;  %s4397_s16 = scalar_lea.vmem %s5808_s7, %s4379_s28  ;;  %v815_v38 = vcombine.low %v809_v32, %v813_v33  ;;  %v881_v40 = vrot.slane %v4072_v30, %v4387_v13  ;;  %v975_v42 = vrot.slane %v4074_v37, %v4381_v10  ;;  %v979_v43 = vrot.slane %v4074_v37, %v4383_v11 }
  0x11   : > { %v473_v14 = vld [vmem:[%s437_s11] sm:$0xf]  ;;  %v882_v41 = vcombine.low %v869_v35, %v873_v36  ;;  %v983_v46 = vrot.slane %v4074_v37, %v4385_v12  ;;  %v987_v47 = vrot.slane %v4074_v37, %v4387_v13  ;;  %v1042_v49 = vrot.slane %v4075_v44, %v4381_v10  ;;  %p629_p4 = scmp.eq.s32.totalorder %s4348_s14, 0  ;;  %s4137_s14 = sshll.u32 %s4369_s23, 4 }
  0x12   : > { %v4400_v15 = vld [vmem:[%s4397_s16] sm:$0xf]  ;;  %4068 = vmatmul.mubr.msk.f32.vlgmr.msra.gmra.mrb[0].mxu0 %vm483_vm0, %v473_v14  ;;  %4069 = vmatmul.mubr.msk.f32.vlgmr.msra.gmra.mrb[0].mxu1 %vm483_vm0, %v473_v14  ;;  %v883_v45 = vcombine.low %v877_v39, %v881_v40  ;;  %v988_v48 = vcombine.low %v975_v42, %v979_v43  ;;  %v1046_v50 = vrot.slane %v4075_v44, %v4383_v11  ;;  %s4515_s18 = scalar_lea.vmem %s5810_s9, %s4137_s14  ;;  %vm686_vm1 = vcmask 1043456   ;;  %s4270_s11 = smov 80  }
  0x13   : > { %480 = vperm.xlu0 %4240, %v4400_v15   ;;  %1337 = vmatprep.mubr.f32.mxu0 %v4258_v4  ;;  %v989_v52 = vcombine.low %v983_v46, %v987_v47  ;;  %v1050_v53 = vrot.slane %v4075_v44, %v4385_v12  ;;  %v1054_v54 = vrot.slane %v4075_v44, %v4387_v13  ;;  %s630_s25 = scalar_select %p629_p4, 1, 0  ;;  %vm753_vm2 = vcmask 916480  }
  0x14   : > { %1408 = vmatprep.mubr.f32.mxu1 %v4258_v4  ;;  %747 = vrot.lane.b32.xlu1 %v745_v27, %s4261_s22  ;;  %v1055_v55 = vcombine.low %v1042_v49, %v1046_v50  ;;  %v1108_v56 = vrot.slane %v4076_v51, %v4381_v10  ;;  %v1112_v57 = vrot.slane %v4076_v51, %v4383_v11  ;;  %vm684_vm3 = vcmask 908288   ;;  %s4271_s17 = smov 83   ;;  %s4274_s29 = smov 45  }
  0x15   : > { %v1056_v59 = vcombine.low %v1050_v53, %v1054_v54  ;;  %v1116_v60 = vrot.slane %v4076_v51, %v4385_v12  ;;  %v1120_v61 = vrot.slane %v4076_v51, %v4387_v13  ;;  %v1175_v63 = vrot.slane %v4077_v58, %v4381_v10  ;;  %s631_s27 = scvt.s32.f32 %s630_s25  ;;  %s449_s25 = scalar_lea.vmem %s5805_s4, %s4379_s28 }
  0x16   : > { %v1121_v62 = vcombine.low %v1108_v56, %v1112_v57  ;;  %v1179_v0 = vrot.slane %v4077_v58, %v4383_v11  ;;  %v1183_v2 = vrot.slane %v4077_v58, %v4385_v12  ;;  %v1187_v3 = vrot.slane %v4077_v58, %v4387_v13 }
  0x17   : > { %678 = vrot.lane.b32.xlu0 %v676_v23, %s4260_s19  ;;  %v1122_v1 = vcombine.low %v1116_v60, %v1120_v61  ;;  %v632_v36 = vstv %s631_s27  ;;  %vm822_vm4 = vcmask 924672   ;;  %vm890_vm5 = vcmask 1039360   ;;  %s4269_s27 = smov 77  }
  0x18   : > { %816 = vrot.lane.b32.xlu1 %v814_v34, %s4262_s26  ;;  %v1188_v5 = vcombine.low %v1175_v63, %v1179_v0  ;;  %v1189_v6 = vcombine.low %v1183_v2, %v1187_v3  ;;  %v4073_v34 = vld [vmem:[%s5809_s8 + $0x4] ss:$8 sm:$0xf]  ;;  %vm847_vm6 = vcmask 121856   ;;  %vm916_vm7 = vcmask 7168  }
  0x19   : > { %v937_v43 = vrot.slane %v4073_v34, %v4381_v10  ;;  %v941_v44 = vrot.slane %v4073_v34, %v4383_v11  ;;  %v945_v56 = vrot.slane %v4073_v34, %v4385_v12  ;;  %v949_v57 = vrot.slane %v4073_v34, %v4387_v13 }
  0x1a   : > { %vm779_vm8 = vcmask 130048   ;;  %vm710_vm9 = vcmask 138240   ;;  %vm1515_vm10 = vcmask 654336   ;;  %vm1257_vm11 = vcmask 293888  }
  0x1b   : > { %749 = vrot.lane.b32.xlu0 %v746_v31, %s4261_s22  ;;  %v4268_v31 = vmov 1   ;;  %v950_v54 = vcombine.low %v937_v43, %v941_v44  ;;  %v951_v63 = vcombine.low %v945_v56, %v949_v57  ;;  %vm1652_vm12 = vcmask 1022976  }
  0x1c   : > { %884 = vrot.lane.b32.xlu1 %v882_v41, %s4263_s30  ;;  %vm1447_vm13 = vcmask 629760   ;;  %vm1584_vm14 = vcmask 678912   ;;  %vm1678_vm15 = vcmask 23552   ;;  %vm1541_vm0 = vcmask 392192  }
  0x1d   : > { %4241 = vset.pattern.permute.xlu1 %v4268_v31 }
  0x1f   : > { %818 = vrot.lane.b32.xlu0 %v815_v38, %s4262_s26 }
  0x20   : > { %990 = vrot.lane.b32.xlu1 %v988_v48, %s4264_s15 }
  0x23   : > { %886 = vrot.lane.b32.xlu0 %v883_v45, %s4263_s30 }
  0x24   : > { %1057 = vrot.lane.b32.xlu1 %v1055_v55, %s4265_s20 }
  0x27   : > { %992 = vrot.lane.b32.xlu0 %v989_v52, %s4264_s15 }
  0x28   : > { %1123 = vrot.lane.b32.xlu1 %v1121_v62, %s4266_s21 }
  0x2b   : > { %1059 = vrot.lane.b32.xlu0 %v1056_v59, %s4265_s20 }
  0x2c   : > { %1190 = vrot.lane.b32.xlu1 %v1188_v5, %s4267_s24 }
  0x2f   : > { %1125 = vrot.lane.b32.xlu0 %v1122_v1, %s4266_s21 }
  0x33   : > { %1192 = vrot.lane.b32.xlu0 %v1189_v6, %s4267_s24 }
  0x81   : > { %v4500_v32 = vpop.permute.xlu1 %680 }
  0x82   : > { %v683_v60 = vrot.slane %v4500_v32, 4 }
  0x86   : > { %v748_v33 = vpop.permute.xlu1 %747 }
  0x87   : > { %v751_v5 = vrot.slane %v748_v33, 4 }
  0x8a   : > { %v4508_v50 = vpop.permute.xlu1 %816 }
  0x8e   : > { %v885_v62 = vpop.permute.xlu1 %884 }
  0x92   : > { %v481_v7 = vpop.permute.xlu0 %480 }
  0x96   : > { %v4473_v8 = vpop.permute.xlu0 %678 }
  0x97   : > { %v682_v0 = vrot.slane %v4473_v8, 4 }
  0x99   : > { %v687_v2 = vsel %vm686_vm1, %v682_v0, %v683_v60 }
  0x9a   : > { %v4475_v9 = vpop.permute.xlu0 %749 }
  0x9b   : > { %v752_v3 = vrot.slane %v4475_v9, 4 }
  0x9e   : > { %v4477_v14 = vpop.permute.xlu0 %818 }
  0xa2   : > { %v4479_v16 = vpop.permute.xlu0 %886 }
  0xa6   : > { %v4481_v17 = vpop.permute.xlu0 %992 }
  0xa7   : > { %v995_v18 = vrot.slane %v4481_v17, 4 }
  0xa9   : > { %v1004_v23 = vmul.f32 %v995_v18, %v968_v19  ;;  %v688_v19 = vsel %vm684_vm3, %v687_v2, %v4500_v32 }
  0xaa   : > { %v4484_v20 = vpop.permute.xlu0 %1059 }
  0xab   : > { %v1062_v22 = vrot.slane %v4484_v20, 4  ;;  %v1010_v28 = vcombine.low %v1004_v23, %v1004_v23  ;;  %v820_v23 = vrot.slane %v4508_v50, 4 }
  0xad   : > { %v1071_v24 = vmul.f32 %v1062_v22, %v1035_v21  ;;  %v821_v21 = vrot.slane %v4477_v14, 4 }
  0xae   : > { %v4491_v25 = vpop.permute.xlu0 %1125 }
  0xaf   : > { %1085 = vrot.lane.b32.xlu0 %v1071_v24, %s4262_s26  ;;  %v1128_v27 = vrot.slane %v4491_v25, 4  ;;  %v991_v24 = vpop.permute.xlu1 %990 }
  0xb1   : > { %v1137_v29 = vmul.f32 %v1128_v27, %v1101_v26 }
  0xb3   : > { %1019 = vrot.lane.b32.xlu0 %v1010_v28, %s4263_s30  ;;  %v1143_v30 = vcombine.low %v1137_v29, %v1137_v29  ;;  %v1058_v44 = vpop.permute.xlu1 %1057 }
  0xb7   : > { %1152 = vrot.lane.b32.xlu0 %v1143_v30, %s4261_s22 }
  0xe5   : > { %v553_v35 = vpop.f32.mrb[0].mxu0  ;;  %v624_v37 = vpop.f32.mrb[0].mxu1 }
  0xe6   : > { %v554_v38 = vadd.f32 %v553_v35, %v481_v7  ;;  %v625_v39 = vadd.f32 %v624_v37, %v481_v7  ;;  %v555_v40 = vpop.f32.mrb[1].mxu0  ;;  %v626_v41 = vpop.f32.mrb[1].mxu1  ;;  %v888_v37 = vrot.slane %v885_v62, 4 }
  0xe7   : > { %v556_v42 = vadd.f32 %v555_v40, %v481_v7  ;;  %v627_v45 = vadd.f32 %v626_v41, %v481_v7  ;;  %v754_v7 = vsel %vm753_vm2, %v751_v5, %v748_v33  ;;  %v755_v33 = vsel %vm686_vm1, %v751_v5, %v752_v3 }
  0xe8   : > { %v633_v46 = vmul.f32 %v632_v36, %v554_v38  ;;  %v635_v47 = vmul.f32 %v632_v36, %v625_v39  ;;  %v891_v43 = vsel %vm890_vm5, %v888_v37, %v885_v62  ;;  %v1124_v62 = vpop.permute.xlu1 %1123 }
  0xe9   : > { %v634_v48 = vmul.f32 %v632_v36, %v556_v42  ;;  %v636_v49 = vmul.f32 %v632_v36, %v627_v45  ;;  %v1127_v2 = vrot.slane %v1124_v62, 4 }
  0xea   : > { %v637_v51 = vmax.f32 %v554_v38, %v633_v46  ;;  %v639_v52 = vmax.f32 %v625_v39, %v635_v47  ;;  %v756_v38 = vsel %vm753_vm2, %v755_v33, %v4475_v9  ;;  %v889_v39 = vrot.slane %v4479_v16, 4 }
  0xeb   : > { %v638_v53 = vmax.f32 %v556_v42, %v634_v48  ;;  %v640_v55 = vmax.f32 %v627_v45, %v636_v49  ;;  %v824_v42 = vsel %vm686_vm1, %v820_v23, %v821_v21  ;;  %v1061_v45 = vrot.slane %v1058_v44, 4 }
  0xec   : > { %v825_v46 = vsel %vm822_vm4, %v824_v42, %v4477_v14  ;;  %v892_v49 = vsel %vm686_vm1, %v888_v37, %v889_v39  ;;  %v1130_v9 = vsel %vm686_vm1, %v1127_v2, %v1128_v27 }
  0xed   : > { %v4519_v58 = vcombine.low %v637_v51, %v638_v53  ;;  %v4521_v59 = vcombine.low %v639_v52, %v640_v55  ;;  %v1064_v51 = vsel %vm686_vm1, %v1061_v45, %v1062_v22  ;;  %v893_v14 = vsel %vm890_vm5, %v892_v49, %v4479_v16 }
  0xee   : > { %v685_v55 = vsel %vm684_vm3, %v682_v0, %v4473_v8  ;;  %v823_v22 = vsel %vm822_vm4, %v820_v23, %v4508_v50  ;;  %v994_v16 = vrot.slane %v991_v24, 4 }
  0xef   : > { %649 = vst [vmem:[%s4515_s18] sm:$0xff] %v4519_v58  ;;  %653 = vst [vmem:[#allocation2 + $0x4] sm:$0xff] %v4519_v58  ;;  %v954_v61 = vmul.f32 %v950_v54, %v4519_v58  ;;  %v955_v6 = vmul.f32 %v951_v63, %v4521_v59  ;;  %v1065_v54 = vsel %vm847_vm6, %v1064_v51, %v4484_v20 }
  0xf0   : > { %650 = vst [vmem:[%s4515_s18 + $0x8] sm:$0xff] %v4521_v59  ;;  %654 = vst [vmem:[#allocation2 + $0xc] sm:$0xff] %v4521_v59  ;;  %v4585_v56 = vmul.f32 %v1065_v54, %v4521_v59  ;;  %v996_v8 = vsel %vm916_vm7, %v994_v16, %v991_v24  ;;  %v997_v50 = vsel %vm686_vm1, %v994_v16, %v995_v18  ;;  %v1168_v16 = vld [vmem:[#allocation2 + $0x14] sm:$0xf] }
  0xf1   : > { %v958_v1 = vcombine.high %v954_v61, %v954_v61  ;;  %962 = vst [vmem:[#allocation3 + $0x40] sm:$0xf] %v954_v61  ;;  %v959_v30 = vcombine.high %v955_v6, %v955_v6  ;;  %964 = vst [vmem:[#allocation3 + $0x50] sm:$0xf] %v955_v6  ;;  %v4601_v0 = vmul.f32 %v996_v8, %v4519_v58 }
  0xf2   : > { %v998_v5 = vsel %vm916_vm7, %v997_v50, %v4481_v17  ;;  %v4089_v8 = vld [vmem:[%s5809_s8 + $0x26] ss:$8 sm:$0xf] }
  0xf3   : > { %963 = vst [vmem:[#allocation3 + $0x48] sm:$0xf] %v958_v1  ;;  %965 = vst [vmem:[#allocation3 + $0x58] sm:$0xf] %v959_v30  ;;  %v1003_v18 = vmul.f32 %v998_v5, %v4521_v59  ;;  %v1008_v49 = vcombine.low %v4601_v0, %v4601_v0 }
  0xf6   : > { %v723_v26 = vld [vmem:[#allocation2] sm:$0xff] }
  0xf7   : > { %v656_v28 = vld [vmem:[#allocation2 + $0x8] sm:$0xff]  ;;  %v657_v29 = vld [vmem:[#allocation2 + $0x10] sm:$0xf]  ;;  %v4540_v31 = vmul.f32 %v754_v7, %v723_v26  ;;  %v4564_v47 = vmul.f32 %v891_v43, %v723_v26  ;;  %v692_v57 = vmul.f32 %v723_v26, %v685_v55  ;;  %v829_v61 = vmul.f32 %v823_v22, %v723_v26 }
  0xf8   : > { %v4542_v34 = vmul.f32 %v688_v19, %v656_v28  ;;  %v794_v35 = vld [vmem:[#allocation2 + $0x10] sm:$0xf]  ;;  %1415 = vst [vmem:[#allocation2 + $0x4] sm:$0xff] %v4519_v58  ;;  %v761_v40 = vmul.f32 %v756_v38, %v656_v28  ;;  %v694_v41 = vmul.f32 %v683_v60, %v657_v29  ;;  %v4566_v48 = vmul.f32 %v825_v46, %v656_v28  ;;  %v4087_v22 = vld [vmem:[%s5809_s8 + $0x24] ss:$8 sm:$0xf] }
  0xf9   : > { %v725_v32 = vld [vmem:[#allocation2 + $0x10] sm:$0xf]  ;;  %771 = vrot.lane.b32.xlu1 %v4540_v31, %s4266_s21  ;;  %v898_v52 = vmul.f32 %v893_v14, %v656_v28  ;;  %v831_v53 = vmul.f32 %v821_v21, %v794_v35  ;;  %v1063_v60 = vsel %vm847_vm6, %v1061_v45, %v1058_v44  ;;  %v1129_v7 = vsel %vm779_vm8, %v1127_v2, %v1124_v62  ;;  %v1191_v28 = vpop.permute.xlu1 %1190 }
  0xfa   : > { %v4548_v36 = vld [vmem:[#allocation2 + $0x10] sm:$0xf]  ;;  %704 = vrot.lane.b32.xlu0 %v4542_v34, %s4267_s24  ;;  %v1069_v20 = vmul.f32 %v1063_v60, %v4519_v58  ;;  %v767_v63 = vcombine.low %v761_v40, %v761_v40  ;;  %v762_v1 = vmul.f32 %v752_v3, %v725_v32  ;;  %v1135_v3 = vmul.f32 %v1129_v7, %v4519_v58 }
  0xfb   : > { %1416 = vst [vmem:[#allocation2 + $0xc] sm:$0xff] %v4521_v59  ;;  %v904_v17 = vcombine.low %v898_v52, %v898_v52  ;;  %v899_v19 = vmul.f32 %v889_v39, %v4548_v36  ;;  %v1131_v21 = vsel %vm779_vm8, %v1130_v9, %v4491_v25  ;;  %v766_v27 = vcombine.low %v4540_v31, %v4540_v31  ;;  %v1193_v25 = vpop.permute.xlu0 %1192  ;;  %v4091_v9 = vld [vmem:[%s5809_s8 + $0x40] ss:$8 sm:$0xf] }
  0xfc   : > { %v768_v6 = vcombine.low %v762_v1, %v762_v1  ;;  %v1136_v24 = vmul.f32 %v1131_v21, %v4521_v59  ;;  %v698_v26 = vcombine.high %v692_v57, %v692_v57  ;;  %v903_v29 = vcombine.low %v4564_v47, %v4564_v47  ;;  %v4090_v1 = vld [vmem:[%s5809_s8 + $0x27] ss:$8 sm:$0xf] }
  0xfd   : > { %775 = vrot.lane.b32.xlu1 %v761_v40, %s4266_s21  ;;  %v905_v23 = vcombine.low %v899_v19, %v899_v19  ;;  %v699_v30 = vcombine.high %v4542_v34, %v4542_v34  ;;  %v1194_v33 = vrot.slane %v1191_v28, 4  ;;  %v1195_v35 = vrot.slane %v1193_v25, 4 }
  0xfe   : > { %708 = vrot.lane.b32.xlu0 %v694_v41, %s4267_s24  ;;  %v1009_v31 = vcombine.low %v1003_v18, %v1003_v18  ;;  %v835_v32 = vcombine.high %v829_v61, %v829_v61  ;;  %v1142_v34 = vcombine.low %v1136_v24, %v1136_v24  ;;  %v836_v39 = vcombine.high %v4566_v48, %v4566_v48 }
  0xff   : > { %v1196_v36 = vsel %vm710_vm9, %v1194_v33, %v1191_v28  ;;  %v1197_v37 = vsel %vm686_vm1, %v1194_v33, %v1195_v35  ;;  %v1075_v43 = vcombine.high %v1069_v20, %v1069_v20  ;;  %v1076_v45 = vcombine.high %v4585_v56, %v4585_v56 }
 0x100   : > { %v1202_v38 = vmul.f32 %v1196_v36, %v4519_v58  ;;  %v1198_v40 = vsel %vm710_vm9, %v1197_v37, %v1193_v25  ;;  %v4084_v58 = vld [vmem:[%s5809_s8 + $0x21] ss:$8 sm:$0xf]  ;;  %v1141_v54 = vcombine.low %v1135_v3, %v1135_v3  ;;  %v1204_v50 = vmul.f32 %v1195_v35, %v1168_v16 }
 0x101   : > { %908 = vrot.lane.b32.xlu1 %v4564_v47, %s4264_s15  ;;  %v1203_v41 = vmul.f32 %v1198_v40, %v4521_v59  ;;  %v1426_v46 = vrot.slane %v4084_v58, %v4381_v10  ;;  %v1430_v47 = vrot.slane %v4084_v58, %v4383_v11  ;;  %v1737_v62 = vrot.slane %v4089_v8, %v4381_v10 }
 0x102   : > { %841 = vrot.lane.b32.xlu0 %v4566_v48, %s4265_s20  ;;  %v1208_v42 = vcombine.high %v1202_v38, %v1202_v38  ;;  %v4085_v48 = vld [vmem:[%s5809_s8 + $0x22] ss:$8 sm:$0xf]  ;;  %v1434_v2 = vrot.slane %v4084_v58, %v4385_v12  ;;  %v1438_v5 = vrot.slane %v4084_v58, %v4387_v13  ;;  %v1808_v7 = vrot.slane %v4090_v1, %v4383_v11 }
 0x103   : > { %v1209_v44 = vcombine.high %v1203_v41, %v1203_v41  ;;  %v1439_v51 = vcombine.low %v1426_v46, %v1430_v47  ;;  %v1494_v14 = vrot.slane %v4085_v48, %v4381_v10  ;;  %v1506_v19 = vrot.slane %v4085_v48, %v4387_v13 }
 0x104   : > { %v1639_v35 = vrot.slane %v4087_v22, %v4385_v12  ;;  %v1745_v37 = vrot.slane %v4089_v8, %v4385_v12  ;;  %v1816_v58 = vrot.slane %v4090_v1, %v4387_v13 }
 0x105   : > { %912 = vrot.lane.b32.xlu1 %v898_v52, %s4264_s15  ;;  %v1498_v52 = vrot.slane %v4085_v48, %v4383_v11 }
 0x106   : > { %845 = vrot.lane.b32.xlu0 %v831_v53, %s4265_s20  ;;  %v4086_v53 = vld [vmem:[%s5809_s8 + $0x23] ss:$8 sm:$0xf] }
 0x107   : > { %v1507_v55 = vcombine.low %v1494_v14, %v1498_v52  ;;  %v1575_v28 = vrot.slane %v4086_v53, %v4387_v13  ;;  %v1882_v14 = vrot.slane %v4091_v9, %v4387_v13 }
 0x109   : > { %700 = vrot.lane.b32.xlu1 %v692_v57, %s4267_s24  ;;  %v1567_v57 = vrot.slane %v4086_v53, %v4383_v11 }
 0x10a   : > { %1081 = vrot.lane.b32.xlu0 %v4585_v56, %s4262_s26  ;;  %v1563_v56 = vrot.slane %v4086_v53, %v4381_v10 }
 0x10c   : > { %v1576_v60 = vcombine.low %v1563_v56, %v1567_v57 }
 0x10d   : > { %837 = vrot.lane.b32.xlu1 %v829_v61, %s4265_s20  ;;  %v1635_v61 = vrot.slane %v4087_v22, %v4383_v11 }
 0x10e   : > { %1077 = vrot.lane.b32.xlu0 %v1069_v20, %s4262_s26  ;;  %v1631_v20 = vrot.slane %v4087_v22, %v4381_v10 }
 0x111   : > { %1013 = vrot.lane.b32.xlu1 %v4601_v0, %s4263_s30  ;;  %v1644_v0 = vcombine.low %v1631_v20, %v1635_v61 }
 0x112   : > { %773 = vrot.lane.b32.xlu0 %v767_v63, %s4266_s21  ;;  %v1741_v63 = vrot.slane %v4089_v8, %v4383_v11 }
 0x115   : > { %1017 = vrot.lane.b32.xlu1 %v1003_v18, %s4263_s30  ;;  %v1804_v18 = vrot.slane %v4090_v1, %v4381_v10 }
 0x116   : > { %777 = vrot.lane.b32.xlu0 %v768_v6, %s4266_s21  ;;  %v1750_v6 = vcombine.low %v1737_v62, %v1741_v63 }
 0x117   : > { %v1817_v21 = vcombine.low %v1804_v18, %v1808_v7 }
 0x119   : > { %1146 = vrot.lane.b32.xlu1 %v1135_v3, %s4261_s22  ;;  %v1502_v3 = vrot.slane %v4085_v48, %v4385_v12  ;;  %v4101_v48 = vld [vmem:[%s5809_s8 + $0x23] ss:$8 sm:$0xf] }
 0x11a   : > { %910 = vrot.lane.b32.xlu0 %v904_v17, %s4264_s15  ;;  %v1440_v17 = vcombine.low %v1434_v2, %v1438_v5  ;;  %v4105_v2 = vld [vmem:[%s5809_s8 + $0x27] ss:$8 sm:$0xf] }
 0x11b   : > { %v2558_v7 = vrot.slane %v4105_v2, %v4381_v10 }
 0x11d   : > { %1150 = vrot.lane.b32.xlu1 %v1136_v24, %s4261_s22  ;;  %v1874_v24 = vrot.slane %v4091_v9, %v4383_v11 }
 0x11e   : > { %914 = vrot.lane.b32.xlu0 %v905_v23, %s4264_s15  ;;  %v1870_v23 = vrot.slane %v4091_v9, %v4381_v10 }
 0x120   : > { %v1883_v25 = vcombine.low %v1870_v23, %v1874_v24 }
 0x121   : > { %702 = vrot.lane.b32.xlu1 %v698_v26, %s4267_s24  ;;  %v1571_v26 = vrot.slane %v4086_v53, %v4385_v12  ;;  %v2325_v53 = vrot.slane %v4101_v48, %v4381_v10 }
 0x122   : > { %769 = vrot.lane.b32.xlu0 %v766_v27, %s4266_s21  ;;  %v1508_v27 = vcombine.low %v1502_v3, %v1506_v19  ;;  %s441_s21 = scalar_lea.vmem %s5803_s2, %s4379_s28 }
 0x123   : > { %v1577_v33 = vcombine.low %v1571_v26, %v1575_v28  ;;  %v4107_v28 = vld [vmem:[%s5809_s8 + $0x41] ss:$8 sm:$0xf] }
 0x125   : > { %706 = vrot.lane.b32.xlu1 %v699_v30, %s4267_s24  ;;  %s4276_s24 = smov 51  }
 0x126   : > { %906 = vrot.lane.b32.xlu0 %v903_v29, %s4264_s15  ;;  %s4275_s15 = smov 48  }
 0x129   : > { %839 = vrot.lane.b32.xlu1 %v835_v32, %s4265_s20  ;;  %v4099_v32 = vld [vmem:[%s5809_s8 + $0x21] ss:$8 sm:$0xf] }
 0x12a   : > { %1015 = vrot.lane.b32.xlu0 %v1009_v31, %s4263_s30  ;;  %v1643_v31 = vrot.slane %v4087_v22, %v4387_v13  ;;  %v2198_v40 = vrot.slane %v4099_v32, %v4383_v11  ;;  %v2202_v5 = vrot.slane %v4099_v32, %v4385_v12 }
 0x12d   : > { %843 = vrot.lane.b32.xlu1 %v836_v39, %s4265_s20  ;;  %s4272_s20 = smov 125   ;;  %v2194_v39 = vrot.slane %v4099_v32, %v4381_v10 }
 0x12e   : > { %1148 = vrot.lane.b32.xlu0 %v1142_v34, %s4261_s22  ;;  %v1645_v34 = vcombine.low %v1639_v35, %v1643_v31 }
 0x131   : > { %1079 = vrot.lane.b32.xlu1 %v1075_v43, %s4262_s26  ;;  %v1812_v43 = vrot.slane %v4090_v1, %v4385_v12 }
 0x132   : > { %1212 = vrot.lane.b32.xlu0 %v1208_v42, %s4260_s19 }
 0x135   : > { %1083 = vrot.lane.b32.xlu1 %v1076_v45, %s4262_s26  ;;  %s4273_s26 = smov 3   ;;  %v2207_v45 = vcombine.low %v2194_v39, %v2198_v40 }
 0x136   : > { %1216 = vrot.lane.b32.xlu0 %v1209_v44, %s4260_s19  ;;  %v4732_v44 = vpop.permute.xlu0 %1085 }
 0x139   : > { %1011 = vrot.lane.b32.xlu1 %v1008_v49, %s4263_s30  ;;  %v1818_v49 = vcombine.low %v1812_v43, %v1816_v58 }
 0x13a   : > { %1210 = vrot.lane.b32.xlu0 %v1202_v38, %s4260_s19  ;;  %v1749_v38 = vrot.slane %v4089_v8, %v4387_v13  ;;  %v4749_v56 = vpop.permute.xlu0 %1019  ;;  %v4104_v8 = vld [vmem:[%s5809_s8 + $0x26] ss:$8 sm:$0xf] }
 0x13b   : > { %v2492_v62 = vrot.slane %v4104_v8, %v4381_v10  ;;  %v2496_v63 = vrot.slane %v4104_v8, %v4383_v11  ;;  %v2500_v43 = vrot.slane %v4104_v8, %v4385_v12  ;;  %v2504_v58 = vrot.slane %v4104_v8, %v4387_v13 }
 0x13c   : > { %v1751_v42 = vcombine.low %v1745_v37, %v1749_v38 }
 0x13d   : > { %1144 = vrot.lane.b32.xlu1 %v1141_v54, %s4261_s22  ;;  %v2329_v54 = vrot.slane %v4101_v48, %v4383_v11  ;;  %v2505_v18 = vcombine.low %v2492_v62, %v2496_v63  ;;  %s471_s22 = scalar_lea.vmem %s5811_s10, %s4137_s14 }
 0x13e   : > { %1441 = vrot.lane.b32.xlu0 %v1439_v51, %s4269_s27  ;;  %v1878_v51 = vrot.slane %v4091_v9, %v4385_v12  ;;  %v2562_v9 = vrot.slane %v4105_v2, %v4383_v11 }
 0x140   : > { %v1884_v57 = vcombine.low %v1878_v51, %v1882_v14 }
 0x141   : > { %1214 = vrot.lane.b32.xlu1 %v1203_v41, %s4260_s19  ;;  %v4100_v41 = vld [vmem:[%s5809_s8 + $0x22] ss:$8 sm:$0xf] }
 0x142   : > { %1509 = vrot.lane.b32.xlu0 %v1507_v55, %s4270_s11  ;;  %v2259_v46 = vrot.slane %v4100_v41, %v4381_v10  ;;  %v2263_v47 = vrot.slane %v4100_v41, %v4383_v11  ;;  %v4102_v55 = vld [vmem:[%s5809_s8 + $0x24] ss:$8 sm:$0xf]  ;;  %v2267_v19 = vrot.slane %v4100_v41, %v4385_v12 }
 0x143   : > { %v2390_v20 = vrot.slane %v4102_v55, %v4381_v10  ;;  %v2394_v61 = vrot.slane %v4102_v55, %v4383_v11  ;;  %v2398_v38 = vrot.slane %v4102_v55, %v4385_v12 }
 0x144   : > { %v2272_v52 = vcombine.low %v2259_v46, %v2263_v47  ;;  %v2506_v47 = vcombine.low %v2500_v43, %v2504_v58 }
 0x145   : > { %1218 = vrot.lane.b32.xlu1 %v1204_v50, %s4260_s19  ;;  %v2403_v1 = vcombine.low %v2390_v20, %v2394_v61  ;;  %v2701_v20 = vrot.slane %v4107_v28, %v4387_v13 }
 0x146   : > { %1578 = vrot.lane.b32.xlu0 %v1576_v60, %s4271_s17  ;;  %v2338_v60 = vcombine.low %v2325_v53, %v2329_v54 }
 0x149   : > { %1254 = vperm.xlu1 %4241, %v4400_v15   ;;  %v4092_v15 = vld [vmem:[%s5809_s8 + $0x41] ss:$8 sm:$0xf] }
 0x14a   : > { %1646 = vrot.lane.b32.xlu0 %v1644_v0, %s4272_s20  ;;  %v1937_v29 = vrot.slane %v4092_v15, %v4381_v10  ;;  %v1941_v30 = vrot.slane %v4092_v15, %v4383_v11  ;;  %v1945_v22 = vrot.slane %v4092_v15, %v4385_v12  ;;  %v1949_v16 = vrot.slane %v4092_v15, %v4387_v13  ;;  %v4762_v0 = vpop.permute.xlu0 %1152 }
 0x14b   : > { %v2571_v15 = vcombine.low %v2558_v7, %v2562_v9 }
 0x14c   : > { %v1950_v36 = vcombine.low %v1937_v29, %v1941_v30  ;;  %v1951_v50 = vcombine.low %v1945_v22, %v1949_v16  ;;  %v2333_v29 = vrot.slane %v4101_v48, %v4385_v12  ;;  %v2337_v30 = vrot.slane %v4101_v48, %v4387_v13  ;;  %v4088_v22 = vld [vmem:[%s5809_s8 + $0x25] ss:$8 sm:$0xf] }
 0x14d   : > { %1443 = vrot.lane.b32.xlu1 %v1440_v17, %s4269_s27  ;;  %v4106_v17 = vld [vmem:[%s5809_s8 + $0x40] ss:$8 sm:$0xf]  ;;  %v2566_v48 = vrot.slane %v4105_v2, %v4385_v12  ;;  %v1711_v62 = vrot.slane %v4088_v22, %v4387_v13 }
 0x14e   : > { %1752 = vrot.lane.b32.xlu0 %v1750_v6, %s4273_s26  ;;  %v2206_v6 = vrot.slane %v4099_v32, %v4387_v13  ;;  %v2627_v26 = vrot.slane %v4106_v17, %v4383_v11  ;;  %v2689_v32 = vrot.slane %v4107_v28, %v4381_v10  ;;  %v2339_v37 = vcombine.low %v2333_v29, %v2337_v30 }
 0x14f   : > { %v2631_v53 = vrot.slane %v4106_v17, %v4385_v12  ;;  %v2635_v54 = vrot.slane %v4106_v17, %v4387_v13 }
 0x150   : > { %v2208_v3 = vcombine.low %v2202_v5, %v2206_v6 }
 0x151   : > { %1511 = vrot.lane.b32.xlu1 %v1508_v27, %s4270_s11  ;;  %v2623_v27 = vrot.slane %v4106_v17, %v4381_v10  ;;  %v2637_v16 = vcombine.low %v2631_v53, %v2635_v54 }
 0x152   : > { %1819 = vrot.lane.b32.xlu0 %v1817_v21, %s4274_s29  ;;  %v2271_v21 = vrot.slane %v4100_v41, %v4387_v13 }
 0x153   : > { %v2636_v31 = vcombine.low %v2623_v27, %v2627_v26 }
 0x155   : > { %1580 = vrot.lane.b32.xlu1 %v1577_v33, %s4271_s17 }
 0x156   : > { %1885 = vrot.lane.b32.xlu0 %v1883_v25, %s4275_s15  ;;  %v2273_v25 = vcombine.low %v2267_v19, %v2271_v21 }
 0x159   : > { %1648 = vrot.lane.b32.xlu1 %v1645_v34, %s4272_s20  ;;  %v2402_v34 = vrot.slane %v4102_v55, %v4387_v13 }
 0x15a   : > { %1952 = vrot.lane.b32.xlu0 %v1950_v36, %s4276_s24  ;;  %v2693_v36 = vrot.slane %v4107_v28, %v4383_v11 }
 0x15c   : > { %v2702_v41 = vcombine.low %v2689_v32, %v2693_v36 }
 0x15d   : > { %1754 = vrot.lane.b32.xlu1 %v1751_v42, %s4273_s26  ;;  %v2404_v42 = vcombine.low %v2398_v38, %v2402_v34  ;;  %v1703_v38 = vrot.slane %v4088_v22, %v4383_v11 }
 0x15e   : > { %2209 = vrot.lane.b32.xlu0 %v2207_v45, %s4269_s27 }
 0x161   : > { %1821 = vrot.lane.b32.xlu1 %v1818_v49, %s4274_s29  ;;  %v2570_v49 = vrot.slane %v4105_v2, %v4387_v13 }
 0x162   : > { %2274 = vrot.lane.b32.xlu0 %v2272_v52, %s4270_s11 }
 0x163   : > { %v2572_v52 = vcombine.low %v2566_v48, %v2570_v49  ;;  %v1691_v48 = vld [vmem:[#allocation2 + $0x4] sm:$0xff] }
 0x165   : > { %1887 = vrot.lane.b32.xlu1 %v1884_v57, %s4275_s15 }
 0x166   : > { %2340 = vrot.lane.b32.xlu0 %v2338_v60, %s4271_s17  ;;  %v2697_v60 = vrot.slane %v4107_v28, %v4385_v12 }
 0x168   : > { %v2703_v2 = vcombine.low %v2697_v60, %v2701_v20 }
 0x169   : > { %1954 = vrot.lane.b32.xlu1 %v1951_v50, %s4276_s24  ;;  %v1707_v50 = vrot.slane %v4088_v22, %v4385_v12 }
 0x16a   : > { %2405 = vrot.lane.b32.xlu0 %v2403_v1, %s4272_s20 }
 0x16b   : > { %v4780_v23 = vpop.permute.xlu1 %771 }
 0x16c   : > { %v4782_v24 = vpop.permute.xlu0 %704 }
 0x16d   : > { %2211 = vrot.lane.b32.xlu1 %v2208_v3, %s4269_s27 }
 0x16e   : > { %2507 = vrot.lane.b32.xlu0 %v2505_v18, %s4273_s26  ;;  %v1713_v18 = vcombine.low %v1707_v50, %v1711_v62 }
 0x16f   : > { %v776_v33 = vpop.permute.xlu1 %775 }
 0x170   : > { %v4793_v35 = vpop.permute.xlu0 %708  ;;  %v4845_v19 = vmul.f32 %v1713_v18, %v4521_v59 }
 0x171   : > { %2276 = vrot.lane.b32.xlu1 %v2273_v25, %s4270_s11 }
 0x172   : > { %2573 = vrot.lane.b32.xlu0 %v2571_v15, %s4274_s29 }
 0x173   : > { %v4801_v39 = vpop.permute.xlu1 %908 }
 0x174   : > { %v4803_v40 = vpop.permute.xlu0 %841 }
 0x175   : > { %2342 = vrot.lane.b32.xlu1 %v2339_v37, %s4271_s17  ;;  %v1699_v37 = vrot.slane %v4088_v22, %v4381_v10 }
 0x176   : > { %2638 = vrot.lane.b32.xlu0 %v2636_v31, %s4275_s15 }
 0x177   : > { %v913_v45 = vpop.permute.xlu1 %912  ;;  %v1712_v58 = vcombine.low %v1699_v37, %v1703_v38 }
 0x178   : > { %v4809_v46 = vpop.permute.xlu0 %845 }
 0x179   : > { %2407 = vrot.lane.b32.xlu1 %v2404_v42, %s4272_s20 }
 0x17a   : > { %2704 = vrot.lane.b32.xlu0 %v2702_v41, %s4276_s24 }
 0x17b   : > { %v701_v14 = vpop.permute.xlu1 %700 }
 0x17c   : > { %v4815_v51 = vpop.permute.xlu0 %1081 }
 0x17d   : > { %2509 = vrot.lane.b32.xlu1 %v2506_v47, %s4273_s26 }
 0x17f   : > { %v4822_v57 = vpop.permute.xlu1 %837 }
 0x180   : > { %v4820_v55 = vpop.permute.xlu0 %1077 }
 0x181   : > { %2575 = vrot.lane.b32.xlu1 %v2572_v52, %s4274_s29 }
 0x183   : > { %v4830_v8 = vpop.permute.xlu1 %1013 }
 0x184   : > { %v774_v61 = vpop.permute.xlu0 %773 }
 0x185   : > { %v781_v63 = vsel %vm779_vm8, %v4780_v23, %v774_v61  ;;  %v782_v1 = vsel %vm779_vm8, %v774_v61, %v776_v33  ;;  %2640 = vrot.lane.b32.xlu1 %v2637_v16, %s4275_s15 }
 0x186   : > { %789 = vst [vmem:[#allocation3 + $0x8] sm:$0xf0] %v781_v63  ;;  %790 = vst [vmem:[#allocation3 + $0x10] sm:$0xf0] %v782_v1 }
 0x187   : > { %v1018_v6 = vpop.permute.xlu1 %1017 }
 0x188   : > { %v778_v5 = vpop.permute.xlu0 %777  ;;  %v1024_v9 = vsel %vm890_vm5, %v1018_v6, %v4749_v56  ;;  %v1721_v56 = vcombine.high %v4845_v19, %v4845_v19 }
 0x189   : > { %v783_v7 = vsel %vm779_vm8, %v776_v33, %v778_v5  ;;  %1032 = vst [vmem:[#allocation3 + $0x58] sm:$0xf0] %v1024_v9  ;;  %2706 = vrot.lane.b32.xlu1 %v2703_v2, %s4276_s24 }
 0x18a   : > { %791 = vst [vmem:[#allocation3 + $0x18] sm:$0xf0] %v783_v7 }
 0x18b   : > { %v4842_v3 = vpop.permute.xlu1 %1146 }
 0x18c   : > { %v911_v17 = vpop.permute.xlu0 %910 }
 0x18d   : > { %v918_v21 = vsel %vm916_vm7, %v4801_v39, %v911_v17  ;;  %v919_v15 = vsel %vm916_vm7, %v911_v17, %v913_v45 }
 0x18e   : > { %926 = vst [vmem:[#allocation3 + $0x28] sm:$0xf0] %v918_v21  ;;  %927 = vst [vmem:[#allocation3 + $0x30] sm:$0xf0] %v919_v15 }
 0x18f   : > { %v1151_v26 = vpop.permute.xlu1 %1150 }
 0x190   : > { %v915_v27 = vpop.permute.xlu0 %914  ;;  %v1157_v25 = vsel %vm753_vm2, %v1151_v26, %v4762_v0  ;;  %v4855_v29 = vld [vmem:[#allocation3 + $0x58] sm:$0xff] }
 0x191   : > { %v920_v28 = vsel %vm916_vm7, %v913_v45, %v915_v27  ;;  %1165 = vst [vmem:[#allocation3 + $0x78] sm:$0xf0] %v1157_v25  ;;  %1727 = vst [vmem:[#allocation3 + $0x58] sm:$0xf] %v1721_v56 }
 0x192   : > { %928 = vst [vmem:[#allocation3 + $0x38] sm:$0xf0] %v920_v28 }
 0x193   : > { %v703_v30 = vpop.permute.xlu1 %702 }
 0x194   : > { %v770_v59 = vpop.permute.xlu0 %769  ;;  %v711_v31 = vsel %vm710_vm9, %v701_v14, %v703_v30  ;;  %v712_v32 = vsel %vm710_vm9, %v703_v30, %v4782_v24  ;;  %v4877_v14 = vmul.f32 %v1712_v58, %v1691_v48 }
 0x195   : > { %v780_v33 = vsel %vm779_vm8, %v770_v59, %v4780_v23  ;;  %719 = vst [vmem:[#allocation3] sm:$0xf] %v711_v31  ;;  %720 = vst [vmem:[#allocation3 + $0x8] sm:$0xf] %v712_v32  ;;  %vm3103_vm8 = vcmask 433152  }
 0x196   : > { %788 = vst [vmem:[#allocation3] sm:$0xf0] %v780_v33  ;;  %v1720_v61 = vcombine.high %v4877_v14, %v4877_v14 }
 0x197   : > { %v707_v0 = vpop.permute.xlu1 %706 }
 0x198   : > { %v907_v36 = vpop.permute.xlu0 %906  ;;  %v713_v23 = vsel %vm710_vm9, %v4782_v24, %v707_v0  ;;  %v714_v41 = vsel %vm710_vm9, %v707_v0, %v4793_v35  ;;  %vm2993_vm9 = vcmask 695296  }
 0x199   : > { %v917_v34 = vsel %vm916_vm7, %v907_v36, %v4801_v39  ;;  %721 = vst [vmem:[#allocation3 + $0x10] sm:$0xf] %v713_v23  ;;  %722 = vst [vmem:[#allocation3 + $0x18] sm:$0xf] %v714_v41  ;;  %vm3171_vm7 = vcmask 1006592  }
 0x19a   : > { %925 = vst [vmem:[#allocation3 + $0x20] sm:$0xf0] %v917_v34 }
 0x19b   : > { %v840_v43 = vpop.permute.xlu1 %839 }
 0x19c   : > { %v1016_v42 = vpop.permute.xlu0 %1015  ;;  %v848_v39 = vsel %vm847_vm6, %v4822_v57, %v840_v43  ;;  %v849_v24 = vsel %vm847_vm6, %v840_v43, %v4803_v40  ;;  %v1234_v60 = vld [vmem:[#allocation3 + $0x8] sm:$0xff] }
 0x19d   : > { %v1022_v45 = vsel %vm890_vm5, %v4830_v8, %v1016_v42  ;;  %v1023_v47 = vsel %vm890_vm5, %v1016_v42, %v1018_v6  ;;  %856 = vst [vmem:[#allocation3 + $0x20] sm:$0xf] %v848_v39  ;;  %857 = vst [vmem:[#allocation3 + $0x28] sm:$0xf] %v849_v24  ;;  %v1233_v20 = vld [vmem:[#allocation3] sm:$0xff] }
 0x19e   : > { %1030 = vst [vmem:[#allocation3 + $0x48] sm:$0xf0] %v1022_v45  ;;  %1031 = vst [vmem:[#allocation3 + $0x50] sm:$0xf0] %v1023_v47  ;;  %v1232_v24 = vld [vmem:[%s441_s21] sm:$0xf] }
 0x19f   : > { %v844_v49 = vpop.permute.xlu1 %843  ;;  %s4278_s21 = smov 43  }
 0x1a0   : > { %v1149_v35 = vpop.permute.xlu0 %1148  ;;  %v850_v54 = vsel %vm847_vm6, %v4803_v40, %v844_v49  ;;  %v851_v57 = vsel %vm847_vm6, %v844_v49, %v4809_v46  ;;  %v1236_v7 = vld [vmem:[#allocation3 + $0x18] sm:$0xff]  ;;  %v1235_v21 = vld [vmem:[#allocation3 + $0x10] sm:$0xff]  ;;  %vm3128_vm6 = vcmask 613376  }
 0x1a1   : > { %v1155_v52 = vsel %vm753_vm2, %v4842_v3, %v1149_v35  ;;  %v1156_v53 = vsel %vm753_vm2, %v1149_v35, %v1151_v26  ;;  %858 = vst [vmem:[#allocation3 + $0x30] sm:$0xf] %v850_v54  ;;  %859 = vst [vmem:[#allocation3 + $0x38] sm:$0xf] %v851_v57 }
 0x1a2   : > { %1163 = vst [vmem:[#allocation3 + $0x68] sm:$0xf0] %v1155_v52  ;;  %1164 = vst [vmem:[#allocation3 + $0x70] sm:$0xf0] %v1156_v53 }
 0x1a3   : > { %v1080_v16 = vpop.permute.xlu1 %1079 }
 0x1a4   : > { %v1213_v22 = vpop.permute.xlu0 %1212  ;;  %v1087_v50 = vsel %vm822_vm4, %v4820_v55, %v1080_v16  ;;  %v1088_v40 = vsel %vm822_vm4, %v1080_v16, %v4815_v51  ;;  %v1238_v62 = vld [vmem:[#allocation3 + $0x28] sm:$0xff]  ;;  %v1237_v63 = vld [vmem:[#allocation3 + $0x20] sm:$0xff] }
 0x1a5   : > { %v1242_v46 = vld [vmem:[#allocation3 + $0x48] sm:$0xff]  ;;  %1095 = vst [vmem:[#allocation3 + $0x60] sm:$0xf] %v1087_v50  ;;  %1096 = vst [vmem:[#allocation3 + $0x68] sm:$0xf] %v1088_v40  ;;  %v4139_v1 = vpack.c.bf16 %v1238_v62, %v1234_v60  ;;  %v4141_v2 = vpack.c.bf16 %v1237_v63, %v1233_v20  ;;  %v1243_v5 = vld [vmem:[#allocation3 + $0x50] sm:$0xff] }
 0x1a6   : > { %1725 = vst [vmem:[#allocation3 + $0x48] sm:$0xf] %v1720_v61  ;;  %1726 = vst [vmem:[#allocation3 + $0x50] sm:$0xf] %v4845_v19  ;;  %v4943_v61 = vld [vmem:[#allocation2 + $0x8] sm:$0xff] }
 0x1a7   : > { %4140 = vmatprep.subr.bf16.mxu0 %v4139_v1  ;;  %v1084_v18 = vpop.permute.xlu1 %1083 }
 0x1a8   : > { %v1217_v6 = vpop.permute.xlu0 %1216  ;;  %v1089_v55 = vsel %vm822_vm4, %v4815_v51, %v1084_v18  ;;  %v1090_v9 = vsel %vm822_vm4, %v1084_v18, %v4732_v44  ;;  %4142 = vmatpush1.bf16.msra.mxu0 %v4141_v2  ;;  %v1240_v17 = vld [vmem:[#allocation3 + $0x38] sm:$0xff]  ;;  %v1239_v15 = vld [vmem:[#allocation3 + $0x30] sm:$0xff]  ;;  %vm2968_vm4 = vcmask 351232  }
 0x1a9   : > { %1097 = vst [vmem:[#allocation3 + $0x70] sm:$0xf] %v1089_v55  ;;  %1098 = vst [vmem:[#allocation3 + $0x78] sm:$0xf] %v1090_v9  ;;  %v4147_v27 = vpack.c.bf16 %v1240_v17, %v1236_v7  ;;  %v4149_v26 = vpack.c.bf16 %v1239_v15, %v1235_v21  ;;  %v1730_v55 = vld [vmem:[#allocation2 + $0x14] sm:$0xf] }
 0x1ab   : > { %4148 = vmatprep.subr.bf16.mxu1 %v4147_v27  ;;  %v1012_v19 = vpop.permute.xlu1 %1011 }
 0x1ac   : > { %v1211_v56 = vpop.permute.xlu0 %1210  ;;  %v1021_v25 = vsel %vm890_vm5, %v1012_v19, %v4830_v8  ;;  %4150 = vmatpush1.bf16.msra.mxu1 %v4149_v26  ;;  %v1246_v51 = vld [vmem:[#allocation3 + $0x68] sm:$0xff]  ;;  %vm3197_vm5 = vcmask 39936  }
 0x1ad   : > { %v1220_v28 = vsel %vm684_vm3, %v1211_v56, %v1213_v22  ;;  %1029 = vst [vmem:[#allocation3 + $0x40] sm:$0xf0] %v1021_v25  ;;  %v4143_v44 = vpack.c.bf16 %v1246_v51, %v1242_v46  ;;  %v1797_v56 = vld [vmem:[#allocation2 + $0x14] sm:$0xf] }
 0x1ae   : > { %1228 = vst [vmem:[#allocation3 + $0x80] sm:$0xf] %v1220_v28 }
 0x1af   : > { %4144 = vmatprep.subr.bf16.mxu0 %v4143_v44  ;;  %v1145_v30 = vpop.permute.xlu1 %1144 }
 0x1b0   : > { %v4900_v59 = vpop.permute.xlu0 %1441  ;;  %v1154_v33 = vsel %vm753_vm2, %v1145_v30, %v4842_v3  ;;  %v1248_v31 = vld [vmem:[#allocation3 + $0x78] sm:$0xff]  ;;  %v1247_v32 = vld [vmem:[#allocation3 + $0x70] sm:$0xff]  ;;  %v4908_v3 = vld [vmem:[#allocation2] sm:$0xff]  ;;  %vm1609_vm2 = vcmask 367616  }
 0x1b1   : > { %1162 = vst [vmem:[#allocation3 + $0x60] sm:$0xf0] %v1154_v33  ;;  %v4151_v36 = vpack.c.bf16 %v1248_v31, %v4855_v29  ;;  %v4153_v0 = vpack.c.bf16 %v1247_v32, %v1243_v5  ;;  %v1445_v2 = vrot.slane %v4900_v59, 4  ;;  %v1863_v32 = vld [vmem:[#allocation2 + $0x14] sm:$0xf] }
 0x1b3   : > { %4152 = vmatprep.subr.bf16.mxu1 %v4151_v36  ;;  %v1215_v37 = vpop.permute.xlu1 %1214  ;;  %v1448_v21 = vsel %vm1447_vm13, %v1445_v2, %v4900_v59 }
 0x1b4   : > { %v1510_v8 = vpop.permute.xlu0 %1509  ;;  %v1221_v34 = vsel %vm684_vm3, %v1213_v22, %v1215_v37  ;;  %v1222_v23 = vsel %vm684_vm3, %v1215_v37, %v1217_v6  ;;  %4154 = vmatpush1.bf16.msra.mxu1 %v4153_v0  ;;  %v1241_v41 = vld [vmem:[#allocation3 + $0x40] sm:$0xff]  ;;  %v1454_v19 = vmul.f32 %v1448_v21, %v4908_v3 }
 0x1b5   : > { %v1513_v38 = vrot.slane %v1510_v8, 4  ;;  %1229 = vst [vmem:[#allocation3 + $0x88] sm:$0xf] %v1221_v34  ;;  %1230 = vst [vmem:[#allocation3 + $0x90] sm:$0xf] %v1222_v23 }
 0x1b6   : > { %1724 = vst [vmem:[#allocation3 + $0x40] sm:$0xf] %v4877_v14  ;;  %v1249_v48 = vld [vmem:[#allocation3 + $0x80] sm:$0xf] }
 0x1b7   : > { %v1516_v29 = vsel %vm1515_vm10, %v1513_v38, %v1510_v8  ;;  %v1219_v42 = vpop.permute.xlu1 %1218 }
 0x1b8   : > { %v4912_v43 = vmul.f32 %v1516_v29, %v4908_v3  ;;  %v1223_v58 = vsel %vm684_vm3, %v1217_v6, %v1219_v42  ;;  %v1245_v45 = vld [vmem:[#allocation3 + $0x60] sm:$0xff]  ;;  %v4931_v52 = vpop.permute.xlu0 %1578  ;;  %vm1472_vm3 = vcmask 416768  }
 0x1b9   : > { %1231 = vst [vmem:[#allocation3 + $0x98] sm:$0xf] %v1223_v58  ;;  %v4145_v47 = vpack.c.bf16 %v1245_v45, %v1241_v41  ;;  %v1582_v15 = vrot.slane %v4931_v52, 4  ;;  %v4988_v41 = vld [vmem:[%s4515_s18] sm:$0xff] }
 0x1ba   : > { %1533 = vrot.lane.b32.xlu0 %v4912_v43, %s4275_s15 }
 0x1bb   : > { %4146 = vmatpush1.bf16.msra.mxu0 %v4145_v47  ;;  %v1585_v44 = vsel %vm1584_vm14, %v1582_v15, %v4931_v52 }
 0x1bc   : > { %v1250_v39 = vld [vmem:[#allocation3 + $0x88] sm:$0xf]  ;;  %v1251_v49 = vld [vmem:[#allocation3 + $0x90] sm:$0xf]  ;;  %v1647_v54 = vpop.permute.xlu0 %1646  ;;  %v1591_v36 = vmul.f32 %v1585_v44, %v4908_v3 }
 0x1bd   : > { %4078 = vmatprep.subr.msk.mxu0 %vm686_vm1, %v1250_v39  ;;  %v1650_v16 = vrot.slane %v1647_v54, 4  ;;  %v5001_v39 = vld [vmem:[%s4515_s18 + $0x8] sm:$0xff]  ;;  %s4283_s18 = smov 85  }
 0x1bf   : > { %4079 = vmatpush1.msk.msra.mxu0 %vm686_vm1, %v1249_v48  ;;  %v1653_v62 = vsel %vm1652_vm12, %v1650_v16, %v1647_v54 }
 0x1c0   : > { %4080 = vmatmul.mubr.msk.f32.vlgmr.msra.gmra.mrb[2].mxu0 %vm1257_vm11, %v1232_v24  ;;  %v1252_v35 = vld [vmem:[#allocation3 + $0x98] sm:$0xf]  ;;  %v4957_v1 = vmul.f32 %v1653_v62, %v4908_v3  ;;  %v1753_v5 = vpop.permute.xlu0 %1752 }
 0x1c1   : > { %4081 = vmatprep.subr.msk.mxu1 %vm686_vm1, %v1252_v35  ;;  %2098 = vmatprep.mubr.f32.mxu0 %v4258_v4  ;;  %v1756_v30 = vrot.slane %v1753_v5, 4 }
 0x1c2   : > { %4082 = vmatpush1.msk.msra.mxu1 %vm686_vm1, %v1251_v49 }
 0x1c3   : > { %4083 = vmatmul.mubr.msk.f32.vlgmr.msra.gmra.mrb[2].mxu1 %vm1257_vm11, %v1232_v24  ;;  %v1758_v8 = vsel %vm1678_vm15, %v1756_v30, %v1753_v5 }
 0x1c4   : > { %2169 = vmatprep.mubr.f32.mxu1 %v4258_v4  ;;  %v1820_v28 = vpop.permute.xlu0 %1819  ;;  %v4991_v29 = vmul.f32 %v4988_v41, %v1758_v8 }
 0x1c5   : > { %v1823_v62 = vrot.slane %v1820_v28, 4 }
 0x1c7   : > { %v1825_v21 = vsel %vm1609_vm2, %v1823_v62, %v1820_v28 }
 0x1c8   : > { %v4929_v14 = vpop.permute.xlu1 %1254  ;;  %v1886_v37 = vpop.permute.xlu0 %1885 }
 0x1c9   : > { %v1889_v42 = vrot.slane %v1886_v37, 4 }
 0x1cb   : > { %v1891_v35 = vsel %vm1541_vm0, %v1889_v42, %v1886_v37 }
 0x1cc   : > { %v4933_v53 = vpop.permute.xlu1 %1443  ;;  %v1897_v54 = vmul.f32 %v4988_v41, %v1891_v35 }
 0x1cd   : > { %v1446_v59 = vrot.slane %v4933_v53, 4 }
 0x1d0   : > { %v4935_v57 = vpop.permute.xlu1 %1511 }
 0x1d1   : > { %v1514_v22 = vrot.slane %v4935_v57, 4 }
 0x1d3   : > { %v1517_v60 = vsel %vm686_vm1, %v1513_v38, %v1514_v22  ;;  %v1449_v38 = vsel %vm686_vm1, %v1445_v2, %v1446_v59 }
 0x1d4   : > { %v1518_v20 = vsel %vm1515_vm10, %v1517_v60, %v4935_v57  ;;  %v4945_v50 = vpop.permute.xlu1 %1580  ;;  %v1450_v58 = vsel %vm1447_vm13, %v1449_v38, %v4933_v53  ;;  %v1419_v53 = vld [vmem:[#allocation2 + $0x10] sm:$0xf] }
 0x1d5   : > { %v4948_v40 = vmul.f32 %v4943_v61, %v1518_v20  ;;  %v1583_v47 = vrot.slane %v4945_v50, 4  ;;  %v1455_v48 = vmul.f32 %v4943_v61, %v1450_v58 }
 0x1d7   : > { %1537 = vrot.lane.b32.xlu0 %v4948_v40, %s4275_s15  ;;  %v1586_v49 = vsel %vm686_vm1, %v1582_v15, %v1583_v47  ;;  %v1597_v15 = vcombine.high %v1591_v36, %v1591_v36 }
 0x1d8   : > { %v4953_v63 = vpop.permute.xlu1 %1648  ;;  %v1587_v60 = vsel %vm1584_vm14, %v1586_v49, %v4945_v50  ;;  %v1556_v50 = vld [vmem:[#allocation2 + $0x10] sm:$0xf] }
 0x1d9   : > { %v1651_v46 = vrot.slane %v4953_v63, 4  ;;  %v1592_v2 = vmul.f32 %v1587_v60, %v4943_v61 }
 0x1db   : > { %v1654_v6 = vsel %vm686_vm1, %v1650_v16, %v1651_v46  ;;  %1670 = vrot.lane.b32.xlu0 %v4957_v1, %s4273_s26  ;;  %v1456_v16 = vmul.f32 %v1446_v59, %v1419_v53  ;;  %v1624_v59 = vld [vmem:[#allocation2 + $0x10] sm:$0xf]  ;;  %v2486_v53 = vld [vmem:[#allocation2 + $0x14] sm:$0xf] }
 0x1dc   : > { %v1655_v18 = vsel %vm1652_vm12, %v1654_v6, %v4953_v63  ;;  %v1755_v7 = vpop.permute.xlu1 %1754  ;;  %v1661_v57 = vmul.f32 %v1651_v46, %v1624_v59  ;;  %v1528_v46 = vcombine.low %v4912_v43, %v4912_v43 }
 0x1dd   : > { %v1757_v9 = vrot.slane %v1755_v7, 4  ;;  %v4968_v17 = vmul.f32 %v1655_v18, %v4943_v61  ;;  %v1460_v18 = vcombine.high %v1454_v19, %v1454_v19 }
 0x1de   : > { %v1667_v8 = vcombine.low %v1661_v57, %v1661_v57 }
 0x1df   : > { %1674 = vrot.lane.b32.xlu0 %v4968_v17, %s4273_s26  ;;  %v1766_v27 = vmul.f32 %v1757_v9, %v1730_v55  ;;  %v1759_v34 = vsel %vm686_vm1, %v1756_v30, %v1757_v9  ;;  %v1461_v9 = vcombine.high %v1455_v48, %v1455_v48 }
 0x1e0   : > { %v1822_v26 = vpop.permute.xlu1 %1821  ;;  %v1760_v45 = vsel %vm1678_vm15, %v1759_v34, %v1755_v7  ;;  %v1593_v7 = vmul.f32 %v1583_v47, %v1556_v50  ;;  %v2617_v50 = vld [vmem:[#allocation2 + $0x14] sm:$0xf] }
 0x1e1   : > { %v1824_v25 = vrot.slane %v1822_v26, 4  ;;  %v1772_v51 = vcombine.low %v1766_v27, %v1766_v27  ;;  %v5004_v24 = vmul.f32 %v5001_v39, %v1760_v45  ;;  %v1831_v27 = vmul.f32 %v4988_v41, %v1825_v21 }
 0x1e3   : > { %1462 = vrot.lane.b32.xlu0 %v1454_v19, %s4276_s24  ;;  %1781 = vrot.lane.b32.xlu1 %v1772_v51, %s4272_s20  ;;  %v1833_v33 = vmul.f32 %v1824_v25, %v1797_v56  ;;  %v1826_v6 = vsel %vm686_vm1, %v1823_v62, %v1824_v25  ;;  %v1598_v19 = vcombine.high %v1592_v2, %v1592_v2 }
 0x1e4   : > { %v1888_v31 = vpop.permute.xlu1 %1887  ;;  %v1827_v55 = vsel %vm1609_vm2, %v1826_v6, %v1822_v26  ;;  %v1487_v26 = vld [vmem:[#allocation2 + $0x10] sm:$0xf]  ;;  %v1529_v25 = vcombine.low %v4948_v40, %v4948_v40  ;;  %v1837_v51 = vcombine.high %v1831_v27, %v1831_v27  ;;  %v1771_v45 = vcombine.low %v5004_v24, %v5004_v24  ;;  %v2552_v6 = vld [vmem:[#allocation2 + $0x14] sm:$0xf] }
 0x1e5   : > { %v1890_v0 = vrot.slane %v1888_v31, 4  ;;  %v1832_v61 = vmul.f32 %v5001_v39, %v1827_v55  ;;  %v1524_v56 = vmul.f32 %v1514_v22, %v1487_v26  ;;  %v1666_v22 = vcombine.low %v4968_v17, %v4968_v17 }
 0x1e6   : > { %v1903_v17 = vcombine.low %v1897_v54, %v1897_v54 }
 0x1e7   : > { %1599 = vrot.lane.b32.xlu0 %v1591_v36, %s4274_s29  ;;  %1847 = vrot.lane.b32.xlu1 %v1833_v33, %s4271_s17  ;;  %v1899_v23 = vmul.f32 %v1890_v0, %v1863_v32  ;;  %v1892_v52 = vsel %vm686_vm1, %v1889_v42, %v1890_v0  ;;  %v1530_v44 = vcombine.low %v1524_v56, %v1524_v56  ;;  %v1953_v33 = vpop.permute.xlu0 %1952 }
 0x1e8   : > { %v1893_v20 = vsel %vm1541_vm0, %v1892_v52, %v1888_v31  ;;  %v1955_v28 = vpop.permute.xlu1 %1954  ;;  %v1838_v40 = vcombine.high %v1832_v61, %v1832_v61  ;;  %v1770_v36 = vcombine.low %v4991_v29, %v4991_v29  ;;  %v1956_v0 = vrot.slane %v1953_v33, 4 }
 0x1e9   : > { %v1905_v3 = vcombine.low %v1899_v23, %v1899_v23  ;;  %v5021_v5 = vmul.f32 %v5001_v39, %v1893_v20  ;;  %v1957_v31 = vrot.slane %v1955_v28, 4  ;;  %v1930_v23 = vld [vmem:[#allocation2 + $0x14] sm:$0xf] }
 0x1ea   : > { %v1958_v47 = vsel %vm1472_vm3, %v1956_v0, %v1953_v33 }
 0x1eb   : > { %1775 = vrot.lane.b32.xlu0 %v4991_v29, %s4272_s20  ;;  %1914 = vrot.lane.b32.xlu1 %v1905_v3, %s4270_s11  ;;  %v1959_v63 = vsel %vm686_vm1, %v1956_v0, %v1957_v31  ;;  %v5062_v37 = vpop.permute.xlu0 %2209  ;;  %v1665_v29 = vcombine.low %v4957_v1, %v4957_v1  ;;  %v1966_v42 = vmul.f32 %v1957_v31, %v1930_v23 }
 0x1ec   : > { %v5043_v30 = vpop.permute.xlu1 %2211  ;;  %v1960_v38 = vsel %vm1472_vm3, %v1959_v63, %v1955_v28  ;;  %v1964_v1 = vmul.f32 %v4988_v41, %v1958_v47 }
 0x1ed   : > { %v1965_v3 = vmul.f32 %v5001_v39, %v1960_v38  ;;  %v1904_v39 = vcombine.low %v5021_v5, %v5021_v5 }
 0x1ee   : > { %v1970_v49 = vcombine.high %v1964_v1, %v1964_v1 }
 0x1ef   : > { %1779 = vrot.lane.b32.xlu0 %v5004_v24, %s4272_s20  ;;  %1466 = vrot.lane.b32.xlu1 %v1455_v48, %s4276_s24  ;;  %v5072_v43 = vpop.permute.xlu0 %2274  ;;  %v1971_v41 = vcombine.high %v1965_v3, %v1965_v3 }
 0x1f0   : > { %v5053_v32 = vpop.permute.xlu1 %2276 }
 0x1f3   : > { %1908 = vrot.lane.b32.xlu0 %v1897_v54, %s4270_s11  ;;  %1470 = vrot.lane.b32.xlu1 %v1456_v16, %s4276_s24  ;;  %v5086_v48 = vpop.permute.xlu0 %2340 }
 0x1f4   : > { %v5065_v34 = vpop.permute.xlu1 %2342 }
 0x1f7   : > { %1603 = vrot.lane.b32.xlu1 %v1592_v2, %s4274_s29  ;;  %1912 = vrot.lane.b32.xlu0 %v5021_v5, %s4270_s11  ;;  %v5091_v52 = vpop.permute.xlu0 %2405 }
 0x1f8   : > { %v5076_v58 = vpop.permute.xlu1 %2407 }
 0x1fb   : > { %1607 = vrot.lane.b32.xlu1 %v1593_v7, %s4274_s29  ;;  %1464 = vrot.lane.b32.xlu0 %v1460_v18, %s4276_s24  ;;  %v5100_v60 = vpop.permute.xlu0 %2507 }
 0x1fc   : > { %v5088_v35 = vpop.permute.xlu1 %2509 }
 0x1fd   : > { %v2512_v24 = vrot.slane %v5088_v35, 4 }
 0x1ff   : > { %1843 = vrot.lane.b32.xlu1 %v1832_v61, %s4271_s17  ;;  %1468 = vrot.lane.b32.xlu0 %v1461_v9, %s4276_s24  ;;  %v2521_v16 = vmul.f32 %v2512_v24, %v2486_v53  ;;  %v5107_v18 = vpop.permute.xlu0 %2573 }
 0x200   : > { %v5095_v54 = vpop.permute.xlu1 %2575 }
 0x201   : > { %v2527_v62 = vcombine.low %v2521_v16, %v2521_v16  ;;  %v2578_v2 = vrot.slane %v5095_v54, 4 }
 0x203   : > { %1839 = vrot.lane.b32.xlu1 %v1831_v27, %s4271_s17  ;;  %1601 = vrot.lane.b32.xlu0 %v1597_v15, %s4274_s29  ;;  %v2587_v7 = vmul.f32 %v2578_v2, %v2552_v6  ;;  %v5115_v9 = vpop.permute.xlu0 %2638 }
 0x204   : > { %v5102_v20 = vpop.permute.xlu1 %2640 }
 0x205   : > { %v2643_v5 = vrot.slane %v5102_v20, 4 }
 0x207   : > { %1535 = vrot.lane.b32.xlu1 %v1529_v25, %s4275_s15  ;;  %1605 = vrot.lane.b32.xlu0 %v1598_v19, %s4274_s29  ;;  %v2652_v55 = vmul.f32 %v2643_v5, %v2617_v50  ;;  %v5118_v21 = vpop.permute.xlu0 %2704 }
 0x208   : > { %v5124_v56 = vpop.permute.xlu1 %2706 }
 0x209   : > { %v2658_v61 = vcombine.low %v2652_v55, %v2652_v55 }
 0x20b   : > { %1539 = vrot.lane.b32.xlu1 %v1530_v44, %s4275_s15  ;;  %1841 = vrot.lane.b32.xlu0 %v1837_v51, %s4271_s17 }
 0x20f   : > { %1672 = vrot.lane.b32.xlu1 %v1666_v22, %s4273_s26  ;;  %1845 = vrot.lane.b32.xlu0 %v1838_v40, %s4271_s17 }
 0x213   : > { %1676 = vrot.lane.b32.xlu1 %v1667_v8, %s4273_s26  ;;  %1773 = vrot.lane.b32.xlu0 %v1770_v36, %s4272_s20 }
 0x217   : > { %1531 = vrot.lane.b32.xlu1 %v1528_v46, %s4275_s15  ;;  %1906 = vrot.lane.b32.xlu0 %v1903_v17, %s4270_s11 }
 0x21b   : > { %1668 = vrot.lane.b32.xlu1 %v1665_v29, %s4273_s26  ;;  %1976 = vrot.lane.b32.xlu0 %v1965_v3, %s4269_s27 }
 0x21f   : > { %1777 = vrot.lane.b32.xlu1 %v1771_v45, %s4272_s20  ;;  %1980 = vrot.lane.b32.xlu0 %v1966_v42, %s4269_s27 }
 0x223   : > { %1910 = vrot.lane.b32.xlu1 %v1904_v39, %s4270_s11 }
 0x227   : > { %1974 = vrot.lane.b32.xlu1 %v1970_v49, %s4269_s27 }
 0x22b   : > { %1978 = vrot.lane.b32.xlu1 %v1971_v41, %s4269_s27 }
 0x22c   : > { %v5120_v15 = vpop.permute.xlu0 %1533 }
 0x22f   : > { %1972 = vrot.lane.b32.xlu1 %v1964_v1, %s4269_s27 }
 0x233   : > { %2536 = vrot.lane.b32.xlu1 %v2527_v62, %s4272_s20 }
 0x237   : > { %2601 = vrot.lane.b32.xlu1 %v2587_v7, %s4271_s17 }
 0x23b   : > { %2667 = vrot.lane.b32.xlu1 %v2658_v61, %s4270_s11 }
 0x249   : > { %v1538_v27 = vpop.permute.xlu0 %1537 }
 0x24d   : > { %v5122_v26 = vpop.permute.xlu0 %1670 }
 0x251   : > { %v5126_v19 = vpop.permute.xlu0 %1674 }
 0x255   : > { %v1463_v25 = vpop.permute.xlu0 %1462  ;;  %v1782_v28 = vpop.permute.xlu1 %1781 }
 0x259   : > { %v1600_v51 = vpop.permute.xlu0 %1599  ;;  %v1848_v44 = vpop.permute.xlu1 %1847 }
 0x25d   : > { %v5128_v59 = vpop.permute.xlu0 %1775  ;;  %v1915_v57 = vpop.permute.xlu1 %1914 }
 0x261   : > { %v5130_v22 = vpop.permute.xlu0 %1779  ;;  %v1467_v40 = vpop.permute.xlu1 %1466 }
 0x262   : > { %v1786_v33 = vsel %vm1652_vm12, %v5130_v22, %v1782_v28 }
 0x263   : > { %1794 = vst [vmem:[#allocation3 + $0x58] sm:$0xf0] %v1786_v33 }
 0x265   : > { %v5134_v31 = vpop.permute.xlu0 %1908  ;;  %v1471_v36 = vpop.permute.xlu1 %1470 }
 0x269   : > { %v5136_v0 = vpop.permute.xlu0 %1912  ;;  %v1604_v8 = vpop.permute.xlu1 %1603 }
 0x26a   : > { %v1919_v63 = vsel %vm1515_vm10, %v5136_v0, %v1915_v57 }
 0x26b   : > { %1927 = vst [vmem:[#allocation3 + $0x78] sm:$0xf0] %v1919_v63 }
 0x26d   : > { %v1465_v46 = vpop.permute.xlu0 %1464  ;;  %v1608_v17 = vpop.permute.xlu1 %1607 }
 0x26e   : > { %v1473_v38 = vsel %vm1472_vm3, %v1463_v25, %v1465_v46  ;;  %v1474_v23 = vsel %vm1472_vm3, %v1465_v46, %v1467_v40 }
 0x26f   : > { %1481 = vst [vmem:[#allocation3] sm:$0xf] %v1473_v38  ;;  %1482 = vst [vmem:[#allocation3 + $0x8] sm:$0xf] %v1474_v23 }
 0x271   : > { %v1469_v29 = vpop.permute.xlu0 %1468  ;;  %v1844_v3 = vpop.permute.xlu1 %1843 }
 0x272   : > { %v1475_v42 = vsel %vm1472_vm3, %v1467_v40, %v1469_v29  ;;  %v1476_v45 = vsel %vm1472_vm3, %v1469_v29, %v1471_v36 }
 0x273   : > { %1483 = vst [vmem:[#allocation3 + $0x10] sm:$0xf] %v1475_v42  ;;  %1484 = vst [vmem:[#allocation3 + $0x18] sm:$0xf] %v1476_v45 }
 0x275   : > { %v1602_v47 = vpop.permute.xlu0 %1601  ;;  %v1840_v1 = vpop.permute.xlu1 %1839 }
 0x276   : > { %v1610_v39 = vsel %vm1609_vm2, %v1600_v51, %v1602_v47  ;;  %v1611_v49 = vsel %vm1609_vm2, %v1602_v47, %v1604_v8 }
 0x277   : > { %1618 = vst [vmem:[#allocation3 + $0x20] sm:$0xf] %v1610_v39  ;;  %1619 = vst [vmem:[#allocation3 + $0x28] sm:$0xf] %v1611_v49 }
 0x279   : > { %v1606_v53 = vpop.permute.xlu0 %1605  ;;  %v1536_v41 = vpop.permute.xlu1 %1535 }
 0x27a   : > { %v1612_v16 = vsel %vm1609_vm2, %v1604_v8, %v1606_v53  ;;  %v1613_v62 = vsel %vm1609_vm2, %v1606_v53, %v1608_v17  ;;  %v1543_v6 = vsel %vm1541_vm0, %v5120_v15, %v1536_v41  ;;  %v1544_v50 = vsel %vm1541_vm0, %v1536_v41, %v1538_v27 }
 0x27b   : > { %1620 = vst [vmem:[#allocation3 + $0x30] sm:$0xf] %v1612_v16  ;;  %1621 = vst [vmem:[#allocation3 + $0x38] sm:$0xf] %v1613_v62 }
 0x27c   : > { %1551 = vst [vmem:[#allocation3 + $0x8] sm:$0xf0] %v1543_v6  ;;  %1552 = vst [vmem:[#allocation3 + $0x10] sm:$0xf0] %v1544_v50  ;;  %v2006_v6 = vld [vmem:[#allocation3 + $0x58] sm:$0xff] }
 0x27d   : > { %v1842_v7 = vpop.permute.xlu0 %1841  ;;  %v1540_v55 = vpop.permute.xlu1 %1539 }
 0x27e   : > { %v1849_v61 = vsel %vm1584_vm14, %v1840_v1, %v1842_v7  ;;  %v1850_v25 = vsel %vm1584_vm14, %v1842_v7, %v1844_v3  ;;  %v1545_v28 = vsel %vm1541_vm0, %v1538_v27, %v1540_v55 }
 0x27f   : > { %1857 = vst [vmem:[#allocation3 + $0x60] sm:$0xf] %v1849_v61  ;;  %1858 = vst [vmem:[#allocation3 + $0x68] sm:$0xf] %v1850_v25 }
 0x280   : > { %1553 = vst [vmem:[#allocation3 + $0x18] sm:$0xf0] %v1545_v28  ;;  %v2511_v28 = vrot.slane %v5100_v60, 4 }
 0x281   : > { %v1846_v51 = vpop.permute.xlu0 %1845  ;;  %v1673_v57 = vpop.permute.xlu1 %1672 }
 0x282   : > { %v1851_v40 = vsel %vm1584_vm14, %v1844_v3, %v1846_v51  ;;  %v1852_v33 = vsel %vm1584_vm14, %v1846_v51, %v1848_v44  ;;  %v1680_v36 = vsel %vm1678_vm15, %v5122_v26, %v1673_v57  ;;  %v1681_v8 = vsel %vm1678_vm15, %v1673_v57, %v5126_v19 }
 0x283   : > { %1859 = vst [vmem:[#allocation3 + $0x70] sm:$0xf] %v1851_v40  ;;  %1860 = vst [vmem:[#allocation3 + $0x78] sm:$0xf] %v1852_v33  ;;  %v1996_v3 = vld [vmem:[#allocation3 + $0x8] sm:$0xff]  ;;  %v1997_v16 = vld [vmem:[#allocation3 + $0x10] sm:$0xff] }
 0x284   : > { %1688 = vst [vmem:[#allocation3 + $0x28] sm:$0xf0] %v1680_v36  ;;  %1689 = vst [vmem:[#allocation3 + $0x30] sm:$0xf0] %v1681_v8  ;;  %v2577_v51 = vrot.slane %v5107_v18, 4  ;;  %v2642_v40 = vrot.slane %v5115_v9, 4 }
 0x285   : > { %v1774_v27 = vpop.permute.xlu0 %1773  ;;  %v1677_v63 = vpop.permute.xlu1 %1676 }
 0x286   : > { %v1783_v46 = vsel %vm1652_vm12, %v1774_v27, %v5128_v59  ;;  %v1682_v17 = vsel %vm1678_vm15, %v5126_v19, %v1677_v63  ;;  %v4103_v19 = vld [vmem:[%s5809_s8 + $0x25] ss:$8 sm:$0xf] }
 0x287   : > { %1791 = vst [vmem:[#allocation3 + $0x40] sm:$0xf0] %v1783_v46  ;;  %1690 = vst [vmem:[#allocation3 + $0x38] sm:$0xf0] %v1682_v17  ;;  %v1998_v49 = vld [vmem:[#allocation3 + $0x18] sm:$0xff]  ;;  %v2455_v55 = vrot.slane %v4103_v19, %v4381_v10  ;;  %v2459_v61 = vrot.slane %v4103_v19, %v4383_v11  ;;  %v2467_v8 = vrot.slane %v4103_v19, %v4387_v13 }
 0x288   : > { %v2580_v17 = vsel %vm686_vm1, %v2577_v51, %v2578_v2 }
 0x289   : > { %v1907_v44 = vpop.permute.xlu0 %1906  ;;  %v1532_v38 = vpop.permute.xlu1 %1531  ;;  %v2468_v46 = vcombine.low %v2455_v55, %v2459_v61 }
 0x28a   : > { %v1916_v23 = vsel %vm1515_vm10, %v1907_v44, %v5134_v31  ;;  %v1542_v29 = vsel %vm1541_vm0, %v1532_v38, %v5120_v15  ;;  %v2010_v41 = vld [vmem:[#allocation3 + $0x78] sm:$0xff]  ;;  %v2645_v44 = vsel %vm686_vm1, %v2642_v40, %v2643_v5 }
 0x28b   : > { %v2000_v42 = vld [vmem:[#allocation3 + $0x28] sm:$0xff]  ;;  %1924 = vst [vmem:[#allocation3 + $0x60] sm:$0xf0] %v1916_v23  ;;  %1550 = vst [vmem:[#allocation3] sm:$0xf0] %v1542_v29  ;;  %v2001_v1 = vld [vmem:[#allocation3 + $0x30] sm:$0xff]  ;;  %v4167_v7 = vpack.c.bf16 %v2010_v41, %v2006_v6 }
 0x28c   : > { %v4155_v45 = vpack.c.bf16 %v2000_v42, %v1996_v3  ;;  %v4165_v62 = vpack.c.bf16 %v2001_v1, %v1997_v16  ;;  %v2213_v41 = vrot.slane %v5062_v37, 4  ;;  %v2214_v16 = vrot.slane %v5043_v30, 4 }
 0x28d   : > { %v1669_v47 = vpop.permute.xlu1 %1668  ;;  %v1977_v42 = vpop.permute.xlu0 %1976 }
 0x28e   : > { %4156 = vmatprep.subr.bf16.mxu0 %v4155_v45  ;;  %v1679_v39 = vsel %vm1678_vm15, %v1669_v47, %v5122_v26  ;;  %v2002_v53 = vld [vmem:[#allocation3 + $0x38] sm:$0xff] }
 0x28f   : > { %1687 = vst [vmem:[#allocation3 + $0x20] sm:$0xf0] %v1679_v39  ;;  %v4163_v15 = vpack.c.bf16 %v2002_v53, %v1998_v49  ;;  %v2646_v39 = vsel %vm1541_vm0, %v2645_v44, %v5102_v20  ;;  %v2279_v20 = vrot.slane %v5053_v32, 4 }
 0x291   : > { %4164 = vmatprep.subr.bf16.mxu1 %v4163_v15  ;;  %v1778_v50 = vpop.permute.xlu1 %1777  ;;  %v2003_v15 = vld [vmem:[#allocation3 + $0x40] sm:$0xff] }
 0x292   : > { %v1784_v25 = vsel %vm1652_vm12, %v5128_v59, %v1778_v50  ;;  %v1785_v26 = vsel %vm1652_vm12, %v1778_v50, %v5130_v22  ;;  %4166 = vmatpush1.bf16.msra.mxu1 %v4165_v62  ;;  %v2463_v59 = vrot.slane %v4103_v19, %v4385_v12  ;;  %v2514_v22 = vsel %vm686_vm1, %v2511_v28, %v2512_v24  ;;  %v1995_v29 = vld [vmem:[#allocation3] sm:$0xff]  ;;  %v1981_v62 = vpop.permute.xlu0 %1980 }
 0x293   : > { %1792 = vst [vmem:[#allocation3 + $0x48] sm:$0xf0] %v1784_v25  ;;  %1793 = vst [vmem:[#allocation3 + $0x50] sm:$0xf0] %v1785_v26  ;;  %v1339_v57 = vpop.f32.mrb[2].mxu0  ;;  %4168 = vmatprep.subr.bf16.mxu1 %v4167_v7  ;;  %v2581_v19 = vsel %vm1609_vm2, %v2580_v17, %v5095_v54  ;;  %v2278_v54 = vrot.slane %v5072_v43, 4 }
 0x294   : > { %v5183_v33 = vadd.f32 %v1339_v57, %v4929_v14  ;;  %v1341_v36 = vpop.f32.mrb[3].mxu0  ;;  %v2469_v1 = vcombine.low %v2463_v59, %v2467_v8 }
 0x295   : > { %v5193_v27 = vadd.f32 %v1341_v36, %v4929_v14  ;;  %v1911_v63 = vpop.permute.xlu1 %1910  ;;  %v2007_v36 = vld [vmem:[#allocation3 + $0x60] sm:$0xff]  ;;  %v2280_v59 = vsel %vm1515_vm10, %v2278_v54, %v5072_v43  ;;  %v2281_v43 = vsel %vm686_vm1, %v2278_v54, %v2279_v20  ;;  %v2410_v54 = vrot.slane %v5076_v58, 4 }
 0x296   : > { %v1917_v24 = vsel %vm1515_vm10, %v5134_v31, %v1911_v63  ;;  %v1918_v38 = vsel %vm1515_vm10, %v1911_v63, %v5136_v0  ;;  %v1410_v23 = vpop.f32.mrb[2].mxu1  ;;  %v1999_v3 = vld [vmem:[#allocation3 + $0x20] sm:$0xff]  ;;  %v2515_v0 = vsel %vm1678_vm15, %v2514_v22, %v5088_v35 }
 0x297   : > { %v5211_v45 = vcombine.low %v5183_v33, %v5193_v27  ;;  %1925 = vst [vmem:[#allocation3 + $0x68] sm:$0xf0] %v1917_v24  ;;  %1926 = vst [vmem:[#allocation3 + $0x70] sm:$0xf0] %v1918_v38  ;;  %v5214_v2 = vadd.f32 %v1410_v23, %v4929_v14  ;;  %v1412_v5 = vpop.f32.mrb[3].mxu1  ;;  %v4157_v47 = vpack.c.bf16 %v1999_v3, %v1995_v29 }
 0x298   : > { %v5217_v31 = vadd.f32 %v1412_v5, %v4929_v14  ;;  %v2216_v38 = vsel %vm686_vm1, %v2213_v41, %v2214_v16  ;;  %v4161_v23 = vpack.c.bf16 %v2007_v36, %v2003_v15 }
 0x299   : > { %4158 = vmatpush1.bf16.msra.mxu0 %v4157_v47  ;;  %v1975_v49 = vpop.permute.xlu1 %1974  ;;  %2184 = vst [vmem:[#allocation2 + $0x4] sm:$0xff] %v5211_v45  ;;  %v2472_v53 = vmul.f32 %v2468_v46, %v5211_v45 }
 0x29a   : > { %v5230_v14 = vcombine.low %v5214_v2, %v5217_v31  ;;  %v1983_v35 = vsel %vm1447_vm13, %v1975_v49, %v1977_v42  ;;  %v2004_v50 = vld [vmem:[#allocation3 + $0x48] sm:$0xff]  ;;  %v2005_v57 = vld [vmem:[#allocation3 + $0x50] sm:$0xff] }
 0x29b   : > { %1991 = vst [vmem:[#allocation3 + $0x88] sm:$0xf] %v1983_v35  ;;  %v2476_v6 = vcombine.high %v2472_v53, %v2472_v53  ;;  %2480 = vst [vmem:[#allocation3 + $0x40] sm:$0xf] %v2472_v53  ;;  %v2409_v53 = vrot.slane %v5091_v52, 4 }
 0x29c   : > { %2185 = vst [vmem:[#allocation2 + $0xc] sm:$0xff] %v5230_v14  ;;  %v2473_v7 = vmul.f32 %v2469_v1, %v5230_v14  ;;  %v5239_v55 = vmul.f32 %v2581_v19, %v5230_v14  ;;  %v5242_v61 = vmul.f32 %v2515_v0, %v5230_v14  ;;  %v5245_v25 = vmul.f32 %v2646_v39, %v5230_v14 }
 0x29d   : > { %v1979_v26 = vpop.permute.xlu1 %1978  ;;  %2481 = vst [vmem:[#allocation3 + $0x48] sm:$0xf] %v2476_v6  ;;  %v2344_v1 = vrot.slane %v5086_v48, 4  ;;  %v2217_v0 = vsel %vm1447_vm13, %v2216_v38, %v5043_v30  ;;  %v2282_v19 = vsel %vm1515_vm10, %v2281_v43, %v5053_v32  ;;  %v2411_v30 = vsel %vm1652_vm12, %v2409_v53, %v5091_v52 }
 0x29e   : > { %v1984_v8 = vsel %vm1447_vm13, %v1977_v42, %v1979_v26  ;;  %v1985_v22 = vsel %vm1447_vm13, %v1979_v26, %v1981_v62  ;;  %v2008_v63 = vld [vmem:[#allocation3 + $0x68] sm:$0xff]  ;;  %v2009_v46 = vld [vmem:[#allocation3 + $0x70] sm:$0xff]  ;;  %v2477_v17 = vcombine.high %v2473_v7, %v2473_v7  ;;  %2482 = vst [vmem:[#allocation3 + $0x50] sm:$0xf] %v2473_v7  ;;  %v2644_v43 = vsel %vm1541_vm0, %v2642_v40, %v5115_v9 }
 0x29f   : > { %1992 = vst [vmem:[#allocation3 + $0x90] sm:$0xf] %v1984_v8  ;;  %1993 = vst [vmem:[#allocation3 + $0x98] sm:$0xf] %v1985_v22  ;;  %v4159_v44 = vpack.c.bf16 %v2008_v63, %v2004_v50  ;;  %v4169_v24 = vpack.c.bf16 %v2009_v46, %v2005_v57  ;;  %v2412_v57 = vsel %vm686_vm1, %v2409_v53, %v2410_v54 }
 0x2a0   : > { %2483 = vst [vmem:[#allocation3 + $0x58] sm:$0xf] %v2477_v17  ;;  %v2251_v29 = vld [vmem:[#allocation2] sm:$0xff]  ;;  %v2413_v8 = vsel %vm1652_vm12, %v2412_v57, %v5076_v58  ;;  %v2579_v17 = vsel %vm1609_vm2, %v2577_v51, %v5107_v18  ;;  %v2513_v18 = vsel %vm1678_vm15, %v2511_v28, %v5100_v60  ;;  %v2650_v60 = vmul.f32 %v2644_v43, %v5211_v45 }
 0x2a1   : > { %4160 = vmatprep.subr.bf16.mxu0 %v4159_v44  ;;  %4170 = vmatpush1.bf16.msra.mxu1 %v4169_v24  ;;  %v1973_v3 = vpop.permute.xlu1 %1972  ;;  %v5257_v42 = vmul.f32 %v2280_v59, %v2251_v29  ;;  %v2417_v36 = vmul.f32 %v2411_v30, %v2251_v29  ;;  %v2346_v24 = vsel %vm1584_vm14, %v2344_v1, %v5086_v48  ;;  %v2683_v30 = vld [vmem:[#allocation2 + $0x14] sm:$0xf] }
 0x2a2   : > { %v1982_v5 = vsel %vm1447_vm13, %v1973_v3, %v1975_v49  ;;  %4162 = vmatpush1.bf16.msra.mxu0 %v4161_v23  ;;  %v2012_v47 = vld [vmem:[#allocation3 + $0x88] sm:$0xf]  ;;  %v2345_v49 = vrot.slane %v5065_v34, 4  ;;  %v2585_v38 = vmul.f32 %v2579_v17, %v5211_v45 }
 0x2a3   : > { %1990 = vst [vmem:[#allocation3 + $0x80] sm:$0xf] %v1982_v5  ;;  %2297 = vrot.lane.b32.xlu1 %v5257_v42, %s4275_s15  ;;  %4093 = vmatprep.subr.msk.mxu0 %vm686_vm1, %v2012_v47  ;;  %v2187_v39 = vld [vmem:[#allocation2 + $0x8] sm:$0xff]  ;;  %v2188_v62 = vld [vmem:[#allocation2 + $0x10] sm:$0xf]  ;;  %v2423_v5 = vcombine.low %v2417_v36, %v2417_v36  ;;  %v2708_v47 = vrot.slane %v5118_v21, 4 }
 0x2a4   : > { %v2222_v35 = vmul.f32 %v2217_v0, %v2187_v39  ;;  %v2287_v15 = vmul.f32 %v2282_v19, %v2187_v39  ;;  %v2347_v7 = vsel %vm686_vm1, %v2344_v1, %v2345_v49  ;;  %v2223_v26 = vmul.f32 %v2214_v16, %v2188_v62  ;;  %v2319_v63 = vld [vmem:[#allocation2 + $0x10] sm:$0xf]  ;;  %v5392_v17 = vld [vmem:[%s4397_s16] sm:$0xf] }
 0x2a5   : > { %v2348_v59 = vsel %vm1584_vm14, %v2347_v7, %v5065_v34  ;;  %v2418_v16 = vmul.f32 %v2413_v8, %v2187_v39  ;;  %v2354_v46 = vmul.f32 %v2345_v49, %v2319_v63  ;;  %v2215_v34 = vsel %vm1447_vm13, %v2213_v41, %v5062_v37  ;;  %v2253_v3 = vld [vmem:[#allocation2 + $0x10] sm:$0xf] }
 0x2a6   : > { %2233 = vrot.lane.b32.xlu0 %v2222_v35, %s4276_s24  ;;  %v2014_v6 = vld [vmem:[#allocation3 + $0x98] sm:$0xf]  ;;  %v2013_v50 = vld [vmem:[#allocation3 + $0x90] sm:$0xf]  ;;  %v2353_v22 = vmul.f32 %v2348_v59, %v2187_v39  ;;  %v2221_v44 = vmul.f32 %v2251_v29, %v2215_v34  ;;  %v2352_v37 = vmul.f32 %v2346_v24, %v2251_v29  ;;  %v2519_v41 = vmul.f32 %v2513_v18, %v5211_v45 }
 0x2a7   : > { %2301 = vrot.lane.b32.xlu1 %v2287_v15, %s4275_s15  ;;  %4096 = vmatprep.subr.msk.mxu1 %vm686_vm1, %v2014_v6  ;;  %v2228_v48 = vcombine.high %v2222_v35, %v2222_v35  ;;  %v2292_v29 = vcombine.low %v5257_v42, %v5257_v42  ;;  %v2293_v9 = vcombine.low %v2287_v15, %v2287_v15  ;;  %v2709_v1 = vrot.slane %v5124_v56, 4  ;;  %v2384_v19 = vld [vmem:[#allocation2 + $0x10] sm:$0xf] }
 0x2a8   : > { %4097 = vmatpush1.msk.msra.mxu1 %vm686_vm1, %v2013_v50  ;;  %v2227_v51 = vcombine.high %v2221_v44, %v2221_v44  ;;  %v2358_v23 = vcombine.high %v2352_v37, %v2352_v37  ;;  %v2359_v28 = vcombine.high %v2353_v22, %v2353_v22  ;;  %v2288_v40 = vmul.f32 %v2279_v20, %v2253_v3  ;;  %v4114_v50 = vld [vmem:[%s5809_s8 + $0x42] ss:$8 sm:$0xf] }
 0x2a9   : > { %v2526_v0 = vcombine.low %v5242_v61, %v5242_v61  ;;  %v2710_v39 = vsel %vm1472_vm3, %v2708_v47, %v5118_v21  ;;  %v2711_v32 = vsel %vm686_vm1, %v2708_v47, %v2709_v1  ;;  %v2424_v20 = vcombine.low %v2418_v16, %v2418_v16  ;;  %v1994_v21 = vld [vmem:[%s449_s25] sm:$0xf] }
 0x2aa   : > { %2237 = vrot.lane.b32.xlu0 %v2223_v26, %s4276_s24  ;;  %v2011_v52 = vld [vmem:[#allocation3 + $0x80] sm:$0xf]  ;;  %v2294_v42 = vcombine.low %v2288_v40, %v2288_v40  ;;  %v2419_v53 = vmul.f32 %v2410_v54, %v2384_v19  ;;  %v2657_v49 = vcombine.low %v5245_v25, %v5245_v25  ;;  %v2716_v35 = vmul.f32 %v2710_v39, %v5211_v45 }
 0x2ab   : > { %2428 = vrot.lane.b32.xlu1 %v2417_v36, %s4273_s26  ;;  %4094 = vmatpush1.msk.msra.mxu0 %vm686_vm1, %v2011_v52  ;;  %v2592_v54 = vcombine.high %v5239_v55, %v5239_v55  ;;  %v2656_v62 = vcombine.low %v2650_v60, %v2650_v60  ;;  %v2718_v6 = vmul.f32 %v2709_v1, %v2683_v30  ;;  %v4277_v7 = vmov 2   ;;  %v4115_v52 = vld [vmem:[%s5809_s8 + $0x43] ss:$8 sm:$0xf] }
 0x2ac   : > { %v2425_v15 = vcombine.low %v2419_v53, %v2419_v53  ;;  %4095 = vmatmul.mubr.msk.f32.vlgmr.msra.gmra.mrb[4].mxu0 %vm1257_vm11, %v1994_v21  ;;  %4098 = vmatmul.mubr.msk.f32.vlgmr.msra.gmra.mrb[4].mxu1 %vm1257_vm11, %v1994_v21  ;;  %v2722_v58 = vcombine.high %v2716_v35, %v2716_v35  ;;  %v2951_v26 = vrot.slane %v4114_v50, %v4383_v11  ;;  %v4120_v47 = vld [vmem:[%s5809_s8 + $0x60] ss:$8 sm:$0xf]  ;;  %v4121_v53 = vld [vmem:[%s5809_s8 + $0x61] ss:$8 sm:$0xf] }
 0x2ad   : > { %2850 = vmatprep.mubr.f32.mxu0 %v4258_v4  ;;  %2921 = vmatprep.mubr.f32.mxu1 %v4258_v4  ;;  %v2955_v57 = vrot.slane %v4114_v50, %v4385_v12  ;;  %v2959_v36 = vrot.slane %v4114_v50, %v4387_v13  ;;  %v3015_v59 = vrot.slane %v4115_v52, %v4381_v10 }
 0x2ae   : > { %2364 = vrot.lane.b32.xlu0 %v2353_v22, %s4274_s29  ;;  %v3019_v8 = vrot.slane %v4115_v52, %v4383_v11  ;;  %v3027_v34 = vrot.slane %v4115_v52, %v4387_v13  ;;  %v3323_v39 = vrot.slane %v4120_v47, %v4381_v10 }
 0x2af   : > { %2432 = vrot.lane.b32.xlu1 %v2418_v16, %s4273_s26  ;;  %4242 = vset.pattern.permute.xlu0 %v4277_v7  ;;  %v4116_v16 = vld [vmem:[%s5809_s8 + $0x44] ss:$8 sm:$0xf]  ;;  %v2961_v63 = vcombine.low %v2955_v57, %v2959_v36 }
 0x2b0   : > { %v3082_v24 = vrot.slane %v4116_v16, %v4381_v10 }
 0x2b2   : > { %2368 = vrot.lane.b32.xlu0 %v2354_v46, %s4274_s29  ;;  %v3023_v46 = vrot.slane %v4115_v52, %v4385_v12 }
 0x2b3   : > { %2597 = vrot.lane.b32.xlu1 %v5239_v55, %s4271_s17  ;;  %v2947_v55 = vrot.slane %v4114_v50, %v4381_v10 }
 0x2b4   : > { %v3029_v18 = vcombine.low %v3023_v46, %v3027_v34 }
 0x2b5   : > { %v2960_v22 = vcombine.low %v2947_v55, %v2951_v26 }
 0x2b6   : > { %2229 = vrot.lane.b32.xlu0 %v2221_v44, %s4276_s24  ;;  %v3028_v44 = vcombine.low %v3015_v59, %v3019_v8 }
 0x2b7   : > { %2593 = vrot.lane.b32.xlu1 %v2585_v38, %s4271_s17 }
 0x2ba   : > { %2360 = vrot.lane.b32.xlu0 %v2352_v37, %s4274_s29  ;;  %v4117_v37 = vld [vmem:[%s5809_s8 + $0x45] ss:$8 sm:$0xf] }
 0x2bb   : > { %2231 = vrot.lane.b32.xlu1 %v2227_v51, %s4276_s24  ;;  %v3090_v51 = vrot.slane %v4116_v16, %v4385_v12  ;;  %v3150_v43 = vrot.slane %v4117_v37, %v4381_v10  ;;  %v3162_v3 = vrot.slane %v4117_v37, %v4387_v13 }
 0x2be   : > { %2530 = vrot.lane.b32.xlu0 %v2519_v41, %s4272_s20 }
 0x2bf   : > { %2235 = vrot.lane.b32.xlu1 %v2228_v48, %s4276_s24  ;;  %s445_s24 = scalar_lea.vmem %s5804_s3, %s4379_s28 }
 0x2c2   : > { %2534 = vrot.lane.b32.xlu0 %v5242_v61, %s4272_s20  ;;  %v2712_v61 = vsel %vm1472_vm3, %v2711_v32, %v5124_v56  ;;  %v2591_v56 = vcombine.high %v2585_v38, %v2585_v38  ;;  %v3086_v38 = vrot.slane %v4116_v16, %v4383_v11  ;;  %v3327_v32 = vrot.slane %v4120_v47, %v4383_v11 }
 0x2c3   : > { %2362 = vrot.lane.b32.xlu1 %v2358_v23, %s4274_s29  ;;  %v2717_v45 = vmul.f32 %v2712_v61, %v5230_v14  ;;  %v2525_v14 = vcombine.low %v2519_v41, %v2519_v41  ;;  %v3094_v41 = vrot.slane %v4116_v16, %v4387_v13  ;;  %v3154_v23 = vrot.slane %v4117_v37, %v4383_v11 }
 0x2c4   : > { %v3095_v48 = vcombine.low %v3082_v24, %v3086_v38  ;;  %v3335_v61 = vrot.slane %v4120_v47, %v4387_v13  ;;  %v3336_v21 = vcombine.low %v3323_v39, %v3327_v32 }
 0x2c6   : > { %2661 = vrot.lane.b32.xlu0 %v2650_v60, %s4270_s11  ;;  %v4119_v60 = vld [vmem:[%s5809_s8 + $0x47] ss:$8 sm:$0xf] }
 0x2c7   : > { %2366 = vrot.lane.b32.xlu1 %v2359_v28, %s4274_s29  ;;  %v3096_v28 = vcombine.low %v3090_v51, %v3094_v41  ;;  %s4279_s29 = smov 53   ;;  %v3256_v40 = vrot.slane %v4119_v60, %v4381_v10 }
 0x2ca   : > { %2665 = vrot.lane.b32.xlu0 %v5245_v25, %s4270_s11  ;;  %v2723_v25 = vcombine.high %v2717_v45, %v2717_v45 }
 0x2cb   : > { %2295 = vrot.lane.b32.xlu1 %v2292_v29, %s4275_s15  ;;  %v3158_v29 = vrot.slane %v4117_v37, %v4385_v12 }
 0x2cd   : > { %v3164_v1 = vcombine.low %v3158_v29, %v3162_v3 }
 0x2ce   : > { %2299 = vrot.lane.b32.xlu0 %v2293_v9, %s4275_s15  ;;  %v3163_v9 = vcombine.low %v3150_v43, %v3154_v23 }
 0x2cf   : > { %2426 = vrot.lane.b32.xlu1 %v2423_v5, %s4273_s26  ;;  %v3260_v5 = vrot.slane %v4119_v60, %v4383_v11 }
 0x2d1   : > { %v3269_v19 = vcombine.low %v3256_v40, %v3260_v5 }
 0x2d2   : > { %2303 = vrot.lane.b32.xlu0 %v2294_v42, %s4275_s15  ;;  %v3264_v42 = vrot.slane %v4119_v60, %v4385_v12 }
 0x2d3   : > { %2532 = vrot.lane.b32.xlu1 %v2526_v0, %s4272_s20  ;;  %v3268_v0 = vrot.slane %v4119_v60, %v4387_v13 }
 0x2d6   : > { %2430 = vrot.lane.b32.xlu0 %v2424_v20, %s4273_s26  ;;  %v2537_v20 = vpop.permute.xlu1 %2536 }
 0x2d7   : > { %2663 = vrot.lane.b32.xlu1 %v2657_v49, %s4270_s11  ;;  %v3270_v49 = vcombine.low %v3264_v42, %v3268_v0 }
 0x2da   : > { %2434 = vrot.lane.b32.xlu0 %v2425_v15, %s4273_s26  ;;  %s4280_s26 = smov 123   ;;  %v3389_v15 = vrot.slane %v4121_v53, %v4381_v10 }
 0x2db   : > { %2726 = vrot.lane.b32.xlu1 %v2722_v58, %s4269_s27  ;;  %v3393_v58 = vrot.slane %v4121_v53, %v4383_v11 }
 0x2de   : > { %2595 = vrot.lane.b32.xlu0 %v2591_v56, %s4271_s17  ;;  %v5436_v56 = vpop.permute.xlu1 %2601 }
 0x2df   : > { %2730 = vrot.lane.b32.xlu1 %v2723_v25, %s4269_s27 }
 0x2e2   : > { %2599 = vrot.lane.b32.xlu0 %v2592_v54, %s4271_s17  ;;  %v3397_v54 = vrot.slane %v4121_v53, %v4385_v12  ;;  %v2668_v57 = vpop.permute.xlu1 %2667  ;;  %s457_s17 = scalar_lea.vmem %s5807_s6, %s4379_s28 }
 0x2e3   : > { %2724 = vrot.lane.b32.xlu1 %v2716_v35, %s4269_s27  ;;  %v3331_v35 = vrot.slane %v4120_v47, %v4385_v12 }
 0x2e5   : > { %v3337_v25 = vcombine.low %v3331_v35, %v3335_v61 }
 0x2e6   : > { %2528 = vrot.lane.b32.xlu0 %v2525_v14, %s4272_s20  ;;  %s4281_s20 = smov 5   ;;  %v3401_v14 = vrot.slane %v4121_v53, %v4387_v13 }
 0x2e7   : > { %2962 = vrot.lane.b32.xlu1 %v2960_v22, %s4278_s21 }
 0x2e8   : > { %v3403_v50 = vcombine.low %v3397_v54, %v3401_v14 }
 0x2ea   : > { %2659 = vrot.lane.b32.xlu0 %v2656_v62, %s4270_s11  ;;  %v3402_v62 = vcombine.low %v3389_v15, %v3393_v58 }
 0x2eb   : > { %2964 = vrot.lane.b32.xlu1 %v2961_v63, %s4278_s21 }
 0x2ee   : > { %2728 = vrot.lane.b32.xlu0 %v2717_v45, %s4269_s27  ;;  %v4122_v45 = vld [vmem:[%s5809_s8 + $0x62] ss:$8 sm:$0xf] }
 0x2ef   : > { %3032 = vrot.lane.b32.xlu1 %v3029_v18, %s4275_s15  ;;  %v3456_v30 = vrot.slane %v4122_v45, %v4381_v10  ;;  %v3464_v7 = vrot.slane %v4122_v45, %v4385_v12  ;;  %v3468_v55 = vrot.slane %v4122_v45, %v4387_v13 }
 0x2f1   : > { %v3470_v36 = vcombine.low %v3464_v7, %v3468_v55 }
 0x2f2   : > { %2732 = vrot.lane.b32.xlu0 %v2718_v6, %s4269_s27  ;;  %s4282_s27 = smov 75   ;;  %v3460_v6 = vrot.slane %v4122_v45, %v4383_v11 }
 0x2f3   : > { %3099 = vrot.lane.b32.xlu1 %v3096_v28, %s4279_s29 }
 0x2f4   : > { %v3469_v26 = vcombine.low %v3456_v30, %v3460_v6 }
 0x2f6   : > { %2768 = vperm.xlu0 %4242, %v5392_v17  }
 0x2f7   : > { %3167 = vrot.lane.b32.xlu1 %v3164_v1, %s4280_s26 }
 0x2fa   : > { %3030 = vrot.lane.b32.xlu0 %v3028_v44, %s4275_s15 }
 0x2fb   : > { %3273 = vrot.lane.b32.xlu1 %v3270_v49, %s4281_s20 }
 0x2fe   : > { %3097 = vrot.lane.b32.xlu0 %v3095_v48, %s4279_s29 }
 0x2ff   : > { %3340 = vrot.lane.b32.xlu1 %v3337_v25, %s4282_s27 }
 0x302   : > { %3165 = vrot.lane.b32.xlu0 %v3163_v9, %s4280_s26 }
 0x303   : > { %3406 = vrot.lane.b32.xlu1 %v3403_v50, %s4270_s11 }
 0x306   : > { %3271 = vrot.lane.b32.xlu0 %v3269_v19, %s4281_s20 }
 0x307   : > { %3473 = vrot.lane.b32.xlu1 %v3470_v36, %s4283_s18 }
 0x30a   : > { %3338 = vrot.lane.b32.xlu0 %v3336_v21, %s4282_s27 }
 0x30e   : > { %3404 = vrot.lane.b32.xlu0 %v3402_v62, %s4270_s11 }
 0x312   : > { %3471 = vrot.lane.b32.xlu0 %v3469_v26, %s4283_s18 }
 0x315   : > { %v2298_v52 = vpop.permute.xlu1 %2297 }
 0x318   : > { %v2234_v59 = vpop.permute.xlu0 %2233 }
 0x319   : > { %v2302_v8 = vpop.permute.xlu1 %2301 }
 0x31c   : > { %v2238_v22 = vpop.permute.xlu0 %2237 }
 0x31d   : > { %v2429_v16 = vpop.permute.xlu1 %2428 }
 0x320   : > { %v2365_v63 = vpop.permute.xlu0 %2364 }
 0x321   : > { %v5451_v46 = vpop.permute.xlu1 %2432 }
 0x324   : > { %v2369_v34 = vpop.permute.xlu0 %2368 }
 0x325   : > { %v5453_v44 = vpop.permute.xlu1 %2597 }
 0x328   : > { %v2230_v24 = vpop.permute.xlu0 %2229 }
 0x329   : > { %v5455_v38 = vpop.permute.xlu1 %2593 }
 0x32c   : > { %v2361_v37 = vpop.permute.xlu0 %2360 }
 0x32d   : > { %v2232_v18 = vpop.permute.xlu1 %2231 }
 0x32e   : > { %v2239_v51 = vsel %vm1472_vm3, %v2230_v24, %v2232_v18  ;;  %v2240_v41 = vsel %vm1472_vm3, %v2232_v18, %v2234_v59 }
 0x32f   : > { %2247 = vst [vmem:[#allocation3] sm:$0xf] %v2239_v51  ;;  %2248 = vst [vmem:[#allocation3 + $0x8] sm:$0xf] %v2240_v41 }
 0x330   : > { %v5459_v48 = vpop.permute.xlu0 %2530 }
 0x331   : > { %v2236_v43 = vpop.permute.xlu1 %2235 }
 0x332   : > { %v2241_v23 = vsel %vm1472_vm3, %v2234_v59, %v2236_v43  ;;  %v2242_v60 = vsel %vm1472_vm3, %v2236_v43, %v2238_v22 }
 0x333   : > { %2249 = vst [vmem:[#allocation3 + $0x10] sm:$0xf] %v2241_v23  ;;  %2250 = vst [vmem:[#allocation3 + $0x18] sm:$0xf] %v2242_v60 }
 0x334   : > { %v2535_v28 = vpop.permute.xlu0 %2534 }
 0x335   : > { %v2541_v29 = vsel %vm1652_vm12, %v2535_v28, %v2537_v20  ;;  %v2363_v3 = vpop.permute.xlu1 %2362 }
 0x336   : > { %2549 = vst [vmem:[#allocation3 + $0x58] sm:$0xf0] %v2541_v29  ;;  %v2370_v9 = vsel %vm1609_vm2, %v2361_v37, %v2363_v3  ;;  %v2371_v40 = vsel %vm1609_vm2, %v2363_v3, %v2365_v63 }
 0x337   : > { %2378 = vst [vmem:[#allocation3 + $0x20] sm:$0xf] %v2370_v9  ;;  %2379 = vst [vmem:[#allocation3 + $0x28] sm:$0xf] %v2371_v40 }
 0x338   : > { %v5466_v5 = vpop.permute.xlu0 %2661 }
 0x339   : > { %v2367_v47 = vpop.permute.xlu1 %2366 }
 0x33a   : > { %v2372_v1 = vsel %vm1609_vm2, %v2365_v63, %v2367_v47  ;;  %v2373_v42 = vsel %vm1609_vm2, %v2367_v47, %v2369_v34 }
 0x33b   : > { %2380 = vst [vmem:[#allocation3 + $0x30] sm:$0xf] %v2372_v1  ;;  %2381 = vst [vmem:[#allocation3 + $0x38] sm:$0xf] %v2373_v42 }
 0x33c   : > { %v2666_v0 = vpop.permute.xlu0 %2665 }
 0x33d   : > { %v2672_v19 = vsel %vm1515_vm10, %v2666_v0, %v2668_v57  ;;  %v2296_v39 = vpop.permute.xlu1 %2295  ;;  %v2758_v1 = vld [vmem:[#allocation3 + $0x58] sm:$0xff] }
 0x33e   : > { %2680 = vst [vmem:[#allocation3 + $0x78] sm:$0xf0] %v2672_v19  ;;  %v2305_v32 = vsel %vm1541_vm0, %v2296_v39, %v2298_v52 }
 0x33f   : > { %2313 = vst [vmem:[#allocation3] sm:$0xf0] %v2305_v32 }
 0x340   : > { %v2300_v20 = vpop.permute.xlu0 %2299 }
 0x341   : > { %v2306_v53 = vsel %vm1541_vm0, %v2298_v52, %v2300_v20  ;;  %v2307_v49 = vsel %vm1541_vm0, %v2300_v20, %v2302_v8  ;;  %v2427_v35 = vpop.permute.xlu1 %2426 }
 0x342   : > { %2314 = vst [vmem:[#allocation3 + $0x8] sm:$0xf0] %v2306_v53  ;;  %2315 = vst [vmem:[#allocation3 + $0x10] sm:$0xf0] %v2307_v49  ;;  %v2436_v61 = vsel %vm1678_vm15, %v2427_v35, %v2429_v16 }
 0x343   : > { %2444 = vst [vmem:[#allocation3 + $0x20] sm:$0xf0] %v2436_v61 }
 0x344   : > { %v2304_v21 = vpop.permute.xlu0 %2303 }
 0x345   : > { %v2308_v15 = vsel %vm1541_vm0, %v2302_v8, %v2304_v21  ;;  %v2533_v58 = vpop.permute.xlu1 %2532 }
 0x346   : > { %2316 = vst [vmem:[#allocation3 + $0x18] sm:$0xf0] %v2308_v15  ;;  %v2539_v45 = vsel %vm1652_vm12, %v5459_v48, %v2533_v58  ;;  %v2540_v25 = vsel %vm1652_vm12, %v2533_v58, %v2535_v28  ;;  %v2747_v34 = vld [vmem:[#allocation3] sm:$0xff] }
 0x347   : > { %2547 = vst [vmem:[#allocation3 + $0x48] sm:$0xf0] %v2539_v45  ;;  %2548 = vst [vmem:[#allocation3 + $0x50] sm:$0xf0] %v2540_v25  ;;  %v2746_v25 = vld [vmem:[%s445_s24] sm:$0xf] }
 0x348   : > { %v2431_v54 = vpop.permute.xlu0 %2430 }
 0x349   : > { %v2437_v14 = vsel %vm1678_vm15, %v2429_v16, %v2431_v54  ;;  %v2438_v62 = vsel %vm1678_vm15, %v2431_v54, %v5451_v46  ;;  %v2664_v30 = vpop.permute.xlu1 %2663  ;;  %v2748_v22 = vld [vmem:[#allocation3 + $0x8] sm:$0xff]  ;;  %v2749_v28 = vld [vmem:[#allocation3 + $0x10] sm:$0xff] }
 0x34a   : > { %2445 = vst [vmem:[#allocation3 + $0x28] sm:$0xf0] %v2437_v14  ;;  %2446 = vst [vmem:[#allocation3 + $0x30] sm:$0xf0] %v2438_v62  ;;  %v2670_v6 = vsel %vm1515_vm10, %v5466_v5, %v2664_v30  ;;  %v2671_v50 = vsel %vm1515_vm10, %v2664_v30, %v2666_v0  ;;  %v2751_v36 = vld [vmem:[#allocation3 + $0x20] sm:$0xff] }
 0x34b   : > { %2678 = vst [vmem:[#allocation3 + $0x68] sm:$0xf0] %v2670_v6  ;;  %2679 = vst [vmem:[#allocation3 + $0x70] sm:$0xf0] %v2671_v50  ;;  %v4173_v24 = vpack.c.bf16 %v2751_v36, %v2747_v34 }
 0x34c   : > { %v2435_v7 = vpop.permute.xlu0 %2434 }
 0x34d   : > { %v2439_v55 = vsel %vm1678_vm15, %v5451_v46, %v2435_v7  ;;  %v2727_v26 = vpop.permute.xlu1 %2726  ;;  %v2750_v41 = vld [vmem:[#allocation3 + $0x18] sm:$0xff] }
 0x34e   : > { %2447 = vst [vmem:[#allocation3 + $0x38] sm:$0xf0] %v2439_v55  ;;  %v2756_v9 = vld [vmem:[#allocation3 + $0x48] sm:$0xff]  ;;  %v2757_v19 = vld [vmem:[#allocation3 + $0x50] sm:$0xff] }
 0x350   : > { %v2596_v57 = vpop.permute.xlu0 %2595 }
 0x351   : > { %v2603_v52 = vsel %vm1584_vm14, %v5455_v38, %v2596_v57  ;;  %v2604_v59 = vsel %vm1584_vm14, %v2596_v57, %v5453_v44  ;;  %v2731_v8 = vpop.permute.xlu1 %2730  ;;  %v2752_v16 = vld [vmem:[#allocation3 + $0x28] sm:$0xff]  ;;  %v2753_v46 = vld [vmem:[#allocation3 + $0x30] sm:$0xff] }
 0x352   : > { %2611 = vst [vmem:[#allocation3 + $0x60] sm:$0xf] %v2603_v52  ;;  %2612 = vst [vmem:[#allocation3 + $0x68] sm:$0xf] %v2604_v59  ;;  %v4171_v63 = vpack.c.bf16 %v2752_v16, %v2748_v22  ;;  %v4181_v29 = vpack.c.bf16 %v2753_v46, %v2749_v28 }
 0x354   : > { %v2600_v37 = vpop.permute.xlu0 %2599  ;;  %4172 = vmatprep.subr.bf16.mxu0 %v4171_v63 }
 0x355   : > { %v2605_v18 = vsel %vm1584_vm14, %v5453_v44, %v2600_v37  ;;  %v2606_v38 = vsel %vm1584_vm14, %v2600_v37, %v5436_v56  ;;  %4174 = vmatpush1.bf16.msra.mxu0 %v4173_v24  ;;  %v2725_v51 = vpop.permute.xlu1 %2724  ;;  %v2754_v43 = vld [vmem:[#allocation3 + $0x38] sm:$0xff] }
 0x356   : > { %2613 = vst [vmem:[#allocation3 + $0x70] sm:$0xf] %v2605_v18  ;;  %2614 = vst [vmem:[#allocation3 + $0x78] sm:$0xf] %v2606_v38  ;;  %v2734_v23 = vsel %vm1447_vm13, %v2725_v51, %v2727_v26  ;;  %v4179_v60 = vpack.c.bf16 %v2754_v43, %v2750_v41  ;;  %v3249_v38 = vld [vmem:[#allocation2 + $0x14] sm:$0xf] }
 0x357   : > { %2742 = vst [vmem:[#allocation3 + $0x80] sm:$0xf] %v2734_v23 }
 0x358   : > { %v2529_v3 = vpop.permute.xlu0 %2528  ;;  %4180 = vmatprep.subr.bf16.mxu1 %v4179_v60 }
 0x359   : > { %v2538_v44 = vsel %vm1652_vm12, %v2529_v3, %v5459_v48  ;;  %4182 = vmatpush1.bf16.msra.mxu1 %v4181_v29  ;;  %v2760_v56 = vld [vmem:[#allocation3 + $0x68] sm:$0xff]  ;;  %v5507_v58 = vpop.permute.xlu1 %2962 }
 0x35a   : > { %2546 = vst [vmem:[#allocation3 + $0x40] sm:$0xf0] %v2538_v44  ;;  %v4175_v40 = vpack.c.bf16 %v2760_v56, %v2756_v9  ;;  %v2966_v62 = vrot.slane %v5507_v58, 4  ;;  %v3316_v44 = vld [vmem:[#allocation2 + $0x14] sm:$0xf] }
 0x35c   : > { %v2660_v47 = vpop.permute.xlu0 %2659  ;;  %4176 = vmatprep.subr.bf16.mxu0 %v4175_v40 }
 0x35d   : > { %v2669_v42 = vsel %vm1515_vm10, %v2660_v47, %v5466_v5  ;;  %v2762_v0 = vld [vmem:[#allocation3 + $0x78] sm:$0xff]  ;;  %v2761_v39 = vld [vmem:[#allocation3 + $0x70] sm:$0xff]  ;;  %v5510_v14 = vpop.permute.xlu1 %2964 }
 0x35e   : > { %2677 = vst [vmem:[#allocation3 + $0x60] sm:$0xf0] %v2669_v42  ;;  %v4183_v32 = vpack.c.bf16 %v2762_v0, %v2758_v1  ;;  %v4185_v20 = vpack.c.bf16 %v2761_v39, %v2757_v19  ;;  %v2763_v54 = vld [vmem:[#allocation3 + $0x80] sm:$0xf]  ;;  %v2967_v30 = vrot.slane %v5510_v14, 4 }
 0x35f   : > { %v3382_v19 = vld [vmem:[#allocation2 + $0x14] sm:$0xf] }
 0x360   : > { %v2729_v53 = vpop.permute.xlu0 %2728  ;;  %4184 = vmatprep.subr.bf16.mxu1 %v4183_v32  ;;  %v2970_v7 = vsel %vm686_vm1, %v2966_v62, %v2967_v30 }
 0x361   : > { %v2735_v48 = vsel %vm1447_vm13, %v2727_v26, %v2729_v53  ;;  %v2736_v49 = vsel %vm1447_vm13, %v2729_v53, %v2731_v8  ;;  %4186 = vmatpush1.bf16.msra.mxu1 %v4185_v20  ;;  %v2755_v5 = vld [vmem:[#allocation3 + $0x40] sm:$0xff]  ;;  %v5526_v55 = vsel %vm2968_vm4, %v2970_v7, %v5510_v14  ;;  %v5532_v36 = vpop.permute.xlu1 %3032  ;;  %v2969_v14 = vsel %vm2968_vm4, %v2966_v62, %v5507_v58 }
 0x362   : > { %2743 = vst [vmem:[#allocation3 + $0x88] sm:$0xf] %v2735_v48  ;;  %2744 = vst [vmem:[#allocation3 + $0x90] sm:$0xf] %v2736_v49  ;;  %v4284_v49 = vmov 3  }
 0x363   : > { %4243 = vset.pattern.permute.xlu0 %v4284_v49 }
 0x364   : > { %v2733_v35 = vpop.permute.xlu0 %2732 }
 0x365   : > { %v2737_v61 = vsel %vm1447_vm13, %v2731_v8, %v2733_v35  ;;  %v2759_v21 = vld [vmem:[#allocation3 + $0x60] sm:$0xff]  ;;  %v5544_v63 = vpop.permute.xlu1 %3099 }
 0x366   : > { %2745 = vst [vmem:[#allocation3 + $0x98] sm:$0xf] %v2737_v61  ;;  %v4177_v15 = vpack.c.bf16 %v2759_v21, %v2755_v5  ;;  %v4118_v35 = vld [vmem:[%s5809_s8 + $0x46] ss:$8 sm:$0xf] }
 0x367   : > { %v3218_v61 = vrot.slane %v4118_v35, %v4381_v10  ;;  %v3222_v5 = vrot.slane %v4118_v35, %v4383_v11 }
 0x368   : > { %4178 = vmatpush1.bf16.msra.mxu0 %v4177_v15 }
 0x369   : > { %v2764_v45 = vld [vmem:[#allocation3 + $0x88] sm:$0xf]  ;;  %v2765_v50 = vld [vmem:[#allocation3 + $0x90] sm:$0xf]  ;;  %v5548_v24 = vpop.permute.xlu1 %3167  ;;  %v3231_v7 = vcombine.low %v3218_v61, %v3222_v5 }
 0x36a   : > { %4108 = vmatprep.subr.msk.mxu0 %vm686_vm1, %v2764_v45  ;;  %v3170_v49 = vrot.slane %v5548_v24, 4 }
 0x36c   : > { %4109 = vmatpush1.msk.msra.mxu0 %vm686_vm1, %v2763_v54  ;;  %v3226_v54 = vrot.slane %v4118_v35, %v4385_v12 }
 0x36d   : > { %4110 = vmatmul.mubr.msk.f32.vlgmr.msra.gmra.mrb[6].mxu0 %vm1257_vm11, %v2746_v25  ;;  %v2766_v6 = vld [vmem:[#allocation3 + $0x98] sm:$0xf]  ;;  %v3274_v46 = vpop.permute.xlu1 %3273 }
 0x36e   : > { %4111 = vmatprep.subr.msk.mxu1 %vm686_vm1, %v2766_v6  ;;  %3617 = vmatprep.mubr.f32.mxu0 %v4258_v4  ;;  %v3276_v51 = vrot.slane %v3274_v46, 4  ;;  %v3230_v6 = vrot.slane %v4118_v35, %v4387_v13 }
 0x36f   : > { %4112 = vmatpush1.msk.msra.mxu1 %vm686_vm1, %v2765_v50 }
 0x370   : > { %4113 = vmatmul.mubr.msk.f32.vlgmr.msra.gmra.mrb[6].mxu1 %vm1257_vm11, %v2746_v25  ;;  %v3285_v43 = vmul.f32 %v3276_v51, %v3249_v38 }
 0x371   : > { %3688 = vmatprep.mubr.f32.mxu1 %v4258_v4  ;;  %v3341_v60 = vpop.permute.xlu1 %3340 }
 0x372   : > { %v3291_v29 = vcombine.low %v3285_v43, %v3285_v43  ;;  %v3343_v9 = vrot.slane %v3341_v60, 4  ;;  %v3035_v43 = vrot.slane %v5532_v36, 4 }
 0x374   : > { %3300 = vrot.lane.b32.xlu1 %v3291_v29, %s4280_s26  ;;  %v3352_v0 = vmul.f32 %v3343_v9, %v3316_v44 }
 0x375   : > { %v2769_v26 = vpop.permute.xlu0 %2768  ;;  %v3407_v40 = vpop.permute.xlu1 %3406 }
 0x376   : > { %v3409_v1 = vrot.slane %v3407_v40, 4 }
 0x378   : > { %v3418_v20 = vmul.f32 %v3409_v1, %v3382_v19  ;;  %3366 = vrot.lane.b32.xlu1 %v3352_v0, %s4279_s29  ;;  %v3102_v0 = vrot.slane %v5544_v63, 4 }
 0x379   : > { %v5530_v57 = vpop.permute.xlu0 %3030 }
 0x37a   : > { %v3424_v48 = vcombine.low %v3418_v20, %v3418_v20  ;;  %v3034_v13 = vrot.slane %v5530_v57, 4 }
 0x37c   : > { %3433 = vrot.lane.b32.xlu1 %v3424_v48, %s4275_s15  ;;  %v3036_v44 = vsel %vm1541_vm0, %v3034_v13, %v5530_v57 }
 0x37d   : > { %v5542_v16 = vpop.permute.xlu0 %3097 }
 0x37f   : > { %v5534_v52 = vpop.f32.mrb[4].mxu0  ;;  %v5536_v59 = vpop.f32.mrb[4].mxu1 }
 0x380   : > { %v5538_v8 = vpop.f32.mrb[5].mxu0  ;;  %v5540_v22 = vpop.f32.mrb[5].mxu1 }
 0x381   : > { %v5546_v34 = vpop.permute.xlu0 %3165 }
 0x382   : > { %v3169_v20 = vrot.slane %v5546_v34, 4 }
 0x384   : > { %v3173_v5 = vsel %vm686_vm1, %v3169_v20, %v3170_v49 }
 0x385   : > { %v5550_v37 = vpop.permute.xlu0 %3271 }
 0x386   : > { %v3275_v18 = vrot.slane %v5550_v37, 4 }
 0x388   : > { %v3278_v41 = vsel %vm686_vm1, %v3275_v18, %v3276_v51  ;;  %v3232_v51 = vcombine.low %v3226_v54, %v3230_v6  ;;  %v3277_v58 = vsel %vm3197_vm5, %v3275_v18, %v5550_v37 }
 0x389   : > { %v5556_v23 = vpop.permute.xlu0 %3338  ;;  %v5559_v28 = vsel %vm3197_vm5, %v3278_v41, %v3274_v46 }
 0x38a   : > { %v3342_v3 = vrot.slane %v5556_v23, 4 }
 0x38c   : > { %v3345_v42 = vsel %vm686_vm1, %v3342_v3, %v3343_v9  ;;  %v3037_v9 = vsel %vm686_vm1, %v3034_v13, %v3035_v43 }
 0x38d   : > { %v5563_v56 = vpop.permute.xlu0 %3404  ;;  %v5570_v39 = vsel %vm3128_vm6, %v3345_v42, %v3341_v60  ;;  %v3038_v42 = vsel %vm1541_vm0, %v3037_v9, %v5532_v36  ;;  %v3172_v36 = vsel %vm3171_vm7, %v3169_v20, %v5546_v34  ;;  %v3174_v34 = vsel %vm3171_vm7, %v3173_v5, %v5548_v24 }
 0x38e   : > { %v3408_v47 = vrot.slane %v5563_v56, 4 }
 0x390   : > { %v3411_v32 = vsel %vm686_vm1, %v3408_v47, %v3409_v1  ;;  %v3410_v37 = vsel %vm1515_vm10, %v3408_v47, %v5563_v56 }
 0x391   : > { %v5576_v53 = vsel %vm1515_vm10, %v3411_v32, %v3407_v40  ;;  %v3101_v32 = vrot.slane %v5542_v16, 4  ;;  %v3472_v9 = vpop.permute.xlu0 %3471 }
 0x393   : > { %v3105_v61 = vsel %vm686_vm1, %v3101_v32, %v3102_v0 }
 0x440   : > { %v2852_v21 = vpop.f32.mrb[6].mxu0 }
 0x441   : > { %v5585_v15 = vadd.f32 %v2852_v21, %v2769_v26  ;;  %v2854_v45 = vpop.f32.mrb[7].mxu0 }
 0x442   : > { %v5587_v25 = vadd.f32 %v2854_v45, %v2769_v26  ;;  %v3106_v45 = vsel %vm3103_vm8, %v3105_v61, %v5544_v63  ;;  %v3104_v63 = vsel %vm3103_vm8, %v3101_v32, %v5542_v16 }
 0x443   : > { %v2923_v50 = vpop.f32.mrb[6].mxu1 }
 0x444   : > { %v5593_v46 = vcombine.low %v5585_v15, %v5587_v25  ;;  %v5595_v38 = vadd.f32 %v2923_v50, %v2769_v26  ;;  %v2925_v10 = vpop.f32.mrb[7].mxu1 }
 0x445   : > { %v5597_v11 = vadd.f32 %v2925_v10, %v2769_v26  ;;  %v3344_v10 = vsel %vm3128_vm6, %v3342_v3, %v5556_v23 }
 0x446   : > { %2936 = vst [vmem:[#allocation2 + $0x4] sm:$0xff] %v5593_v46  ;;  %v3235_v12 = vmul.f32 %v3231_v7, %v5593_v46  ;;  %v3350_v62 = vmul.f32 %v3344_v10, %v5593_v46  ;;  %v3283_v16 = vmul.f32 %v3277_v58, %v5593_v46  ;;  %v3416_v13 = vmul.f32 %v3410_v37, %v5593_v46 }
 0x447   : > { %v5602_v41 = vcombine.low %v5595_v38, %v5597_v11 }
 0x448   : > { %3243 = vst [vmem:[#allocation3 + $0x40] sm:$0xf] %v3235_v12  ;;  %v3239_v60 = vcombine.high %v3235_v12, %v3235_v12 }
 0x449   : > { %2937 = vst [vmem:[#allocation2 + $0xc] sm:$0xff] %v5602_v41  ;;  %v3236_v26 = vmul.f32 %v3232_v51, %v5602_v41  ;;  %v3351_v24 = vmul.f32 %v5570_v39, %v5602_v41  ;;  %v3284_v12 = vmul.f32 %v5559_v28, %v5602_v41  ;;  %v3417_v28 = vmul.f32 %v5576_v53, %v5602_v41  ;;  %v3474_v53 = vpop.permute.xlu1 %3473 }
 0x44a   : > { %3244 = vst [vmem:[#allocation3 + $0x48] sm:$0xf] %v3239_v60 }
 0x44b   : > { %v3240_v29 = vcombine.high %v3236_v26, %v3236_v26  ;;  %3245 = vst [vmem:[#allocation3 + $0x50] sm:$0xf] %v3236_v26  ;;  %v3290_v32 = vcombine.low %v3284_v12, %v3284_v12  ;;  %v3357_v5 = vcombine.high %v3351_v24, %v3351_v24 }
 0x44d   : > { %v3006_v40 = vld [vmem:[#allocation2] sm:$0xff]  ;;  %3246 = vst [vmem:[#allocation3 + $0x58] sm:$0xf] %v3240_v29 }
 0x44e   : > { %v5612_v1 = vmul.f32 %v3036_v44, %v3006_v40  ;;  %v3178_v21 = vmul.f32 %v3172_v36, %v3006_v40  ;;  %v2975_v7 = vmul.f32 %v3006_v40, %v2969_v14  ;;  %v3110_v51 = vmul.f32 %v3104_v63, %v3006_v40 }
 0x450   : > { %3053 = vrot.lane.b32.xlu0 %v5612_v1, %s4270_s11  ;;  %v2939_v19 = vld [vmem:[#allocation2 + $0x8] sm:$0xff]  ;;  %v2940_v35 = vld [vmem:[#allocation2 + $0x10] sm:$0xf]  ;;  %v2981_v47 = vcombine.high %v2975_v7, %v2975_v7  ;;  %v3048_v29 = vcombine.low %v5612_v1, %v5612_v1  ;;  %v3184_v40 = vcombine.low %v3178_v21, %v3178_v21 }
 0x451   : > { %v5622_v57 = vmul.f32 %v5526_v55, %v2939_v19  ;;  %v3043_v48 = vmul.f32 %v3038_v42, %v2939_v19  ;;  %v2977_v55 = vmul.f32 %v2967_v30, %v2940_v35  ;;  %v3111_v54 = vmul.f32 %v3106_v45, %v2939_v19  ;;  %v3075_v50 = vld [vmem:[#allocation2 + $0x10] sm:$0xf] }
 0x452   : > { %v3179_v6 = vmul.f32 %v3174_v34, %v2939_v19  ;;  %v3112_v30 = vmul.f32 %v3102_v0, %v3075_v50  ;;  %v3008_v39 = vld [vmem:[#allocation2 + $0x10] sm:$0xf]  ;;  %v3475_v42 = vrot.slane %v3472_v9, 4  ;;  %v3116_v0 = vcombine.high %v3110_v51, %v3110_v51  ;;  %v3449_v34 = vld [vmem:[#allocation2 + $0x14] sm:$0xf]  ;;  %v3301_v50 = vpop.permute.xlu1 %3300 }
 0x453   : > { %2987 = vrot.lane.b32.xlu1 %v5622_v57, %s4283_s18  ;;  %v3049_v23 = vcombine.low %v3043_v48, %v3043_v48  ;;  %v3044_v3 = vmul.f32 %v3035_v43, %v3008_v39  ;;  %v3143_v60 = vld [vmem:[#allocation2 + $0x10] sm:$0xf]  ;;  %v2982_v44 = vcombine.high %v5622_v57, %v5622_v57  ;;  %v3476_v19 = vrot.slane %v3474_v53, 4 }
 0x454   : > { %3057 = vrot.lane.b32.xlu0 %v3043_v48, %s4270_s11  ;;  %v3185_v43 = vcombine.low %v3179_v6, %v3179_v6  ;;  %v3180_v26 = vmul.f32 %v3170_v49, %v3143_v60  ;;  %v3477_v1 = vsel %vm2993_vm9, %v3475_v42, %v3472_v9  ;;  %v3117_v20 = vcombine.high %v3111_v54, %v3111_v54 }
 0x455   : > { %v3050_v18 = vcombine.low %v3044_v3, %v3044_v3  ;;  %v3478_v57 = vsel %vm686_vm1, %v3475_v42, %v3476_v19  ;;  %v3423_v48 = vcombine.low %v3417_v28, %v3417_v28  ;;  %v3483_v49 = vmul.f32 %v3477_v1, %v5593_v46 }
 0x456   : > { %v3186_v56 = vcombine.low %v3180_v26, %v3180_v26  ;;  %v3356_v35 = vcombine.high %v3350_v62, %v3350_v62  ;;  %v3479_v36 = vsel %vm2993_vm9, %v3478_v57, %v3474_v53  ;;  %v3289_v45 = vcombine.low %v3283_v16, %v3283_v16  ;;  %v5711_v14 = vpop.permute.xlu1 %3366 }
 0x457   : > { %2991 = vrot.lane.b32.xlu1 %v2977_v55, %s4283_s18  ;;  %v3489_v61 = vcombine.high %v3483_v49, %v3483_v49  ;;  %v3484_v55 = vmul.f32 %v3479_v36, %v5602_v41  ;;  %v3422_v46 = vcombine.low %v3416_v13, %v3416_v13  ;;  %v3485_v41 = vmul.f32 %v3476_v19, %v3449_v34 }
 0x458   : > { %3189 = vrot.lane.b32.xlu0 %v3178_v21, %s4281_s20 }
 0x459   : > { %v3490_v21 = vcombine.high %v3484_v55, %v3484_v55 }
 0x45b   : > { %3122 = vrot.lane.b32.xlu1 %v3111_v54, %s4282_s27  ;;  %v4285_v54 = vmov 4  }
 0x45c   : > { %3193 = vrot.lane.b32.xlu0 %v3179_v6, %s4281_s20  ;;  %4244 = vset.pattern.permute.xlu1 %v4285_v54  ;;  %v4286_v6 = vmov 5  }
 0x45f   : > { %3126 = vrot.lane.b32.xlu1 %v3112_v30, %s4282_s27  ;;  %v3434_v30 = vpop.permute.xlu1 %3433 }
 0x460   : > { %2983 = vrot.lane.b32.xlu0 %v2975_v7, %s4283_s18 }
 0x463   : > { %3362 = vrot.lane.b32.xlu1 %v3351_v24, %s4279_s29 }
 0x464   : > { %3118 = vrot.lane.b32.xlu0 %v3110_v51, %s4282_s27 }
 0x467   : > { %3358 = vrot.lane.b32.xlu1 %v3350_v62, %s4279_s29 }
 0x468   : > { %3294 = vrot.lane.b32.xlu0 %v3283_v16, %s4280_s26 }
 0x46b   : > { %3055 = vrot.lane.b32.xlu1 %v3049_v23, %s4270_s11 }
 0x46c   : > { %3298 = vrot.lane.b32.xlu0 %v3284_v12, %s4280_s26 }
 0x46f   : > { %3059 = vrot.lane.b32.xlu1 %v3050_v18, %s4270_s11 }
 0x470   : > { %3427 = vrot.lane.b32.xlu0 %v3416_v13, %s4275_s15 }
 0x473   : > { %3191 = vrot.lane.b32.xlu1 %v3185_v43, %s4281_s20 }
 0x474   : > { %3431 = vrot.lane.b32.xlu0 %v3417_v28, %s4275_s15 }
 0x477   : > { %3195 = vrot.lane.b32.xlu1 %v3186_v56, %s4281_s20 }
 0x478   : > { %2985 = vrot.lane.b32.xlu0 %v2981_v47, %s4283_s18 }
 0x47b   : > { %3051 = vrot.lane.b32.xlu1 %v3048_v29, %s4270_s11 }
 0x47c   : > { %2989 = vrot.lane.b32.xlu0 %v2982_v44, %s4283_s18 }
 0x47f   : > { %3187 = vrot.lane.b32.xlu1 %v3184_v40, %s4281_s20 }
 0x480   : > { %3120 = vrot.lane.b32.xlu0 %v3116_v0, %s4282_s27 }
 0x483   : > { %3296 = vrot.lane.b32.xlu1 %v3290_v32, %s4280_s26 }
 0x484   : > { %3124 = vrot.lane.b32.xlu0 %v3117_v20, %s4282_s27 }
 0x487   : > { %3429 = vrot.lane.b32.xlu1 %v3423_v48, %s4275_s15 }
 0x488   : > { %3360 = vrot.lane.b32.xlu0 %v3356_v35, %s4279_s29 }
 0x48b   : > { %3493 = vrot.lane.b32.xlu1 %v3489_v61, %s4278_s21 }
 0x48c   : > { %3364 = vrot.lane.b32.xlu0 %v3357_v5, %s4279_s29 }
 0x48f   : > { %3497 = vrot.lane.b32.xlu1 %v3490_v21, %s4278_s21 }
 0x490   : > { %3292 = vrot.lane.b32.xlu0 %v3289_v45, %s4280_s26 }
 0x493   : > { %3491 = vrot.lane.b32.xlu1 %v3483_v49, %s4278_s21 }
 0x494   : > { %3425 = vrot.lane.b32.xlu0 %v3422_v46, %s4275_s15 }
 0x497   : > { %3697 = vperm.xlu1 %4244, %v5392_v17  }
 0x498   : > { %3495 = vrot.lane.b32.xlu0 %v3484_v55, %s4278_s21 }
 0x49b   : > { %4245 = vset.pattern.permute.xlu1 %v4286_v6 }
 0x49c   : > { %3499 = vrot.lane.b32.xlu0 %v3485_v41, %s4278_s21  ;;  %3535 = vperm.xlu1 %4245, %v5392_v17   ;;  %s453_s21 = scalar_lea.vmem %s5806_s5, %s4379_s28 }
 0x4a0   : > { %2016 = vperm.xlu0 %4243, %v5392_v17  }
 0x4a4   : > { %4246 = vset.pattern.permute.xlu0 %v4285_v54 }
 0x4c2   : > { %v3054_v7 = vpop.permute.xlu0 %3053 }
 0x4c5   : > { %v2988_v63 = vpop.permute.xlu1 %2987 }
 0x4c6   : > { %v3058_v24 = vpop.permute.xlu0 %3057 }
 0x4c9   : > { %v2992_v10 = vpop.permute.xlu1 %2991 }
 0x4ca   : > { %v3190_v51 = vpop.permute.xlu0 %3189 }
 0x4cd   : > { %v3123_v58 = vpop.permute.xlu1 %3122 }
 0x4ce   : > { %v3194_v62 = vpop.permute.xlu0 %3193 }
 0x4d1   : > { %v3127_v16 = vpop.permute.xlu1 %3126 }
 0x4d2   : > { %v2984_v39 = vpop.permute.xlu0 %2983 }
 0x4d5   : > { %v5713_v23 = vpop.permute.xlu1 %3362 }
 0x4d6   : > { %v3119_v3 = vpop.permute.xlu0 %3118 }
 0x4d9   : > { %v5715_v12 = vpop.permute.xlu1 %3358 }
 0x4da   : > { %v5717_v37 = vpop.permute.xlu0 %3294 }
 0x4dd   : > { %v3056_v17 = vpop.permute.xlu1 %3055 }
 0x4de   : > { %v3062_v18 = vsel %vm1515_vm10, %v3054_v7, %v3056_v17  ;;  %v3063_v13 = vsel %vm1515_vm10, %v3056_v17, %v3058_v24  ;;  %v3299_v60 = vpop.permute.xlu0 %3298 }
 0x4df   : > { %3070 = vst [vmem:[#allocation3 + $0x8] sm:$0xf0] %v3062_v18  ;;  %3071 = vst [vmem:[#allocation3 + $0x10] sm:$0xf0] %v3063_v13  ;;  %v3305_v43 = vsel %vm3171_vm7, %v3299_v60, %v3301_v50 }
 0x4e0   : > { %3313 = vst [vmem:[#allocation3 + $0x58] sm:$0xf0] %v3305_v43 }
 0x4e1   : > { %v3060_v26 = vpop.permute.xlu1 %3059 }
 0x4e2   : > { %v3064_v28 = vsel %vm1515_vm10, %v3058_v24, %v3060_v26  ;;  %v5723_v56 = vpop.permute.xlu0 %3427 }
 0x4e3   : > { %3072 = vst [vmem:[#allocation3 + $0x18] sm:$0xf0] %v3064_v28 }
 0x4e5   : > { %v3192_v47 = vpop.permute.xlu1 %3191 }
 0x4e6   : > { %v3199_v29 = vsel %vm3197_vm5, %v3190_v51, %v3192_v47  ;;  %v3200_v44 = vsel %vm3197_vm5, %v3192_v47, %v3194_v62  ;;  %v3432_v9 = vpop.permute.xlu0 %3431 }
 0x4e7   : > { %3207 = vst [vmem:[#allocation3 + $0x28] sm:$0xf0] %v3199_v29  ;;  %3208 = vst [vmem:[#allocation3 + $0x30] sm:$0xf0] %v3200_v44  ;;  %v3438_v53 = vsel %vm1541_vm0, %v3432_v9, %v3434_v30 }
 0x4e8   : > { %3446 = vst [vmem:[#allocation3 + $0x78] sm:$0xf0] %v3438_v53 }
 0x4e9   : > { %v3196_v40 = vpop.permute.xlu1 %3195 }
 0x4ea   : > { %v3201_v42 = vsel %vm3197_vm5, %v3194_v62, %v3196_v40  ;;  %v2986_v0 = vpop.permute.xlu0 %2985 }
 0x4eb   : > { %3209 = vst [vmem:[#allocation3 + $0x38] sm:$0xf0] %v3201_v42  ;;  %v2994_v19 = vsel %vm2993_vm9, %v2984_v39, %v2986_v0  ;;  %v2995_v32 = vsel %vm2993_vm9, %v2986_v0, %v2988_v63 }
 0x4ec   : > { %3002 = vst [vmem:[#allocation3] sm:$0xf] %v2994_v19  ;;  %3003 = vst [vmem:[#allocation3 + $0x8] sm:$0xf] %v2995_v32  ;;  %v3525_v19 = vld [vmem:[#allocation3 + $0x58] sm:$0xff] }
 0x4ed   : > { %v3052_v1 = vpop.permute.xlu1 %3051 }
 0x4ee   : > { %v3061_v20 = vsel %vm1515_vm10, %v3052_v1, %v3054_v7  ;;  %v2990_v57 = vpop.permute.xlu0 %2989  ;;  %vm3700_vm10 = vcmask 31744  }
 0x4ef   : > { %3069 = vst [vmem:[#allocation3] sm:$0xf0] %v3061_v20  ;;  %v2996_v48 = vsel %vm2993_vm9, %v2988_v63, %v2990_v57  ;;  %v2997_v49 = vsel %vm2993_vm9, %v2990_v57, %v2992_v10 }
 0x4f0   : > { %3004 = vst [vmem:[#allocation3 + $0x10] sm:$0xf] %v2996_v48  ;;  %3005 = vst [vmem:[#allocation3 + $0x18] sm:$0xf] %v2997_v49 }
 0x4f1   : > { %v3188_v35 = vpop.permute.xlu1 %3187 }
 0x4f2   : > { %v3198_v36 = vsel %vm3197_vm5, %v3188_v35, %v3190_v51  ;;  %v3121_v61 = vpop.permute.xlu0 %3120 }
 0x4f3   : > { %3206 = vst [vmem:[#allocation3 + $0x20] sm:$0xf0] %v3198_v36  ;;  %v3129_v55 = vsel %vm3128_vm6, %v3119_v3, %v3121_v61  ;;  %v3130_v5 = vsel %vm3128_vm6, %v3121_v61, %v3123_v58  ;;  %v3515_v63 = vld [vmem:[#allocation3 + $0x8] sm:$0xff] }
 0x4f4   : > { %3137 = vst [vmem:[#allocation3 + $0x20] sm:$0xf] %v3129_v55  ;;  %3138 = vst [vmem:[#allocation3 + $0x28] sm:$0xf] %v3130_v5 }
 0x4f5   : > { %v3297_v21 = vpop.permute.xlu1 %3296 }
 0x4f6   : > { %v3303_v45 = vsel %vm3171_vm7, %v5717_v37, %v3297_v21  ;;  %v3304_v46 = vsel %vm3171_vm7, %v3297_v21, %v3299_v60  ;;  %v3125_v34 = vpop.permute.xlu0 %3124 }
 0x4f7   : > { %3311 = vst [vmem:[#allocation3 + $0x48] sm:$0xf0] %v3303_v45  ;;  %3312 = vst [vmem:[#allocation3 + $0x50] sm:$0xf0] %v3304_v46  ;;  %v3131_v41 = vsel %vm3128_vm6, %v3123_v58, %v3125_v34  ;;  %v3132_v54 = vsel %vm3128_vm6, %v3125_v34, %v3127_v16  ;;  %v3514_v58 = vld [vmem:[#allocation3] sm:$0xff]  ;;  %v3517_v18 = vld [vmem:[#allocation3 + $0x18] sm:$0xff] }
 0x4f8   : > { %3139 = vst [vmem:[#allocation3 + $0x30] sm:$0xf] %v3131_v41  ;;  %3140 = vst [vmem:[#allocation3 + $0x38] sm:$0xf] %v3132_v54  ;;  %v3516_v43 = vld [vmem:[#allocation3 + $0x10] sm:$0xff] }
 0x4f9   : > { %v3430_v6 = vpop.permute.xlu1 %3429  ;;  %v3513_v46 = vld [vmem:[%s453_s21] sm:$0xf] }
 0x4fa   : > { %v3436_v50 = vsel %vm1541_vm0, %v5723_v56, %v3430_v6  ;;  %v3437_v30 = vsel %vm1541_vm0, %v3430_v6, %v3432_v9  ;;  %v3361_v7 = vpop.permute.xlu0 %3360  ;;  %v3695_v6 = vld [vmem:[%s457_s17] sm:$0xf] }
 0x4fb   : > { %3444 = vst [vmem:[#allocation3 + $0x68] sm:$0xf0] %v3436_v50  ;;  %3445 = vst [vmem:[#allocation3 + $0x70] sm:$0xf0] %v3437_v30  ;;  %v3368_v24 = vsel %vm3103_vm8, %v5715_v12, %v3361_v7  ;;  %v3369_v10 = vsel %vm3103_vm8, %v3361_v7, %v5713_v23  ;;  %v3519_v51 = vld [vmem:[#allocation3 + $0x28] sm:$0xff]  ;;  %v3518_v62 = vld [vmem:[#allocation3 + $0x20] sm:$0xff] }
 0x4fc   : > { %3376 = vst [vmem:[#allocation3 + $0x60] sm:$0xf] %v3368_v24  ;;  %3377 = vst [vmem:[#allocation3 + $0x68] sm:$0xf] %v3369_v10  ;;  %v4187_v16 = vpack.c.bf16 %v3519_v51, %v3515_v63  ;;  %v4189_v39 = vpack.c.bf16 %v3518_v62, %v3514_v58  ;;  %v3854_v63 = vmax.f32 %v5183_v33, 0.0  ;;  %v3856_v24 = vmax.f32 %v5214_v2, 0.0 }
 0x4fd   : > { %v3494_v3 = vpop.permute.xlu1 %3493 }
 0x4fe   : > { %v3365_v17 = vpop.permute.xlu0 %3364  ;;  %4188 = vmatprep.subr.bf16.mxu0 %v4187_v16  ;;  %v3523_v53 = vld [vmem:[#allocation3 + $0x48] sm:$0xff]  ;;  %v3524_v20 = vld [vmem:[#allocation3 + $0x50] sm:$0xff] }
 0x4ff   : > { %v3370_v13 = vsel %vm3103_vm8, %v5713_v23, %v3365_v17  ;;  %v3371_v12 = vsel %vm3103_vm8, %v3365_v17, %v5711_v14  ;;  %4190 = vmatpush1.bf16.msra.mxu0 %v4189_v39  ;;  %v3521_v60 = vld [vmem:[#allocation3 + $0x38] sm:$0xff]  ;;  %v3520_v26 = vld [vmem:[#allocation3 + $0x30] sm:$0xff] }
 0x500   : > { %3378 = vst [vmem:[#allocation3 + $0x70] sm:$0xf] %v3370_v13  ;;  %3379 = vst [vmem:[#allocation3 + $0x78] sm:$0xf] %v3371_v12  ;;  %v4195_v28 = vpack.c.bf16 %v3521_v60, %v3517_v18  ;;  %v4197_v47 = vpack.c.bf16 %v3520_v26, %v3516_v43 }
 0x501   : > { %v3498_v29 = vpop.permute.xlu1 %3497 }
 0x502   : > { %v3293_v44 = vpop.permute.xlu0 %3292  ;;  %4196 = vmatprep.subr.bf16.mxu1 %v4195_v28 }
 0x503   : > { %v3302_v9 = vsel %vm3171_vm7, %v3293_v44, %v5717_v37  ;;  %4198 = vmatpush1.bf16.msra.mxu1 %v4197_v47  ;;  %v3527_v23 = vld [vmem:[#allocation3 + $0x68] sm:$0xff] }
 0x504   : > { %3310 = vst [vmem:[#allocation3 + $0x40] sm:$0xf0] %v3302_v9  ;;  %v4191_v40 = vpack.c.bf16 %v3527_v23, %v3523_v53 }
 0x505   : > { %v3492_v14 = vpop.permute.xlu1 %3491 }
 0x506   : > { %v3501_v42 = vsel %vm2968_vm4, %v3492_v14, %v3494_v3  ;;  %v3426_v0 = vpop.permute.xlu0 %3425  ;;  %4192 = vmatprep.subr.bf16.mxu0 %v4191_v40 }
 0x507   : > { %3509 = vst [vmem:[#allocation3 + $0x80] sm:$0xf] %v3501_v42  ;;  %v3435_v32 = vsel %vm1541_vm0, %v3426_v0, %v5723_v56  ;;  %v3529_v1 = vld [vmem:[#allocation3 + $0x78] sm:$0xff]  ;;  %v3528_v57 = vld [vmem:[#allocation3 + $0x70] sm:$0xff] }
 0x508   : > { %3443 = vst [vmem:[#allocation3 + $0x60] sm:$0xf0] %v3435_v32  ;;  %v4199_v37 = vpack.c.bf16 %v3529_v1, %v3525_v19  ;;  %v4201_v48 = vpack.c.bf16 %v3528_v57, %v3524_v20 }
 0x50a   : > { %v3496_v49 = vpop.permute.xlu0 %3495  ;;  %4200 = vmatprep.subr.bf16.mxu1 %v4199_v37 }
 0x50b   : > { %v3502_v35 = vsel %vm2968_vm4, %v3494_v3, %v3496_v49  ;;  %v3503_v36 = vsel %vm2968_vm4, %v3496_v49, %v3498_v29  ;;  %4202 = vmatpush1.bf16.msra.mxu1 %v4201_v48  ;;  %v3522_v55 = vld [vmem:[#allocation3 + $0x40] sm:$0xff] }
 0x50c   : > { %3510 = vst [vmem:[#allocation3 + $0x88] sm:$0xf] %v3502_v35  ;;  %3511 = vst [vmem:[#allocation3 + $0x90] sm:$0xf] %v3503_v36 }
 0x50e   : > { %v3500_v61 = vpop.permute.xlu0 %3499  ;;  %v3530_v34 = vld [vmem:[#allocation3 + $0x80] sm:$0xf] }
 0x50f   : > { %v3504_v56 = vsel %vm2968_vm4, %v3498_v29, %v3500_v61  ;;  %v3526_v5 = vld [vmem:[#allocation3 + $0x60] sm:$0xff] }
 0x510   : > { %3512 = vst [vmem:[#allocation3 + $0x98] sm:$0xf] %v3504_v56  ;;  %v4193_v21 = vpack.c.bf16 %v3526_v5, %v3522_v55 }
 0x512   : > { %4194 = vmatpush1.bf16.msra.mxu0 %v4193_v21 }
 0x513   : > { %v3531_v45 = vld [vmem:[#allocation3 + $0x88] sm:$0xf]  ;;  %v3532_v54 = vld [vmem:[#allocation3 + $0x90] sm:$0xf] }
 0x514   : > { %4123 = vmatprep.subr.msk.mxu0 %vm686_vm1, %v3531_v45 }
 0x516   : > { %4124 = vmatpush1.msk.msra.mxu0 %vm686_vm1, %v3530_v34  ;;  %v3698_v39 = vpop.permute.xlu1 %3697 }
 0x517   : > { %4125 = vmatmul.mubr.msk.f32.vlgmr.msra.gmra.mrb[8].mxu0 %vm1257_vm11, %v3513_v46  ;;  %4129 = vmatprep.subr.msk.mxu0 %vm686_vm1, %v5587_v25  ;;  %v3533_v41 = vld [vmem:[#allocation3 + $0x98] sm:$0xf] }
 0x518   : > { %4126 = vmatprep.subr.msk.mxu1 %vm686_vm1, %v3533_v41  ;;  %4130 = vmatpush1.msk.msra.mxu0 %vm686_vm1, %v5585_v15 }
 0x519   : > { %4127 = vmatpush1.msk.msra.mxu1 %vm686_vm1, %v3532_v54  ;;  %3776 = vmatprep.mubr.f32.mxu0 %v4258_v4 }
 0x51a   : > { %4128 = vmatmul.mubr.msk.f32.vlgmr.msra.gmra.mrb[8].mxu1 %vm1257_vm11, %v3513_v46  ;;  %4132 = vmatprep.subr.msk.mxu1 %vm686_vm1, %v5597_v11  ;;  %v3855_v11 = vmax.f32 %v5193_v27, 0.0 }
 0x51b   : > { %4131 = vmatmul.mubr.msk.f32.vlgmr.msra.gmra.mrb[10].mxu0 %vm3700_vm10, %v3695_v6  ;;  %4133 = vmatpush1.msk.msra.mxu1 %vm686_vm1, %v5595_v38  ;;  %v3857_v38 = vmax.f32 %v5217_v31, 0.0 }
 0x51c   : > { %3847 = vmatprep.mubr.f32.mxu1 %v4258_v4 }
 0x51e   : > { %4134 = vmatmul.mubr.msk.f32.vlgmr.msra.gmra.mrb[10].mxu1 %vm3700_vm10, %v3695_v6 }
 0x51f   : > { %v2017_v15 = vpop.permute.xlu0 %2016 }
 0x520   : > { %v2101_v25 = vadd.f32 %v5534_v52, %v2017_v15  ;;  %v2103_v50 = vadd.f32 %v5538_v8, %v2017_v15  ;;  %v2172_v30 = vadd.f32 %v5536_v59, %v2017_v15  ;;  %v2174_v7 = vadd.f32 %v5540_v22, %v2017_v15  ;;  %v3536_v22 = vpop.permute.xlu1 %3535 }
 0x522   : > { %v3858_v10 = vmax.f32 %v2101_v25, 0.0  ;;  %v3859_v4 = vmax.f32 %v2103_v50, 0.0  ;;  %v3860_v51 = vmax.f32 %v2172_v30, 0.0  ;;  %v3861_v58 = vmax.f32 %v2174_v7, 0.0 }
 0x524   : > { %v3862_v62 = vadd.f32 %v3858_v10, %v3854_v63  ;;  %v3863_v52 = vadd.f32 %v3859_v4, %v3855_v11  ;;  %v3864_v16 = vadd.f32 %v3860_v51, %v3856_v24  ;;  %v3865_v8 = vadd.f32 %v3861_v58, %v3857_v38 }
 0x5ea   : > { %v3619_v59 = vpop.f32.mrb[8].mxu0 }
 0x5eb   : > { %v3621_v3 = vpop.f32.mrb[9].mxu0  ;;  %v3620_v13 = vadd.f32 %v3619_v59, %v3536_v22 }
 0x5ec   : > { %v3622_v12 = vadd.f32 %v3621_v3, %v3536_v22 }
 0x5ed   : > { %v3690_v17 = vpop.f32.mrb[8].mxu1  ;;  %v3874_v53 = vmax.f32 %v3620_v13, 0.0 }
 0x5ee   : > { %v3692_v33 = vpop.f32.mrb[9].mxu1  ;;  %v3778_v18 = vpop.f32.mrb[10].mxu0  ;;  %v3691_v26 = vadd.f32 %v3690_v17, %v3536_v22  ;;  %v3875_v40 = vmax.f32 %v3622_v12, 0.0 }
 0x5ef   : > { %v3779_v27 = vadd.f32 %v3778_v18, %v3698_v39  ;;  %v3780_v2 = vpop.f32.mrb[11].mxu0  ;;  %v3693_v9 = vadd.f32 %v3692_v33, %v3536_v22 }
 0x5f0   : > { %v3781_v31 = vadd.f32 %v3780_v2, %v3698_v39  ;;  %v3876_v32 = vmax.f32 %v3691_v26, 0.0 }
 0x5f1   : > { %v3866_v60 = vmax.f32 %v3779_v27, 0.0  ;;  %v3849_v43 = vpop.f32.mrb[10].mxu1  ;;  %v3877_v57 = vmax.f32 %v3693_v9, 0.0 }
 0x5f2   : > { %v3867_v28 = vmax.f32 %v3781_v31, 0.0  ;;  %v3850_v47 = vadd.f32 %v3849_v43, %v3698_v39  ;;  %v3851_v29 = vpop.f32.mrb[11].mxu1 }
 0x5f3   : > { %v3870_v44 = vadd.f32 %v3866_v60, %v3862_v62  ;;  %v3852_v23 = vadd.f32 %v3851_v29, %v3698_v39 }
 0x5f4   : > { %v3871_v14 = vadd.f32 %v3867_v28, %v3863_v52  ;;  %v3868_v42 = vmax.f32 %v3850_v47, 0.0 }
 0x5f5   : > { %v3878_v0 = vadd.f32 %v3874_v53, %v3870_v44  ;;  %v3869_v19 = vmax.f32 %v3852_v23, 0.0 }
 0x5f6   : > { %v3879_v1 = vadd.f32 %v3875_v40, %v3871_v14  ;;  %v3872_v20 = vadd.f32 %v3868_v42, %v3864_v16 }
 0x5f7   : > { %v3873_v37 = vadd.f32 %v3869_v19, %v3865_v8 }
 0x5f8   : > { %v3886_v48 = vcombine.low %v3878_v0, %v3879_v1  ;;  %v3880_v49 = vadd.f32 %v3876_v32, %v3872_v20 }
 0x5f9   : > { %v3881_v35 = vadd.f32 %v3877_v57, %v3873_v37 }
 0x5fa   : > { %3890 = vst [vmem:[%s471_s22] sm:$0xff] %v3886_v48 }
 0x5fb   : > { %v3887_v36 = vcombine.low %v3880_v49, %v3881_v35 }
 0x5fd   : > { %3891 = vst [vmem:[%s471_s22 + $0x8] sm:$0xff] %v3887_v36 }
 0x5fe PF: > { %s21_s13 = sadd.s32 1, %s4256_s13  }
 0x5ff   : > { %p18_p5 = scmp.ge.s32.totalorder %s21_s13, 4  }
 0x601   :  { %20 = sbr.rel (!%p18_p5) target bundleno = 1 (0x1), region = 142 }

</bundles_post_ra>
